<compile_context>
chip_gen: v5e
topology: v5e:2x2
jax: 0.10.0
libtpu: 0.0.40
codegen_flags: <defaults>
</compile_context>

<pallas_src>
import functools

import numpy as np
import jax
import jax.numpy as jnp
from jax import lax
from jax.experimental import pallas as pl
from jax.experimental.pallas import tpu as pltpu


# Sizes implied by the module (fc1 expects 6*6*16 features => 30x30 input).
_H = 30              # input spatial size
_C1, _C2 = 8, 16     # conv1 / conv2 output channels
_O1 = _H - 2         # 28 : conv1 output spatial
_P1 = _O1 // 2       # 14 : after pool1
_O2 = _P1 - 2        # 12 : conv2 output spatial
_P2 = _O2 // 2       # 6  : after pool2
_F1, _F2 = 128, 64   # fc1 / fc2 widths
_LANE = 128

# "Wide" (uncompacted) flat widths: conv output (i, j) lives at flat index i*stride + j.
_W1 = (_O1 - 1) * _H + _O1      # 838 : conv1 output in the 30-wide input frame
_W2 = (_O2 - 1) * _P1 + _O2     # 166 : conv2 output in the 14-wide pool1 frame
_M1 = _W1 - 1 - _H              # 807 : pool1 2x2-max width
_M2 = _W2 - 1 - _P1             # 151 : pool2 2x2-max width
_D1 = tuple(kh * _H + kw for kh in range(3) for kw in range(3))    # conv1 tap offsets
_D2 = tuple(kh * _P1 + kw for kh in range(3) for kw in range(3))   # conv2 tap offsets


def _pool_selector(stride, dst_w, rows):
    """(rows, dst_w^2) 0/1 matrix: column a*dst_w+b selects wide flat index 2a*stride+2b.

    Exact in bf16 (values are 0.0 / 1.0), so the stride-2 compaction runs as a
    single-pass bf16 MXU matmul instead of a strided lane gather.
    """
    c = np.arange(dst_w * dst_w)
    tgt = 2 * (c // dst_w) * stride + 2 * (c % dst_w)
    sel = (np.arange(rows)[:, None] == tgt[None, :]).astype(np.float32)
    return jnp.asarray(sel, dtype=jnp.bfloat16)


def _tree_sum(xs):
    """Balanced-tree sum of a list of arrays (breaks serial dependency chains)."""
    xs = list(xs)
    while len(xs) > 1:
        nxt = [xs[i] + xs[i + 1] for i in range(0, len(xs) - 1, 2)]
        if len(xs) % 2:
            nxt.append(xs[-1])
        xs = nxt
    return xs[0]


# -----------------------------------------------------------------------------
# Fused kernel: conv1+relu+pool -> conv2+relu+pool -> fc1..fc3 (+relu) -> softmax
# One grid step per batch element; all intermediates stay in vregs/VMEM.
# -----------------------------------------------------------------------------
def _fused_net_kernel(x_ref, w1_ref, b1_ref, s1_ref,
                      w2_ref, b2_ref, s2_ref,
                      wf1_ref, bf1_ref, wf2_ref, bf2_ref, wf3_ref, bf3_ref,
                      o_ref, *, n_out):
    f32, bf16 = jnp.float32, jnp.bfloat16

    # ---- conv1: one MXU matmul over all 9 taps (in-kernel im2col via tap slices) ------
    # w1: (72, cin) = (9 taps x 8 out-ch, cin);  x: (cin, 900) = flat 30x30.
    v1 = jnp.dot(w1_ref[...], x_ref[0].astype(bf16), preferred_element_type=f32)  # (72,900)
    # Tap k's contribution to conv output (i, j) sits at wide index i*30 + j + d_k.
    wide1 = _tree_sum(v1[k * _C1:(k + 1) * _C1, d:d + _W1] for k, d in enumerate(_D1))
    wide1 = jnp.maximum(wide1 + b1_ref[...], 0.0)                   # (8, 838), ReLU

    # ---- maxpool1 2x2/2 on the wide frame: VPU pairwise maxes + one selection matmul ---
    m = jnp.maximum(wide1[:, :-1], wide1[:, 1:])                    # (8, 837)
    m = jnp.maximum(m[:, :-_H], m[:, _H:])                          # (8, 807): 2x2 max
    pool1 = jnp.dot(m.astype(bf16), s1_ref[...], preferred_element_type=f32)   # (8, 196)

    # ---- conv2: one MXU matmul over all 9 taps, tree-summed tap alignment --------------
    v2 = jnp.dot(w2_ref[...], pool1.astype(bf16), preferred_element_type=f32)  # (144, 196)
    wide2 = _tree_sum(v2[k * _C2:(k + 1) * _C2, d:d + _W2] for k, d in enumerate(_D2))
    wide2 = jnp.maximum(wide2 + b2_ref[...], 0.0)                   # (16, 166), ReLU

    # ---- maxpool2 ------------------------------------------------------------------------
    m = jnp.maximum(wide2[:, :-1], wide2[:, 1:])                    # (16, 165)
    m = jnp.maximum(m[:, :-_P1], m[:, _P1:])                        # (16, 151)
    pool2 = jnp.dot(m.astype(bf16), s2_ref[...], preferred_element_type=f32)   # (16, 36)

    # ---- fc1 + ReLU: 16 INDEPENDENT per-channel matmuls, tree-summed (pipelined MXU) ----
    p2 = pool2.astype(bf16)
    parts = [jnp.dot(p2[c:c + 1, :], wf1_ref[c], preferred_element_type=f32)
             for c in range(_C2)]
    h = jnp.maximum(_tree_sum(parts) + bf1_ref[...], 0.0)           # (1, 128)

    # ---- fc2 + ReLU, fc3 + ReLU (weights pre-repacked to (in, out), bf16) ---------------
    h = jnp.maximum(jnp.dot(h.astype(bf16), wf2_ref[...], preferred_element_type=f32)
                    + bf2_ref[...], 0.0)                            # (1, 64)
    z = jnp.maximum(jnp.dot(h.astype(bf16), wf3_ref[...], preferred_element_type=f32)
                    + bf3_ref[...], 0.0)                            # (1, out_pad)

    # ---- softmax over the real n_out logits; padded lanes get ~0 probability ------------
    col = lax.broadcasted_iota(jnp.int32, z.shape, 1)
    z = jnp.where(col < n_out, z, -1e30)
    z = z - jnp.max(z, axis=1, keepdims=True)
    e = jnp.exp(z)
    o_ref[0] = e / jnp.sum(e, axis=1, keepdims=True)                # lane-dense (1, out_pad)


# -----------------------------------------------------------------------------
# One-time weight repacking (call once, outside the per-step forward).
# -----------------------------------------------------------------------------
def prepare_params(params):
    f32, bf16 = jnp.float32, jnp.bfloat16
    c_in = params["conv1_w"].shape[1]
    n_out = params["fc3_w"].shape[0]
    out_pad = ((n_out + _LANE - 1) // _LANE) * _LANE

    w3p = jnp.zeros((out_pad, _F2), f32).at[:n_out].set(params["fc3_w"])
    b3p = jnp.zeros((1, out_pad), f32).at[0, :n_out].set(params["fc3_b"])

    return dict(
        # Conv weights stacked per tap: (kh, kw, out, in) -> (9*out, in), bf16 MXU operands.
        w1=params["conv1_w"].transpose(2, 3, 0, 1).reshape(9 * _C1, c_in).astype(bf16),
        b1=params["conv1_b"].reshape(_C1, 1).astype(f32),
        s1=_pool_selector(_H, _P1, _M1),                               # (807, 196) bf16
        w2=params["conv2_w"].transpose(2, 3, 0, 1).reshape(9 * _C2, _C1).astype(bf16),
        b2=params["conv2_b"].reshape(_C2, 1).astype(f32),
        s2=_pool_selector(_P1, _P2, _M2),                              # (151, 36) bf16
        wf1=params["fc1_w"].reshape(_F1, _C2, _P2 * _P2)
                           .transpose(1, 2, 0).astype(bf16),           # (16, 36, 128)
        bf1=params["fc1_b"].reshape(1, _F1).astype(f32),
        wf2=params["fc2_w"].T.astype(bf16),                            # (128, 64)
        bf2=params["fc2_b"].reshape(1, _F2).astype(f32),
        wf3=w3p.T.astype(bf16),                                        # (64, out_pad)
        bf3=b3p,                                                       # (1, out_pad) f32
    )


# -----------------------------------------------------------------------------
# Forward pass: one fused pallas_call, grid = (batch,) (parallel).
# -----------------------------------------------------------------------------
@functools.partial(jax.jit, static_argnames=("n_out",))
def nn_model_forward(x, prep, *, n_out):
    bsz, c_in, hh, ww = x.shape
    assert hh == _H and ww == _H, "model requires 30x30 inputs (fc1 expects 6*6*16 feats)"
    out_pad = prep["wf3"].shape[1]

    # Free reshape (merges trailing contiguous dims): the in-kernel tap slices do the
    # im2col, so no duplicated patches and no extra XLA op before the kernel.
    x_flat = x.reshape(bsz, c_in, _H * _H).astype(jnp.float32)

    vmem = pl.BlockSpec(memory_space=pltpu.MemorySpace.VMEM)
    out = pl.pallas_call(
        functools.partial(_fused_net_kernel, n_out=n_out),
        out_shape=jax.ShapeDtypeStruct((bsz, 1, out_pad), jnp.float32),
        grid=(bsz,),
        in_specs=[pl.BlockSpec((1, c_in, _H * _H), lambda b: (b, 0, 0))] + [vmem] * 12,
        out_specs=pl.BlockSpec((1, 1, out_pad), lambda b: (b, 0, 0)),
        compiler_params=pltpu.CompilerParams(dimension_semantics=("parallel",)),
    )(x_flat, prep["w1"], prep["b1"], prep["s1"],
      prep["w2"], prep["b2"], prep["s2"],
      prep["wf1"], prep["bf1"], prep["wf2"], prep["bf2"], prep["wf3"], prep["bf3"])

    return out[:, 0, :n_out]


# -----------------------------------------------------------------------------
# Pure-JAX reference (correctness check only; f32 / HIGHEST precision).
# -----------------------------------------------------------------------------
def nn_model_reference(x, params):
    hp = lax.Precision.HIGHEST

    def conv(x, w, b):
        y = lax.conv_general_dilated(
            x, w, window_strides=(1, 1), padding="VALID",
            dimension_numbers=("NCHW", "OIHW", "NCHW"), precision=hp)
        return y + b[None, :, None, None]

    def pool(x):
        return lax.reduce_window(x, -jnp.inf, lax.max, (1, 1, 2, 2), (1, 1, 2, 2), "VALID")

    h = pool(jax.nn.relu(conv(x, params["conv1_w"], params["conv1_b"])))
    h = pool(jax.nn.relu(conv(h, params["conv2_w"], params["conv2_b"])))
    flat = h.reshape(h.shape[0], -1)
    h = jax.nn.relu(jnp.dot(flat, params["fc1_w"].T, precision=hp) + params["fc1_b"])
    h = jax.nn.relu(jnp.dot(h, params["fc2_w"].T, precision=hp) + params["fc2_b"])
    h = jax.nn.relu(jnp.dot(h, params["fc3_w"].T, precision=hp) + params["fc3_b"])
    return jax.nn.softmax(h, axis=1)


if __name__ == "__main__":
    B, C_IN, S, OUT = 2, 3, 30, 10   # 30x30 input => 16 x 6 x 6 before fc1

    key = jax.random.PRNGKey(0)
    ks = jax.random.split(key, 11)
    params = {
        "conv1_w": jax.random.normal(ks[0], (8, C_IN, 3, 3), jnp.float32) * 0.1,
        "conv1_b": jax.random.normal(ks[1], (8,), jnp.float32) * 0.1,
        "conv2_w": jax.random.normal(ks[2], (16, 8, 3, 3), jnp.float32) * 0.1,
        "conv2_b": jax.random.normal(ks[3], (16,), jnp.float32) * 0.1,
        "fc1_w": jax.random.normal(ks[4], (128, 6 * 6 * 16), jnp.float32) * 0.05,
        "fc1_b": jax.random.normal(ks[5], (128,), jnp.float32) * 0.05,
        "fc2_w": jax.random.normal(ks[6], (64, 128), jnp.float32) * 0.05,
        "fc2_b": jax.random.normal(ks[7], (64,), jnp.float32) * 0.05,
        "fc3_w": jax.random.normal(ks[8], (OUT, 64), jnp.float32) * 0.05,
        "fc3_b": jax.random.normal(ks[9], (OUT,), jnp.float32) * 0.05,
    }
    x = jax.random.normal(ks[10], (B, C_IN, S, S), jnp.float32)

    prep = prepare_params(params)   # one-time weight repack, outside the forward
    out = jax.block_until_ready(nn_model_forward(x, prep, n_out=OUT))
    ref = jax.block_until_ready(nn_model_reference(x, params))

    assert out.shape == (B, OUT)
    assert bool(jnp.all(jnp.isfinite(out)))
    assert float(jnp.max(jnp.abs(jnp.sum(out, axis=1) - 1.0))) < 1e-4
    # Kernel runs bf16 MXU operands (f32 accumulate) vs an f32 HIGHEST-precision
    # reference; softmax probabilities agree to well under 1e-2 at these scales.
    assert float(jnp.max(jnp.abs(out - ref))) < 1e-2

    print("KERNEL_OK")
</pallas_src>

<mosaic_0001>
module attributes {stable_mosaic.version = 11 : i64} {
  func.func @_fused_net_kernel(%arg0: i32, %arg1: memref<1x3x900xf32, #tpu.memory_space<vmem>>, %arg2: memref<72x3xbf16, #tpu.memory_space<vmem>>, %arg3: memref<8x1xf32, #tpu.memory_space<vmem>>, %arg4: memref<807x196xbf16, #tpu.memory_space<vmem>>, %arg5: memref<144x8xbf16, #tpu.memory_space<vmem>>, %arg6: memref<16x1xf32, #tpu.memory_space<vmem>>, %arg7: memref<151x36xbf16, #tpu.memory_space<vmem>>, %arg8: memref<16x36x128xbf16, #tpu.memory_space<vmem>>, %arg9: memref<1x128xf32, #tpu.memory_space<vmem>>, %arg10: memref<128x64xbf16, #tpu.memory_space<vmem>>, %arg11: memref<1x64xf32, #tpu.memory_space<vmem>>, %arg12: memref<64x128xbf16, #tpu.memory_space<vmem>>, %arg13: memref<1x128xf32, #tpu.memory_space<vmem>>, %arg14: memref<1x1x128xf32, #tpu.memory_space<vmem>>) attributes {dimension_semantics = [#tpu.dimension_semantics<parallel>], iteration_bounds = array<i64: 2>, scalar_prefetch = 0 : i64, scratch_operands = 0 : i64, tpu.core_type = #tpu.core_type<tc>, window_params = [{transform_indices = @transform_0, window_bounds = array<i64: 1, 3, 900>}, {pipeline_mode = #tpu.pipeline_mode<synchronous>, transform_indices = @transform_1, window_bounds = array<i64: 72, 3>}, {pipeline_mode = #tpu.pipeline_mode<synchronous>, transform_indices = @transform_2, window_bounds = array<i64: 8, 1>}, {pipeline_mode = #tpu.pipeline_mode<synchronous>, transform_indices = @transform_3, window_bounds = array<i64: 807, 196>}, {pipeline_mode = #tpu.pipeline_mode<synchronous>, transform_indices = @transform_4, window_bounds = array<i64: 144, 8>}, {pipeline_mode = #tpu.pipeline_mode<synchronous>, transform_indices = @transform_5, window_bounds = array<i64: 16, 1>}, {pipeline_mode = #tpu.pipeline_mode<synchronous>, transform_indices = @transform_6, window_bounds = array<i64: 151, 36>}, {pipeline_mode = #tpu.pipeline_mode<synchronous>, transform_indices = @transform_7, window_bounds = array<i64: 16, 36, 128>}, {pipeline_mode = #tpu.pipeline_mode<synchronous>, transform_indices = @transform_8, window_bounds = array<i64: 1, 128>}, {pipeline_mode = #tpu.pipeline_mode<synchronous>, transform_indices = @transform_9, window_bounds = array<i64: 128, 64>}, {pipeline_mode = #tpu.pipeline_mode<synchronous>, transform_indices = @transform_10, window_bounds = array<i64: 1, 64>}, {pipeline_mode = #tpu.pipeline_mode<synchronous>, transform_indices = @transform_11, window_bounds = array<i64: 64, 128>}, {pipeline_mode = #tpu.pipeline_mode<synchronous>, transform_indices = @transform_12, window_bounds = array<i64: 1, 128>}, {transform_indices = @transform_13, window_bounds = array<i64: 1, 1, 128>}]} {
    %c0 = arith.constant 0 : index
    %c0_0 = arith.constant 0 : index
    %0 = vector.load %arg2[%c0, %c0_0] : memref<72x3xbf16, #tpu.memory_space<vmem>>, vector<72x3xbf16>
    %c0_1 = arith.constant 0 : index
    %c0_2 = arith.constant 0 : index
    %c0_3 = arith.constant 0 : index
    %1 = vector.load %arg1[%c0_1, %c0_2, %c0_3] : memref<1x3x900xf32, #tpu.memory_space<vmem>>, vector<1x3x900xf32>
    %2 = vector.shape_cast %1 : vector<1x3x900xf32> to vector<3x900xf32>
    %3 = arith.truncf %2 : vector<3x900xf32> to vector<3x900xbf16>
    %cst = arith.constant dense<0.000000e+00> : vector<72x900xf32>
    %4 = tpu.matmul %0, %3, %cst {dimension_numbers = #tpu.dot_dimension_numbers<[1], [0], [0], [1], [0, 0, 1, 1], [], []>} : vector<72x3xbf16>, vector<3x900xbf16>, vector<72x900xf32> -> vector<72x900xf32>
    %5 = vector.extract_strided_slice %4 {offsets = [0, 0], sizes = [8, 838], strides = [1, 1]} : vector<72x900xf32> to vector<8x838xf32>
    %6 = vector.extract_strided_slice %4 {offsets = [8, 1], sizes = [8, 838], strides = [1, 1]} : vector<72x900xf32> to vector<8x838xf32>
    %7 = vector.extract_strided_slice %4 {offsets = [16, 2], sizes = [8, 838], strides = [1, 1]} : vector<72x900xf32> to vector<8x838xf32>
    %8 = vector.extract_strided_slice %4 {offsets = [24, 30], sizes = [8, 838], strides = [1, 1]} : vector<72x900xf32> to vector<8x838xf32>
    %9 = vector.extract_strided_slice %4 {offsets = [32, 31], sizes = [8, 838], strides = [1, 1]} : vector<72x900xf32> to vector<8x838xf32>
    %10 = vector.extract_strided_slice %4 {offsets = [40, 32], sizes = [8, 838], strides = [1, 1]} : vector<72x900xf32> to vector<8x838xf32>
    %11 = vector.extract_strided_slice %4 {offsets = [48, 60], sizes = [8, 838], strides = [1, 1]} : vector<72x900xf32> to vector<8x838xf32>
    %12 = vector.extract_strided_slice %4 {offsets = [56, 61], sizes = [8, 838], strides = [1, 1]} : vector<72x900xf32> to vector<8x838xf32>
    %13 = vector.extract_strided_slice %4 {offsets = [64, 62], sizes = [8, 838], strides = [1, 1]} : vector<72x900xf32> to vector<8x838xf32>
    %14 = arith.addf %5, %6 : vector<8x838xf32>
    %15 = arith.addf %7, %8 : vector<8x838xf32>
    %16 = arith.addf %9, %10 : vector<8x838xf32>
    %17 = arith.addf %11, %12 : vector<8x838xf32>
    %18 = arith.addf %14, %15 : vector<8x838xf32>
    %19 = arith.addf %16, %17 : vector<8x838xf32>
    %20 = arith.addf %18, %19 : vector<8x838xf32>
    %21 = arith.addf %20, %13 : vector<8x838xf32>
    %c0_4 = arith.constant 0 : index
    %c0_5 = arith.constant 0 : index
    %22 = vector.load %arg3[%c0_4, %c0_5] : memref<8x1xf32, #tpu.memory_space<vmem>>, vector<8x1xf32>
    %23 = vector.broadcast %22 : vector<8x1xf32> to vector<8x838xf32>
    %24 = arith.addf %21, %23 : vector<8x838xf32>
    %cst_6 = arith.constant 0.000000e+00 : f32
    %25 = vector.broadcast %cst_6 : f32 to vector<8x838xf32>
    %26 = arith.maximumf %24, %25 : vector<8x838xf32>
    %27 = vector.extract_strided_slice %26 {offsets = [0, 0], sizes = [8, 837], strides = [1, 1]} : vector<8x838xf32> to vector<8x837xf32>
    %28 = vector.extract_strided_slice %26 {offsets = [0, 1], sizes = [8, 837], strides = [1, 1]} : vector<8x838xf32> to vector<8x837xf32>
    %29 = arith.maximumf %27, %28 : vector<8x837xf32>
    %30 = vector.extract_strided_slice %29 {offsets = [0, 0], sizes = [8, 807], strides = [1, 1]} : vector<8x837xf32> to vector<8x807xf32>
    %31 = vector.extract_strided_slice %29 {offsets = [0, 30], sizes = [8, 807], strides = [1, 1]} : vector<8x837xf32> to vector<8x807xf32>
    %32 = arith.maximumf %30, %31 : vector<8x807xf32>
    %33 = arith.truncf %32 : vector<8x807xf32> to vector<8x807xbf16>
    %c0_7 = arith.constant 0 : index
    %c0_8 = arith.constant 0 : index
    %34 = vector.load %arg4[%c0_7, %c0_8] : memref<807x196xbf16, #tpu.memory_space<vmem>>, vector<807x196xbf16>
    %cst_9 = arith.constant dense<0.000000e+00> : vector<8x196xf32>
    %35 = tpu.matmul %33, %34, %cst_9 {dimension_numbers = #tpu.dot_dimension_numbers<[1], [0], [0], [1], [0, 0, 1, 1], [], []>} : vector<8x807xbf16>, vector<807x196xbf16>, vector<8x196xf32> -> vector<8x196xf32>
    %c0_10 = arith.constant 0 : index
    %c0_11 = arith.constant 0 : index
    %36 = vector.load %arg5[%c0_10, %c0_11] : memref<144x8xbf16, #tpu.memory_space<vmem>>, vector<144x8xbf16>
    %37 = arith.truncf %35 : vector<8x196xf32> to vector<8x196xbf16>
    %cst_12 = arith.constant dense<0.000000e+00> : vector<144x196xf32>
    %38 = tpu.matmul %36, %37, %cst_12 {dimension_numbers = #tpu.dot_dimension_numbers<[1], [0], [0], [1], [0, 0, 1, 1], [], []>} : vector<144x8xbf16>, vector<8x196xbf16>, vector<144x196xf32> -> vector<144x196xf32>
    %39 = vector.extract_strided_slice %38 {offsets = [0, 0], sizes = [16, 166], strides = [1, 1]} : vector<144x196xf32> to vector<16x166xf32>
    %40 = vector.extract_strided_slice %38 {offsets = [16, 1], sizes = [16, 166], strides = [1, 1]} : vector<144x196xf32> to vector<16x166xf32>
    %41 = vector.extract_strided_slice %38 {offsets = [32, 2], sizes = [16, 166], strides = [1, 1]} : vector<144x196xf32> to vector<16x166xf32>
    %42 = vector.extract_strided_slice %38 {offsets = [48, 14], sizes = [16, 166], strides = [1, 1]} : vector<144x196xf32> to vector<16x166xf32>
    %43 = vector.extract_strided_slice %38 {offsets = [64, 15], sizes = [16, 166], strides = [1, 1]} : vector<144x196xf32> to vector<16x166xf32>
    %44 = vector.extract_strided_slice %38 {offsets = [80, 16], sizes = [16, 166], strides = [1, 1]} : vector<144x196xf32> to vector<16x166xf32>
    %45 = vector.extract_strided_slice %38 {offsets = [96, 28], sizes = [16, 166], strides = [1, 1]} : vector<144x196xf32> to vector<16x166xf32>
    %46 = vector.extract_strided_slice %38 {offsets = [112, 29], sizes = [16, 166], strides = [1, 1]} : vector<144x196xf32> to vector<16x166xf32>
    %47 = vector.extract_strided_slice %38 {offsets = [128, 30], sizes = [16, 166], strides = [1, 1]} : vector<144x196xf32> to vector<16x166xf32>
    %48 = arith.addf %39, %40 : vector<16x166xf32>
    %49 = arith.addf %41, %42 : vector<16x166xf32>
    %50 = arith.addf %43, %44 : vector<16x166xf32>
    %51 = arith.addf %45, %46 : vector<16x166xf32>
    %52 = arith.addf %48, %49 : vector<16x166xf32>
    %53 = arith.addf %50, %51 : vector<16x166xf32>
    %54 = arith.addf %52, %53 : vector<16x166xf32>
    %55 = arith.addf %54, %47 : vector<16x166xf32>
    %c0_13 = arith.constant 0 : index
    %c0_14 = arith.constant 0 : index
    %56 = vector.load %arg6[%c0_13, %c0_14] : memref<16x1xf32, #tpu.memory_space<vmem>>, vector<16x1xf32>
    %57 = vector.broadcast %56 : vector<16x1xf32> to vector<16x166xf32>
    %58 = arith.addf %55, %57 : vector<16x166xf32>
    %cst_15 = arith.constant 0.000000e+00 : f32
    %59 = vector.broadcast %cst_15 : f32 to vector<16x166xf32>
    %60 = arith.maximumf %58, %59 : vector<16x166xf32>
    %61 = vector.extract_strided_slice %60 {offsets = [0, 0], sizes = [16, 165], strides = [1, 1]} : vector<16x166xf32> to vector<16x165xf32>
    %62 = vector.extract_strided_slice %60 {offsets = [0, 1], sizes = [16, 165], strides = [1, 1]} : vector<16x166xf32> to vector<16x165xf32>
    %63 = arith.maximumf %61, %62 : vector<16x165xf32>
    %64 = vector.extract_strided_slice %63 {offsets = [0, 0], sizes = [16, 151], strides = [1, 1]} : vector<16x165xf32> to vector<16x151xf32>
    %65 = vector.extract_strided_slice %63 {offsets = [0, 14], sizes = [16, 151], strides = [1, 1]} : vector<16x165xf32> to vector<16x151xf32>
    %66 = arith.maximumf %64, %65 : vector<16x151xf32>
    %67 = arith.truncf %66 : vector<16x151xf32> to vector<16x151xbf16>
    %c0_16 = arith.constant 0 : index
    %c0_17 = arith.constant 0 : index
    %68 = vector.load %arg7[%c0_16, %c0_17] : memref<151x36xbf16, #tpu.memory_space<vmem>>, vector<151x36xbf16>
    %cst_18 = arith.constant dense<0.000000e+00> : vector<16x36xf32>
    %69 = tpu.matmul %67, %68, %cst_18 {dimension_numbers = #tpu.dot_dimension_numbers<[1], [0], [0], [1], [0, 0, 1, 1], [], []>} : vector<16x151xbf16>, vector<151x36xbf16>, vector<16x36xf32> -> vector<16x36xf32>
    %70 = arith.truncf %69 : vector<16x36xf32> to vector<16x36xbf16>
    %71 = vector.extract_strided_slice %70 {offsets = [0, 0], sizes = [1, 36], strides = [1, 1]} : vector<16x36xbf16> to vector<1x36xbf16>
    %c0_19 = arith.constant 0 : index
    %c0_20 = arith.constant 0 : index
    %c0_21 = arith.constant 0 : index
    %72 = vector.load %arg8[%c0_19, %c0_20, %c0_21] : memref<16x36x128xbf16, #tpu.memory_space<vmem>>, vector<1x36x128xbf16>
    %73 = vector.shape_cast %72 : vector<1x36x128xbf16> to vector<36x128xbf16>
    %cst_22 = arith.constant dense<0.000000e+00> : vector<1x128xf32>
    %74 = tpu.matmul %71, %73, %cst_22 {dimension_numbers = #tpu.dot_dimension_numbers<[1], [0], [0], [1], [0, 0, 1, 1], [], []>} : vector<1x36xbf16>, vector<36x128xbf16>, vector<1x128xf32> -> vector<1x128xf32>
    %75 = vector.extract_strided_slice %70 {offsets = [1, 0], sizes = [1, 36], strides = [1, 1]} : vector<16x36xbf16> to vector<1x36xbf16>
    %c1 = arith.constant 1 : index
    %c0_23 = arith.constant 0 : index
    %c0_24 = arith.constant 0 : index
    %76 = vector.load %arg8[%c1, %c0_23, %c0_24] : memref<16x36x128xbf16, #tpu.memory_space<vmem>>, vector<1x36x128xbf16>
    %77 = vector.shape_cast %76 : vector<1x36x128xbf16> to vector<36x128xbf16>
    %cst_25 = arith.constant dense<0.000000e+00> : vector<1x128xf32>
    %78 = tpu.matmul %75, %77, %cst_25 {dimension_numbers = #tpu.dot_dimension_numbers<[1], [0], [0], [1], [0, 0, 1, 1], [], []>} : vector<1x36xbf16>, vector<36x128xbf16>, vector<1x128xf32> -> vector<1x128xf32>
    %79 = vector.extract_strided_slice %70 {offsets = [2, 0], sizes = [1, 36], strides = [1, 1]} : vector<16x36xbf16> to vector<1x36xbf16>
    %c2 = arith.constant 2 : index
    %c0_26 = arith.constant 0 : index
    %c0_27 = arith.constant 0 : index
    %80 = vector.load %arg8[%c2, %c0_26, %c0_27] : memref<16x36x128xbf16, #tpu.memory_space<vmem>>, vector<1x36x128xbf16>
    %81 = vector.shape_cast %80 : vector<1x36x128xbf16> to vector<36x128xbf16>
    %cst_28 = arith.constant dense<0.000000e+00> : vector<1x128xf32>
    %82 = tpu.matmul %79, %81, %cst_28 {dimension_numbers = #tpu.dot_dimension_numbers<[1], [0], [0], [1], [0, 0, 1, 1], [], []>} : vector<1x36xbf16>, vector<36x128xbf16>, vector<1x128xf32> -> vector<1x128xf32>
    %83 = vector.extract_strided_slice %70 {offsets = [3, 0], sizes = [1, 36], strides = [1, 1]} : vector<16x36xbf16> to vector<1x36xbf16>
    %c3 = arith.constant 3 : index
    %c0_29 = arith.constant 0 : index
    %c0_30 = arith.constant 0 : index
    %84 = vector.load %arg8[%c3, %c0_29, %c0_30] : memref<16x36x128xbf16, #tpu.memory_space<vmem>>, vector<1x36x128xbf16>
    %85 = vector.shape_cast %84 : vector<1x36x128xbf16> to vector<36x128xbf16>
    %cst_31 = arith.constant dense<0.000000e+00> : vector<1x128xf32>
    %86 = tpu.matmul %83, %85, %cst_31 {dimension_numbers = #tpu.dot_dimension_numbers<[1], [0], [0], [1], [0, 0, 1, 1], [], []>} : vector<1x36xbf16>, vector<36x128xbf16>, vector<1x128xf32> -> vector<1x128xf32>
    %87 = vector.extract_strided_slice %70 {offsets = [4, 0], sizes = [1, 36], strides = [1, 1]} : vector<16x36xbf16> to vector<1x36xbf16>
    %c4 = arith.constant 4 : index
    %c0_32 = arith.constant 0 : index
    %c0_33 = arith.constant 0 : index
    %88 = vector.load %arg8[%c4, %c0_32, %c0_33] : memref<16x36x128xbf16, #tpu.memory_space<vmem>>, vector<1x36x128xbf16>
    %89 = vector.shape_cast %88 : vector<1x36x128xbf16> to vector<36x128xbf16>
    %cst_34 = arith.constant dense<0.000000e+00> : vector<1x128xf32>
    %90 = tpu.matmul %87, %89, %cst_34 {dimension_numbers = #tpu.dot_dimension_numbers<[1], [0], [0], [1], [0, 0, 1, 1], [], []>} : vector<1x36xbf16>, vector<36x128xbf16>, vector<1x128xf32> -> vector<1x128xf32>
    %91 = vector.extract_strided_slice %70 {offsets = [5, 0], sizes = [1, 36], strides = [1, 1]} : vector<16x36xbf16> to vector<1x36xbf16>
    %c5 = arith.constant 5 : index
    %c0_35 = arith.constant 0 : index
    %c0_36 = arith.constant 0 : index
    %92 = vector.load %arg8[%c5, %c0_35, %c0_36] : memref<16x36x128xbf16, #tpu.memory_space<vmem>>, vector<1x36x128xbf16>
    %93 = vector.shape_cast %92 : vector<1x36x128xbf16> to vector<36x128xbf16>
    %cst_37 = arith.constant dense<0.000000e+00> : vector<1x128xf32>
    %94 = tpu.matmul %91, %93, %cst_37 {dimension_numbers = #tpu.dot_dimension_numbers<[1], [0], [0], [1], [0, 0, 1, 1], [], []>} : vector<1x36xbf16>, vector<36x128xbf16>, vector<1x128xf32> -> vector<1x128xf32>
    %95 = vector.extract_strided_slice %70 {offsets = [6, 0], sizes = [1, 36], strides = [1, 1]} : vector<16x36xbf16> to vector<1x36xbf16>
    %c6 = arith.constant 6 : index
    %c0_38 = arith.constant 0 : index
    %c0_39 = arith.constant 0 : index
    %96 = vector.load %arg8[%c6, %c0_38, %c0_39] : memref<16x36x128xbf16, #tpu.memory_space<vmem>>, vector<1x36x128xbf16>
    %97 = vector.shape_cast %96 : vector<1x36x128xbf16> to vector<36x128xbf16>
    %cst_40 = arith.constant dense<0.000000e+00> : vector<1x128xf32>
    %98 = tpu.matmul %95, %97, %cst_40 {dimension_numbers = #tpu.dot_dimension_numbers<[1], [0], [0], [1], [0, 0, 1, 1], [], []>} : vector<1x36xbf16>, vector<36x128xbf16>, vector<1x128xf32> -> vector<1x128xf32>
    %99 = vector.extract_strided_slice %70 {offsets = [7, 0], sizes = [1, 36], strides = [1, 1]} : vector<16x36xbf16> to vector<1x36xbf16>
    %c7 = arith.constant 7 : index
    %c0_41 = arith.constant 0 : index
    %c0_42 = arith.constant 0 : index
    %100 = vector.load %arg8[%c7, %c0_41, %c0_42] : memref<16x36x128xbf16, #tpu.memory_space<vmem>>, vector<1x36x128xbf16>
    %101 = vector.shape_cast %100 : vector<1x36x128xbf16> to vector<36x128xbf16>
    %cst_43 = arith.constant dense<0.000000e+00> : vector<1x128xf32>
    %102 = tpu.matmul %99, %101, %cst_43 {dimension_numbers = #tpu.dot_dimension_numbers<[1], [0], [0], [1], [0, 0, 1, 1], [], []>} : vector<1x36xbf16>, vector<36x128xbf16>, vector<1x128xf32> -> vector<1x128xf32>
    %103 = vector.extract_strided_slice %70 {offsets = [8, 0], sizes = [1, 36], strides = [1, 1]} : vector<16x36xbf16> to vector<1x36xbf16>
    %c8 = arith.constant 8 : index
    %c0_44 = arith.constant 0 : index
    %c0_45 = arith.constant 0 : index
    %104 = vector.load %arg8[%c8, %c0_44, %c0_45] : memref<16x36x128xbf16, #tpu.memory_space<vmem>>, vector<1x36x128xbf16>
    %105 = vector.shape_cast %104 : vector<1x36x128xbf16> to vector<36x128xbf16>
    %cst_46 = arith.constant dense<0.000000e+00> : vector<1x128xf32>
    %106 = tpu.matmul %103, %105, %cst_46 {dimension_numbers = #tpu.dot_dimension_numbers<[1], [0], [0], [1], [0, 0, 1, 1], [], []>} : vector<1x36xbf16>, vector<36x128xbf16>, vector<1x128xf32> -> vector<1x128xf32>
    %107 = vector.extract_strided_slice %70 {offsets = [9, 0], sizes = [1, 36], strides = [1, 1]} : vector<16x36xbf16> to vector<1x36xbf16>
    %c9 = arith.constant 9 : index
    %c0_47 = arith.constant 0 : index
    %c0_48 = arith.constant 0 : index
    %108 = vector.load %arg8[%c9, %c0_47, %c0_48] : memref<16x36x128xbf16, #tpu.memory_space<vmem>>, vector<1x36x128xbf16>
    %109 = vector.shape_cast %108 : vector<1x36x128xbf16> to vector<36x128xbf16>
    %cst_49 = arith.constant dense<0.000000e+00> : vector<1x128xf32>
    %110 = tpu.matmul %107, %109, %cst_49 {dimension_numbers = #tpu.dot_dimension_numbers<[1], [0], [0], [1], [0, 0, 1, 1], [], []>} : vector<1x36xbf16>, vector<36x128xbf16>, vector<1x128xf32> -> vector<1x128xf32>
    %111 = vector.extract_strided_slice %70 {offsets = [10, 0], sizes = [1, 36], strides = [1, 1]} : vector<16x36xbf16> to vector<1x36xbf16>
    %c10 = arith.constant 10 : index
    %c0_50 = arith.constant 0 : index
    %c0_51 = arith.constant 0 : index
    %112 = vector.load %arg8[%c10, %c0_50, %c0_51] : memref<16x36x128xbf16, #tpu.memory_space<vmem>>, vector<1x36x128xbf16>
    %113 = vector.shape_cast %112 : vector<1x36x128xbf16> to vector<36x128xbf16>
    %cst_52 = arith.constant dense<0.000000e+00> : vector<1x128xf32>
    %114 = tpu.matmul %111, %113, %cst_52 {dimension_numbers = #tpu.dot_dimension_numbers<[1], [0], [0], [1], [0, 0, 1, 1], [], []>} : vector<1x36xbf16>, vector<36x128xbf16>, vector<1x128xf32> -> vector<1x128xf32>
    %115 = vector.extract_strided_slice %70 {offsets = [11, 0], sizes = [1, 36], strides = [1, 1]} : vector<16x36xbf16> to vector<1x36xbf16>
    %c11 = arith.constant 11 : index
    %c0_53 = arith.constant 0 : index
    %c0_54 = arith.constant 0 : index
    %116 = vector.load %arg8[%c11, %c0_53, %c0_54] : memref<16x36x128xbf16, #tpu.memory_space<vmem>>, vector<1x36x128xbf16>
    %117 = vector.shape_cast %116 : vector<1x36x128xbf16> to vector<36x128xbf16>
    %cst_55 = arith.constant dense<0.000000e+00> : vector<1x128xf32>
    %118 = tpu.matmul %115, %117, %cst_55 {dimension_numbers = #tpu.dot_dimension_numbers<[1], [0], [0], [1], [0, 0, 1, 1], [], []>} : vector<1x36xbf16>, vector<36x128xbf16>, vector<1x128xf32> -> vector<1x128xf32>
    %119 = vector.extract_strided_slice %70 {offsets = [12, 0], sizes = [1, 36], strides = [1, 1]} : vector<16x36xbf16> to vector<1x36xbf16>
    %c12 = arith.constant 12 : index
    %c0_56 = arith.constant 0 : index
    %c0_57 = arith.constant 0 : index
    %120 = vector.load %arg8[%c12, %c0_56, %c0_57] : memref<16x36x128xbf16, #tpu.memory_space<vmem>>, vector<1x36x128xbf16>
    %121 = vector.shape_cast %120 : vector<1x36x128xbf16> to vector<36x128xbf16>
    %cst_58 = arith.constant dense<0.000000e+00> : vector<1x128xf32>
    %122 = tpu.matmul %119, %121, %cst_58 {dimension_numbers = #tpu.dot_dimension_numbers<[1], [0], [0], [1], [0, 0, 1, 1], [], []>} : vector<1x36xbf16>, vector<36x128xbf16>, vector<1x128xf32> -> vector<1x128xf32>
    %123 = vector.extract_strided_slice %70 {offsets = [13, 0], sizes = [1, 36], strides = [1, 1]} : vector<16x36xbf16> to vector<1x36xbf16>
    %c13 = arith.constant 13 : index
    %c0_59 = arith.constant 0 : index
    %c0_60 = arith.constant 0 : index
    %124 = vector.load %arg8[%c13, %c0_59, %c0_60] : memref<16x36x128xbf16, #tpu.memory_space<vmem>>, vector<1x36x128xbf16>
    %125 = vector.shape_cast %124 : vector<1x36x128xbf16> to vector<36x128xbf16>
    %cst_61 = arith.constant dense<0.000000e+00> : vector<1x128xf32>
    %126 = tpu.matmul %123, %125, %cst_61 {dimension_numbers = #tpu.dot_dimension_numbers<[1], [0], [0], [1], [0, 0, 1, 1], [], []>} : vector<1x36xbf16>, vector<36x128xbf16>, vector<1x128xf32> -> vector<1x128xf32>
    %127 = vector.extract_strided_slice %70 {offsets = [14, 0], sizes = [1, 36], strides = [1, 1]} : vector<16x36xbf16> to vector<1x36xbf16>
    %c14 = arith.constant 14 : index
    %c0_62 = arith.constant 0 : index
    %c0_63 = arith.constant 0 : index
    %128 = vector.load %arg8[%c14, %c0_62, %c0_63] : memref<16x36x128xbf16, #tpu.memory_space<vmem>>, vector<1x36x128xbf16>
    %129 = vector.shape_cast %128 : vector<1x36x128xbf16> to vector<36x128xbf16>
    %cst_64 = arith.constant dense<0.000000e+00> : vector<1x128xf32>
    %130 = tpu.matmul %127, %129, %cst_64 {dimension_numbers = #tpu.dot_dimension_numbers<[1], [0], [0], [1], [0, 0, 1, 1], [], []>} : vector<1x36xbf16>, vector<36x128xbf16>, vector<1x128xf32> -> vector<1x128xf32>
    %131 = vector.extract_strided_slice %70 {offsets = [15, 0], sizes = [1, 36], strides = [1, 1]} : vector<16x36xbf16> to vector<1x36xbf16>
    %c15 = arith.constant 15 : index
    %c0_65 = arith.constant 0 : index
    %c0_66 = arith.constant 0 : index
    %132 = vector.load %arg8[%c15, %c0_65, %c0_66] : memref<16x36x128xbf16, #tpu.memory_space<vmem>>, vector<1x36x128xbf16>
    %133 = vector.shape_cast %132 : vector<1x36x128xbf16> to vector<36x128xbf16>
    %cst_67 = arith.constant dense<0.000000e+00> : vector<1x128xf32>
    %134 = tpu.matmul %131, %133, %cst_67 {dimension_numbers = #tpu.dot_dimension_numbers<[1], [0], [0], [1], [0, 0, 1, 1], [], []>} : vector<1x36xbf16>, vector<36x128xbf16>, vector<1x128xf32> -> vector<1x128xf32>
    %135 = arith.addf %74, %78 : vector<1x128xf32>
    %136 = arith.addf %82, %86 : vector<1x128xf32>
    %137 = arith.addf %90, %94 : vector<1x128xf32>
    %138 = arith.addf %98, %102 : vector<1x128xf32>
    %139 = arith.addf %106, %110 : vector<1x128xf32>
    %140 = arith.addf %114, %118 : vector<1x128xf32>
    %141 = arith.addf %122, %126 : vector<1x128xf32>
    %142 = arith.addf %130, %134 : vector<1x128xf32>
    %143 = arith.addf %135, %136 : vector<1x128xf32>
    %144 = arith.addf %137, %138 : vector<1x128xf32>
    %145 = arith.addf %139, %140 : vector<1x128xf32>
    %146 = arith.addf %141, %142 : vector<1x128xf32>
    %147 = arith.addf %143, %144 : vector<1x128xf32>
    %148 = arith.addf %145, %146 : vector<1x128xf32>
    %149 = arith.addf %147, %148 : vector<1x128xf32>
    %c0_68 = arith.constant 0 : index
    %c0_69 = arith.constant 0 : index
    %150 = vector.load %arg9[%c0_68, %c0_69] : memref<1x128xf32, #tpu.memory_space<vmem>>, vector<1x128xf32>
    %151 = arith.addf %149, %150 : vector<1x128xf32>
    %cst_70 = arith.constant 0.000000e+00 : f32
    %152 = vector.broadcast %cst_70 : f32 to vector<1x128xf32>
    %153 = arith.maximumf %151, %152 : vector<1x128xf32>
    %154 = arith.truncf %153 : vector<1x128xf32> to vector<1x128xbf16>
    %c0_71 = arith.constant 0 : index
    %c0_72 = arith.constant 0 : index
    %155 = vector.load %arg10[%c0_71, %c0_72] : memref<128x64xbf16, #tpu.memory_space<vmem>>, vector<128x64xbf16>
    %cst_73 = arith.constant dense<0.000000e+00> : vector<1x64xf32>
    %156 = tpu.matmul %154, %155, %cst_73 {dimension_numbers = #tpu.dot_dimension_numbers<[1], [0], [0], [1], [0, 0, 1, 1], [], []>} : vector<1x128xbf16>, vector<128x64xbf16>, vector<1x64xf32> -> vector<1x64xf32>
    %c0_74 = arith.constant 0 : index
    %c0_75 = arith.constant 0 : index
    %157 = vector.load %arg11[%c0_74, %c0_75] : memref<1x64xf32, #tpu.memory_space<vmem>>, vector<1x64xf32>
    %158 = arith.addf %156, %157 : vector<1x64xf32>
    %cst_76 = arith.constant 0.000000e+00 : f32
    %159 = vector.broadcast %cst_76 : f32 to vector<1x64xf32>
    %160 = arith.maximumf %158, %159 : vector<1x64xf32>
    %161 = arith.truncf %160 : vector<1x64xf32> to vector<1x64xbf16>
    %c0_77 = arith.constant 0 : index
    %c0_78 = arith.constant 0 : index
    %162 = vector.load %arg12[%c0_77, %c0_78] : memref<64x128xbf16, #tpu.memory_space<vmem>>, vector<64x128xbf16>
    %cst_79 = arith.constant dense<0.000000e+00> : vector<1x128xf32>
    %163 = tpu.matmul %161, %162, %cst_79 {dimension_numbers = #tpu.dot_dimension_numbers<[1], [0], [0], [1], [0, 0, 1, 1], [], []>} : vector<1x64xbf16>, vector<64x128xbf16>, vector<1x128xf32> -> vector<1x128xf32>
    %c0_80 = arith.constant 0 : index
    %c0_81 = arith.constant 0 : index
    %164 = vector.load %arg13[%c0_80, %c0_81] : memref<1x128xf32, #tpu.memory_space<vmem>>, vector<1x128xf32>
    %165 = arith.addf %163, %164 : vector<1x128xf32>
    %cst_82 = arith.constant 0.000000e+00 : f32
    %166 = vector.broadcast %cst_82 : f32 to vector<1x128xf32>
    %167 = arith.maximumf %165, %166 : vector<1x128xf32>
    %168 = tpu.iota {dimensions = array<i32: 1>} : vector<1x128xi32>
    %c10_i32 = arith.constant 10 : i32
    %169 = vector.broadcast %c10_i32 : i32 to vector<1x128xi32>
    %170 = arith.cmpi slt, %168, %169 : vector<1x128xi32>
    %cst_83 = arith.constant -1.000000e+30 : f32
    %171 = vector.broadcast %cst_83 : f32 to vector<1x128xf32>
    %172 = arith.select %170, %167, %171 : vector<1x128xi1>, vector<1x128xf32>
    %cst_84 = arith.constant dense<0xFF800000> : vector<1xf32>
    %173 = vector.multi_reduction <maximumf>, %172, %cst_84 [1] : vector<1x128xf32> to vector<1xf32>
    %174 = vector.shape_cast %173 : vector<1xf32> to vector<1x1xf32>
    %175 = vector.broadcast %174 : vector<1x1xf32> to vector<1x128xf32>
    %176 = arith.subf %172, %175 : vector<1x128xf32>
    %177 = math.exp %176 : vector<1x128xf32>
    %cst_85 = arith.constant dense<0.000000e+00> : vector<1xf32>
    %178 = vector.multi_reduction <add>, %177, %cst_85 [1] : vector<1x128xf32> to vector<1xf32>
    %179 = vector.shape_cast %178 : vector<1xf32> to vector<1x1xf32>
    %180 = vector.broadcast %179 : vector<1x1xf32> to vector<1x128xf32>
    %181 = arith.divf %177, %180 : vector<1x128xf32>
    %c0_86 = arith.constant 0 : index
    %c0_87 = arith.constant 0 : index
    %c0_88 = arith.constant 0 : index
    %182 = vector.load %arg14[%c0_86, %c0_87, %c0_88] : memref<1x1x128xf32, #tpu.memory_space<vmem>>, vector<1x1x128xf32>
    %183 = vector.shape_cast %182 : vector<1x1x128xf32> to vector<1x128xf32>
    %184 = vector.shape_cast %181 : vector<1x128xf32> to vector<1x1x128xf32>
    tpu.vector_store %arg14[%c0_86, %c0_87, %c0_88], %184 {strides = array<i32>} : memref<1x1x128xf32, #tpu.memory_space<vmem>>, vector<1x1x128xf32>,
    return
  }
  func.func @transform_0(%arg0: i32) -> (i32, i32, i32) {
    %c0_i32 = arith.constant 0 : i32
    %c0_i32_0 = arith.constant 0 : i32
    %c0_i32_1 = arith.constant 0 : i32
    return %arg0, %c0_i32, %c0_i32_0 : i32, i32, i32
  }
  func.func @transform_1(%arg0: i32) -> (i32, i32) {
    %c0_i32 = arith.constant 0 : i32
    %c0_i32_0 = arith.constant 0 : i32
    %c0_i32_1 = arith.constant 0 : i32
    return %c0_i32, %c0_i32_0 : i32, i32
  }
  func.func @transform_2(%arg0: i32) -> (i32, i32) {
    %c0_i32 = arith.constant 0 : i32
    %c0_i32_0 = arith.constant 0 : i32
    %c0_i32_1 = arith.constant 0 : i32
    return %c0_i32, %c0_i32_0 : i32, i32
  }
  func.func @transform_3(%arg0: i32) -> (i32, i32) {
    %c0_i32 = arith.constant 0 : i32
    %c0_i32_0 = arith.constant 0 : i32
    %c0_i32_1 = arith.constant 0 : i32
    return %c0_i32, %c0_i32_0 : i32, i32
  }
  func.func @transform_4(%arg0: i32) -> (i32, i32) {
    %c0_i32 = arith.constant 0 : i32
    %c0_i32_0 = arith.constant 0 : i32
    %c0_i32_1 = arith.constant 0 : i32
    return %c0_i32, %c0_i32_0 : i32, i32
  }
  func.func @transform_5(%arg0: i32) -> (i32, i32) {
    %c0_i32 = arith.constant 0 : i32
    %c0_i32_0 = arith.constant 0 : i32
    %c0_i32_1 = arith.constant 0 : i32
    return %c0_i32, %c0_i32_0 : i32, i32
  }
  func.func @transform_6(%arg0: i32) -> (i32, i32) {
    %c0_i32 = arith.constant 0 : i32
    %c0_i32_0 = arith.constant 0 : i32
    %c0_i32_1 = arith.constant 0 : i32
    return %c0_i32, %c0_i32_0 : i32, i32
  }
  func.func @transform_7(%arg0: i32) -> (i32, i32, i32) {
    %c0_i32 = arith.constant 0 : i32
    %c0_i32_0 = arith.constant 0 : i32
    %c0_i32_1 = arith.constant 0 : i32
    %c0_i32_2 = arith.constant 0 : i32
    return %c0_i32, %c0_i32_0, %c0_i32_1 : i32, i32, i32
  }
  func.func @transform_8(%arg0: i32) -> (i32, i32) {
    %c0_i32 = arith.constant 0 : i32
    %c0_i32_0 = arith.constant 0 : i32
    %c0_i32_1 = arith.constant 0 : i32
    return %c0_i32, %c0_i32_0 : i32, i32
  }
  func.func @transform_9(%arg0: i32) -> (i32, i32) {
    %c0_i32 = arith.constant 0 : i32
    %c0_i32_0 = arith.constant 0 : i32
    %c0_i32_1 = arith.constant 0 : i32
    return %c0_i32, %c0_i32_0 : i32, i32
  }
  func.func @transform_10(%arg0: i32) -> (i32, i32) {
    %c0_i32 = arith.constant 0 : i32
    %c0_i32_0 = arith.constant 0 : i32
    %c0_i32_1 = arith.constant 0 : i32
    return %c0_i32, %c0_i32_0 : i32, i32
  }
  func.func @transform_11(%arg0: i32) -> (i32, i32) {
    %c0_i32 = arith.constant 0 : i32
    %c0_i32_0 = arith.constant 0 : i32
    %c0_i32_1 = arith.constant 0 : i32
    return %c0_i32, %c0_i32_0 : i32, i32
  }
  func.func @transform_12(%arg0: i32) -> (i32, i32) {
    %c0_i32 = arith.constant 0 : i32
    %c0_i32_0 = arith.constant 0 : i32
    %c0_i32_1 = arith.constant 0 : i32
    return %c0_i32, %c0_i32_0 : i32, i32
  }
  func.func @transform_13(%arg0: i32) -> (i32, i32, i32) {
    %c0_i32 = arith.constant 0 : i32
    %c0_i32_0 = arith.constant 0 : i32
    %c0_i32_1 = arith.constant 0 : i32
    return %arg0, %c0_i32, %c0_i32_0 : i32, i32, i32
  }
}

</mosaic_0001>

<bundles_post_ra>
// kernel: nn_model_forward.1
= control target key start
LH: loop header
LB: loop body
LE: loop exit
PB: predicated region body
PF: predicated region fallthrough
CT: control target
= control target key end

     0   :  { %s6376_s0 = inlined_call_operand.vmem [shape: f32[2,3,900], index: 0, kind: input, shape index: {}]   ;;  %s6377_s1 = inlined_call_operand.vmem [shape: bf16[72,3], index: 1, kind: input, shape index: {}]   ;;  %s6378_s2 = inlined_call_operand.vmem [shape: f32[8,1], index: 2, kind: input, shape index: {}]   ;;  %s6379_s3 = inlined_call_operand.vmem [shape: bf16[807,196], index: 3, kind: input, shape index: {}]   ;;  %s6380_s4 = inlined_call_operand.vmem [shape: bf16[144,8], index: 4, kind: input, shape index: {}]   ;;  %s6381_s5 = inlined_call_operand.vmem [shape: f32[16,1], index: 5, kind: input, shape index: {}]   ;;  %s6382_s6 = inlined_call_operand.vmem [shape: bf16[151,36], index: 6, kind: input, shape index: {}]   ;;  %s6383_s7 = inlined_call_operand.vmem [shape: bf16[16,36,128], index: 7, kind: input, shape index: {}]   ;;  %s6384_s8 = inlined_call_operand.vmem [shape: f32[1,128], index: 8, kind: input, shape index: {}]   ;;  %s6385_s9 = inlined_call_operand.vmem [shape: bf16[128,64], index: 9, kind: input, shape index: {}]   ;;  %s6386_s10 = inlined_call_operand.vmem [shape: f32[1,64], index: 10, kind: input, shape index: {}]   ;;  %s6387_s11 = inlined_call_operand.vmem [shape: bf16[64,128], index: 11, kind: input, shape index: {}]   ;;  %s6388_s12 = inlined_call_operand.vmem [shape: f32[1,128], index: 12, kind: input, shape index: {}]   ;;  %s6389_s13 = inlined_call_operand.hbm [shape: f32[2,1,128], index: 13, kind: output, shape index: {}]  }
   0x1   :  { %6396 = sst [smem:[#allocation6_spill]] %s6376_s0 }
   0x2   :  { %6397 = sst [smem:[#allocation7_spill]] %s6377_s1 }
   0x3   :  { %6398 = sst [smem:[#allocation8_spill]] %s6378_s2 }
   0x4   :  { %18 = vsyncpa [#allocation3], 0 }
   0x5   :  { %20 = vsyncpa [#allocation3 + $0x1], 0  ;;  %s4778_s25 = smov 0   ;;  %s4780_s26 = smov 0  }
   0x6   :  { %s4782_s27 = smov 0   ;;  %s4784_s28 = smov 0  }
   0x7 LB: > { %s4799_s29 = sadd.s32 4294967295, %s4693_s28   ;;  %s3541_s30 = sadd.s32 4294967294, %s4693_s28   ;;  %s4693_s28 = sphi %s4784_s28, %s6412_s28   ;;  %s4689_s27 = sphi %s4782_s27, %s6411_s27   ;;  %s4685_s26 = sphi %s4780_s26, %s6410_s26   ;;  %s4681_s25 = sphi %s4778_s25, %s6409_s25  }
   0x8   : > { %s4803_s14 = sadd.s32 1, %s4693_s28   ;;  %s311_s15 = sadd.s32 1, %s4689_s27 }
   0x9   : > { %s308_s16 = ssub.s32 %s4693_s28, %s4803_s14  ;;  %p321_p0 = scmp.ne.s32.totalorder %s4689_s27, %s4685_s26 }
   0xa   : > { %p309_p1 = scmp.eq.s32.totalorder %s308_s16, 0  ;;  %p322_p2 = scmp.eq.s32.totalorder %s4799_s29, 1 }
   0xb   : > { %p327_p3 = scmp.ne.s32.totalorder %s4685_s26, %s4681_s25  ;;  %p328_p4 = scmp.eq.s32.totalorder %s3541_s30, 1 }
   0xc   : > { %s4814_s17 = scalar_select %p309_p1, %s4689_s27, %s311_s15  }
   0xd   : > { %p4816_p5 = por %p322_p2, %p321_p0  ;;  %p4820_p6 = por %p328_p4, %p327_p3 }
   0xe   : > { %6399 = sst [smem:[#allocation5_spill]] %s4814_s17  ;;  %p3544_p7 = scmp.ge.s32.totalorder %s4693_s28, 1 }
   0xf   : > { %p390_p8 = scmp.lt.s32.totalorder %s4693_s28, 3 }
  0x11   : > { %p391_p9 = pnand %p3544_p7, %p390_p8 }
  0x12   : > { %p433_p10 = scmp.lt.s32.totalorder (!%p391_p9), %s4799_s29, 1  ;;  %s6402_s0 = sld [smem:[#allocation6_spill]] (!%p391_p9) }
  0x13   : > { %394 = sbr.rel (%p391_p9) target bundleno = 2926 (0xb6e), region = 72  ;;  %s6403_s1 = sld [smem:[#allocation7_spill]] (!%p391_p9) }
  0x14   : > { %s4696_s16 = smov (!%p391_p9), 100   ;;  %s4699_s22 = smov (!%p391_p9), 99  }
  0x15   : > { %s4700_s23 = smov (!%p391_p9), 66   ;;  %s6404_s2 = sld [smem:[#allocation8_spill]] (!%p391_p9) }
  0x16   : > { %s4705_s17 = smov (!%p391_p9), 115   ;;  %s6407_s15 = smov (!%p391_p9), 98  }
  0x17   : > { %s4707_s30 = smov (!%p391_p9), 114  }
  0x18   : > { %s434_s20 = scalar_select %p433_p10, %s4799_s29, 1  ;;  %vm526_vm0 = vcmask 1040384   ;;  %vm527_vm1 = vcmask 1041408   ;;  %v4695_v3 = vmov 65535   ;;  %vm510_vm2 = vcmask 23552  }
  0x19   : > { %v528_v4 = vsel %vm526_vm0, 4294967295, %v4695_v3  ;;  %v4367_v20 = vld [vmem:[%s6403_s1] sm:$0xff]  ;;  %v4368_v25 = vld [vmem:[%s6403_s1 + $0x8] sm:$0xff]  ;;  %v4369_v29 = vld [vmem:[%s6403_s1 + $0x10] sm:$0xff]  ;;  %vm875_vm3 = vcmask 818176   ;;  %vm833_vm4 = vcmask 1039360  }
  0x1a   : > { %s4366_s21 = sshll.u32 %s434_s20, 5  ;;  %v529_v5 = vsel %vm527_vm1, %v528_v4, 0  ;;  %v4370_v34 = vld [vmem:[%s6403_s1 + $0x18] sm:$0xff]  ;;  %v447_v35 = vld [vmem:[%s6403_s1 + $0x20] sm:$0xf]  ;;  %s6392_s20 = smov 127  }
  0x1b   : > { %s4831_s24 = scalar_lea.vmem %s6402_s0, %s4366_s21  ;;  %v504_v36 = vunpack.c.l.b16 %v447_v35  ;;  %s6390_s21 = smov 126   ;;  %vm1050_vm5 = vcmask 809984   ;;  %vm1005_vm6 = vcmask 1031168   ;;  %vm1093_vm7 = vcmask 793600  }
  0x1c   : > { %v448_v0 = vld [vmem:[%s4831_s24] sm:$0x77]  ;;  %v449_v1 = vld [vmem:[%s4831_s24 + $0x8] sm:$0x77]  ;;  %v450_v2 = vld [vmem:[%s4831_s24 + $0x10] sm:$0x77] }
  0x1d   : > { %456 = vst [vmem:[#allocation1] ss:$2 sm:$0xff] %v448_v0  ;;  %v451_v26 = vld [vmem:[%s4831_s24 + $0x18] sm:$0x77]  ;;  %v509_v37 = vpack.c.b16 %v504_v36, %v504_v36  ;;  %s4701_s24 = smov 97   ;;  %vm1138_vm8 = vcmask 539648  }
  0x1e   : > { %458 = vst [vmem:[#allocation1 + $0x10] ss:$2 sm:$0xff] %v449_v1  ;;  %vm1880_vm9 = vcmask 1042432   ;;  %vm1881_vm10 = vcmask 1043456   ;;  %vm1242_vm11 = vcmask 801792   ;;  %vm1876_vm12 = vcmask 318464  }
  0x1f   : > { %460 = vst [vmem:[#allocation1 + $0x20] ss:$2 sm:$0xff] %v450_v2  ;;  %vm2137_vm13 = vcmask 64512   ;;  %vm2313_vm14 = vcmask 949248   ;;  %vm2402_vm15 = vcmask 941056  }
  0x20   : > { %462 = vst [vmem:[#allocation1 + $0x30] ss:$2 sm:$0xff] %v451_v26 }
  0x24   : > { %v463_v6 = vld.sshfl [vmem:[#allocation1] sm:$0xff pattern:$0x75316420]  ;;  %v464_v7 = vld.sshfl [vmem:[#allocation1 + $0x8] sm:$0xff pattern:$0x75316420] }
  0x25   : > { %v479_v8 = vpack.c.bf16 %v463_v6, %v463_v6  ;;  %v480_v9 = vpack.c.bf16 %v464_v7, %v464_v7  ;;  %v465_v10 = vld.sshfl [vmem:[#allocation1 + $0x10] sm:$0xff pattern:$0x75316420]  ;;  %v466_v11 = vld.sshfl [vmem:[#allocation1 + $0x18] sm:$0xff pattern:$0x75316420] }
  0x26   : > { %v481_v12 = vpack.c.bf16 %v465_v10, %v465_v10  ;;  %v482_v13 = vpack.c.bf16 %v466_v11, %v466_v11  ;;  %v467_v14 = vld.sshfl [vmem:[#allocation1 + $0x20] sm:$0xff pattern:$0x75316420]  ;;  %v468_v22 = vld.sshfl [vmem:[#allocation1 + $0x28] sm:$0xff pattern:$0x75316420] }
  0x27   : > { %v531_v15 = vand.u32 %v529_v5, %v479_v8  ;;  %v534_v16 = vand.u32 %v529_v5, %v480_v9  ;;  %v483_v17 = vpack.c.bf16 %v467_v14, %v467_v14  ;;  %v484_v23 = vpack.c.bf16 %v468_v22, %v468_v22  ;;  %v469_v27 = vld.sshfl [vmem:[#allocation1 + $0x30] sm:$0xff pattern:$0x75316420]  ;;  %v470_v31 = vld.sshfl [vmem:[#allocation1 + $0x38] sm:$0xff pattern:$0x75316420] }
  0x28   : > { %v537_v18 = vand.u32 %v529_v5, %v481_v12  ;;  %v540_v19 = vand.u32 %v529_v5, %v482_v13  ;;  %v485_v28 = vpack.c.bf16 %v469_v27, %v469_v27  ;;  %v486_v32 = vpack.c.bf16 %v470_v31, %v470_v31 }
  0x29   : > { %561 = vmatpush.bf16.msra.mxu0 %v531_v15  ;;  %594 = vmatpush.bf16.msra.mxu1 %v534_v16  ;;  %v543_v21 = vand.u32 %v529_v5, %v483_v17  ;;  %v546_v24 = vand.u32 %v529_v5, %v484_v23 }
  0x2a   : > { %627 = vmatpush.bf16.msra.mxu2 %v537_v18  ;;  %660 = vmatpush.bf16.msra.mxu3 %v540_v19  ;;  %v549_v30 = vand.u32 %v529_v5, %v485_v28  ;;  %v552_v33 = vand.u32 %v529_v5, %v486_v32 }
  0x2c   : > { %3563 = vmatmul.msk.bf16.vlgmr.msra.gmra.mxu0 %vm510_vm2, %v4367_v20  ;;  %3568 = vmatmul.msk.bf16.vlgmr.msra.gmra.mxu1 %vm510_vm2, %v4367_v20 }
  0x2d   : > { %693 = vmatpush.bf16.msrb.mxu0 %v543_v21  ;;  %3573 = vmatmul.msk.bf16.vlgmr.msra.gmra.mxu2 %vm510_vm2, %v4367_v20 }
  0x2e   : > { %3578 = vmatmul.msk.bf16.vlgmr.msra.gmra.mxu3 %vm510_vm2, %v4367_v20  ;;  %726 = vmatpush.bf16.msrb.mxu1 %v546_v24 }
  0x2f   : > { %759 = vmatpush.bf16.msrb.mxu2 %v549_v30  ;;  %792 = vmatpush.bf16.msrb.mxu3 %v552_v33 }
  0x3c   : > { %3564 = vmatmul.msk.bf16.gmra.mxu0 %vm510_vm2, %v4368_v25  ;;  %3569 = vmatmul.msk.bf16.gmra.mxu1 %vm510_vm2, %v4368_v25 }
  0x3d   : > { %3574 = vmatmul.msk.bf16.gmra.mxu2 %vm510_vm2, %v4368_v25 }
  0x3e   : > { %3579 = vmatmul.msk.bf16.gmra.mxu3 %vm510_vm2, %v4368_v25 }
  0x4c   : > { %3565 = vmatmul.msk.bf16.gmra.mxu0 %vm510_vm2, %v4369_v29  ;;  %3570 = vmatmul.msk.bf16.gmra.mxu1 %vm510_vm2, %v4369_v29 }
  0x4d   : > { %3575 = vmatmul.msk.bf16.gmra.mxu2 %vm510_vm2, %v4369_v29 }
  0x4e   : > { %3580 = vmatmul.msk.bf16.gmra.mxu3 %vm510_vm2, %v4369_v29 }
  0x5c   : > { %3566 = vmatmul.msk.bf16.gmra.mxu0 %vm510_vm2, %v4370_v34  ;;  %3571 = vmatmul.msk.bf16.gmra.mxu1 %vm510_vm2, %v4370_v34 }
  0x5d   : > { %3576 = vmatmul.msk.bf16.gmra.mxu2 %vm510_vm2, %v4370_v34 }
  0x5e   : > { %3581 = vmatmul.msk.bf16.gmra.mxu3 %vm510_vm2, %v4370_v34 }
  0x6c   : > { %3567 = vmatmul.msk.bf16.gmra.mxu0 %vm510_vm2, %v509_v37  ;;  %3572 = vmatmul.msk.bf16.gmra.mxu1 %vm510_vm2, %v509_v37 }
  0x6d   : > { %3577 = vmatmul.msk.bf16.gmra.mxu2 %vm510_vm2, %v509_v37 }
  0x6e   : > { %3582 = vmatmul.msk.bf16.gmra.mxu3 %vm510_vm2, %v509_v37 }
  0x7c   : > { %3583 = vmatmul.msk.bf16.vlgmr.msrb.gmra.mxu0 %vm510_vm2, %v4367_v20  ;;  %3588 = vmatmul.msk.bf16.vlgmr.msrb.gmra.mxu1 %vm510_vm2, %v4367_v20 }
  0x7d   : > { %3593 = vmatmul.msk.bf16.vlgmr.msrb.gmra.mxu2 %vm510_vm2, %v4367_v20 }
  0x7e   : > { %3598 = vmatmul.msk.bf16.vlgmr.msrb.gmra.mxu3 %vm510_vm2, %v4367_v20 }
  0x8c   : > { %3584 = vmatmul.msk.bf16.gmra.mxu0 %vm510_vm2, %v4368_v25  ;;  %3589 = vmatmul.msk.bf16.gmra.mxu1 %vm510_vm2, %v4368_v25 }
  0x8d   : > { %3594 = vmatmul.msk.bf16.gmra.mxu2 %vm510_vm2, %v4368_v25 }
  0x8e   : > { %3599 = vmatmul.msk.bf16.gmra.mxu3 %vm510_vm2, %v4368_v25 }
  0x9c   : > { %3585 = vmatmul.msk.bf16.gmra.mxu0 %vm510_vm2, %v4369_v29  ;;  %3590 = vmatmul.msk.bf16.gmra.mxu1 %vm510_vm2, %v4369_v29 }
  0x9d   : > { %3595 = vmatmul.msk.bf16.gmra.mxu2 %vm510_vm2, %v4369_v29 }
  0x9e   : > { %3600 = vmatmul.msk.bf16.gmra.mxu3 %vm510_vm2, %v4369_v29 }
  0xa9   : > { %v4887_v38 = vpop.f32.mrf.mxu0  ;;  %v4889_v39 = vpop.f32.mrf.mxu1 }
  0xac   : > { %3586 = vmatmul.msk.bf16.gmra.mxu0 %vm510_vm2, %v4370_v34  ;;  %3591 = vmatmul.msk.bf16.gmra.mxu1 %vm510_vm2, %v4370_v34 }
  0xad   : > { %3596 = vmatmul.msk.bf16.gmra.mxu2 %vm510_vm2, %v4370_v34 }
  0xae   : > { %3601 = vmatmul.msk.bf16.gmra.mxu3 %vm510_vm2, %v4370_v34 }
  0xb0   : > { %v4895_v40 = vpop.f32.mrf.mxu2 }
  0xb1   : > { %v4897_v41 = vpop.f32.mrf.mxu3  ;;  %v4899_v42 = vpop.f32.mrf.mxu0 }
  0xb2   : > { %v4901_v43 = vpop.f32.mrf.mxu1 }
  0xb8   : > { %v4903_v44 = vpop.f32.mrf.mxu2 }
  0xb9   : > { %v4905_v45 = vpop.f32.mrf.mxu3  ;;  %v4907_v46 = vpop.f32.mrf.mxu0 }
  0xba   : > { %v4909_v47 = vpop.f32.mrf.mxu1 }
  0xbc   : > { %3587 = vmatmul.msk.bf16.gmra.mxu0 %vm510_vm2, %v509_v37  ;;  %3592 = vmatmul.msk.bf16.gmra.mxu1 %vm510_vm2, %v509_v37 }
  0xbd   : > { %3597 = vmatmul.msk.bf16.gmra.mxu2 %vm510_vm2, %v509_v37 }
  0xbe   : > { %3602 = vmatmul.msk.bf16.gmra.mxu3 %vm510_vm2, %v509_v37  ;;  %vm2425_vm2 = vcmask 924672  }
  0xc0   : > { %v4915_v48 = vpop.f32.mrf.mxu2 }
  0xc1   : > { %v4917_v49 = vpop.f32.mrf.mxu3  ;;  %v570_v50 = vpop.f32.mrf.mxu0 }
  0xc2   : > { %v603_v51 = vpop.f32.mrf.mxu1  ;;  %861 = vrot.lane.b32.xlu2 %v570_v50, %s4696_s16 }
  0xc3   : > { %863 = vrot.lane.b32.xlu0 %v603_v51, %s4696_s16 }
  0xc8   : > { %v636_v52 = vpop.f32.mrf.mxu2 }
  0xc9   : > { %v669_v53 = vpop.f32.mrf.mxu3  ;;  %v4921_v54 = vpop.f32.mrf.mxu0 }
  0xca   : > { %v4923_v55 = vpop.f32.mrf.mxu1  ;;  %865 = vrot.lane.b32.xlu2 %v636_v52, %s4696_s16 }
  0xcb   : > { %867 = vrot.lane.b32.xlu0 %v669_v53, %s4696_s16 }
  0xd0   : > { %v4927_v56 = vpop.f32.mrf.mxu2 }
  0xd1   : > { %v4929_v57 = vpop.f32.mrf.mxu3  ;;  %v575_v58 = vpop.f32.mrf.mxu0 }
  0xd2   : > { %v4931_v59 = vpop.f32.mrf.mxu1  ;;  %903 = vrot.lane.b32.xlu1 %v575_v58, %s6392_s20 }
  0xd8   : > { %v641_v60 = vpop.f32.mrf.mxu2 }
  0xd9   : > { %v674_v61 = vpop.f32.mrf.mxu3  ;;  %v4934_v62 = vpop.f32.mrf.mxu0 }
  0xda   : > { %v4936_v63 = vpop.f32.mrf.mxu1  ;;  %909 = vrot.lane.b32.xlu2 %v674_v61, %s6392_s20  ;;  %907 = vrot.lane.b32.xlu1 %v641_v60, %s6392_s20 }
  0xe0   : > { %v4940_v0 = vpop.f32.mrf.mxu2 }
  0xe1   : > { %v4942_v1 = vpop.f32.mrf.mxu3  ;;  %v580_v2 = vpop.f32.mrf.mxu0 }
  0xe2   : > { %v613_v4 = vpop.f32.mrf.mxu1  ;;  %945 = vrot.lane.b32.xlu0 %v580_v2, %s6392_s20 }
  0xe3   : > { %947 = vrot.lane.b32.xlu1 %v613_v4, %s6392_s20 }
  0xe8   : > { %v646_v5 = vpop.f32.mrf.mxu2 }
  0xe9   : > { %v679_v6 = vpop.f32.mrf.mxu3  ;;  %v4946_v7 = vpop.f32.mrf.mxu0 }
  0xea   : > { %v4948_v8 = vpop.f32.mrf.mxu1  ;;  %949 = vrot.lane.b32.xlu0 %v646_v5, %s6392_s20 }
  0xf0   : > { %v4951_v9 = vpop.f32.mrf.mxu2 }
  0xf1   : > { %v4953_v10 = vpop.f32.mrf.mxu3  ;;  %v585_v11 = vpop.f32.mrf.mxu0 }
  0xf2   : > { %v618_v12 = vpop.f32.mrf.mxu1  ;;  %951 = vrot.lane.b32.xlu0 %v679_v6, %s6392_s20 }
  0xf8   : > { %v651_v13 = vpop.f32.mrf.mxu2 }
  0xf9   : > { %v684_v14 = vpop.f32.mrf.mxu3  ;;  %v4956_v15 = vpop.f32.mrf.mxu0 }
  0xfa   : > { %v4958_v16 = vpop.f32.mrf.mxu1 }
 0x100   : > { %v4960_v17 = vpop.f32.mrf.mxu2 }
 0x101   : > { %v794_v18 = vpop.f32.mrf.mxu3  ;;  %v697_v19 = vpop.f32.mrf.mxu0 }
 0x102   : > { %v730_v20 = vpop.f32.mrf.mxu1 }
 0x108   : > { %v4962_v21 = vpop.f32.mrf.mxu2 }
 0x109   : > { %v795_v22 = vpop.f32.mrf.mxu3  ;;  %v4964_v23 = vpop.f32.mrf.mxu0 }
 0x10a   : > { %v4966_v24 = vpop.f32.mrf.mxu1 }
 0x110   : > { %v4968_v25 = vpop.f32.mrf.mxu2 }
 0x111   : > { %v797_v26 = vpop.f32.mrf.mxu3  ;;  %v702_v27 = vpop.f32.mrf.mxu0 }
 0x112   : > { %v735_v28 = vpop.f32.mrf.mxu1  ;;  %869 = vrot.lane.b32.xlu1 %v702_v27, %s4696_s16 }
 0x113   : > { %871 = vrot.lane.b32.xlu2 %v735_v28, %s4696_s16 }
 0x118   : > { %v768_v29 = vpop.f32.mrf.mxu2 }
 0x119   : > { %v798_v30 = vpop.f32.mrf.mxu3  ;;  %873 = vrot.lane.b32.xlu0 %v768_v29, %s4696_s16  ;;  %v4973_v31 = vpop.f32.mrf.mxu0  ;;  %s6405_s16 = smov 127  }
 0x11a   : > { %v4975_v32 = vpop.f32.mrf.mxu1 }
 0x11c   : > { %v862_v52 = vpop.permute.xlu2 %861 }
 0x120   : > { %v4977_v33 = vpop.f32.mrf.mxu2 }
 0x121   : > { %v800_v34 = vpop.f32.mrf.mxu3  ;;  %v707_v35 = vpop.f32.mrf.mxu0 }
 0x122   : > { %v740_v36 = vpop.f32.mrf.mxu1  ;;  %911 = vrot.lane.b32.xlu0 %v707_v35, %s6392_s20 }
 0x123   : > { %913 = vrot.lane.b32.xlu1 %v740_v36, %s6392_s20 }
 0x124   : > { %v866_v61 = vpop.permute.xlu2 %865 }
 0x128   : > { %v773_v37 = vpop.f32.mrf.mxu2 }
 0x129   : > { %v801_v50 = vpop.f32.mrf.mxu3  ;;  %915 = vrot.lane.b32.xlu2 %v773_v37, %s6392_s20  ;;  %v4982_v51 = vpop.f32.mrf.mxu0 }
 0x12a   : > { %823 = vrot.lane.b32.xlu0 %v4903_v44, %s6392_s20  ;;  %v4986_v53 = vpop.f32.mrf.mxu1 }
 0x130   : > { %v4988_v58 = vpop.f32.mrf.mxu2 }
 0x131   : > { %v712_v60 = vpop.f32.mrf.mxu0  ;;  %v4992_v4 = vpop.f32.mrf.mxu3 }
 0x132   : > { %829 = vrot.lane.b32.xlu0 %v730_v20, %s6392_s20  ;;  %953 = vrot.lane.b32.xlu1 %v712_v60, %s6392_s20  ;;  %v745_v11 = vpop.f32.mrf.mxu1 }
 0x134   : > { %v5024_v35 = vpop.permute.xlu2 %909 }
 0x135   : > { %v864_v2 = vpop.permute.xlu0 %863 }
 0x136   : > { %v4995_v5 = vsel %vm875_vm3, %v862_v52, %v864_v2  ;;  %v4998_v6 = vsel %vm875_vm3, %v864_v2, %v866_v61 }
 0x138   : > { %v778_v44 = vpop.f32.mrf.mxu2 }
 0x139   : > { %957 = vrot.lane.b32.xlu2 %v778_v44, %s6392_s20  ;;  %v805_v12 = vpop.f32.mrf.mxu3 }
 0x13a   : > { %955 = vrot.lane.b32.xlu1 %v745_v11, %s6392_s20  ;;  %v715_v11 = vpop.f32.mrf.mxu0 }
 0x13d   : > { %v868_v13 = vpop.permute.xlu0 %867 }
 0x13e   : > { %v878_v18 = vsel %vm875_vm3, %v866_v61, %v868_v13 }
 0x13f   : > { %v891_v20 = vadd.f32 %v878_v18, %v4915_v48 }
 0x141   : > { %959 = vrot.lane.b32.xlu2 %v805_v12, %s6392_s20 }
 0x142   : > { %825 = vrot.lane.b32.xlu1 %v4905_v45, %s6392_s20  ;;  %v717_v18 = vpop.f32.mrf.mxu0 }
 0x143   : > { %v808_v18 = vpop.f32.mrf.mxu3 }
 0x144   : > { %v5005_v14 = vpop.permute.xlu1 %903 }
 0x149   : > { %905 = vrot.lane.b32.xlu2 %v4931_v59, %s6392_s20 }
 0x14a   : > { %995 = vrot.lane.b32.xlu1 %v891_v20, %s6390_s21 }
 0x14c   : > { %v5012_v22 = vpop.permute.xlu1 %907 }
 0x151   : > { %827 = vrot.lane.b32.xlu2 %v697_v19, %s6392_s20 }
 0x154   : > { %v946_v27 = vpop.permute.xlu0 %945 }
 0x155   : > { %v948_v26 = vpop.permute.xlu1 %947 }
 0x156   : > { %v961_v45 = vsel %vm833_vm4, %v946_v27, %v948_v26 }
 0x157   : > { %v976_v28 = vadd.f32 %v961_v45, %v4934_v62 }
 0x159   : > { %1034 = vrot.lane.b32.xlu0 %v976_v28, %s4699_s22 }
 0x15c   : > { %v950_v48 = vpop.permute.xlu0 %949 }
 0x15d   : > { %v962_v59 = vsel %vm833_vm4, %v948_v26, %v950_v48 }
 0x15e   : > { %v977_v29 = vadd.f32 %v962_v59, %v4936_v63 }
 0x160   : > { %1036 = vrot.lane.b32.xlu1 %v977_v29, %s4699_s22 }
 0x164   : > { %v952_v30 = vpop.permute.xlu0 %951 }
 0x165   : > { %v963_v19 = vsel %vm833_vm4, %v950_v48, %v952_v30 }
 0x166   : > { %v978_v34 = vadd.f32 %v963_v19, %v4940_v0 }
 0x168   : > { %1038 = vrot.lane.b32.xlu0 %v978_v34, %s4699_s22 }
 0x16d   : > { %v872_v37 = vpop.permute.xlu2 %871 }
 0x183   : > { %v5031_v52 = vpop.permute.xlu2 %915 }
 0x184   : > { %v870_v62 = vpop.permute.xlu1 %869 }
 0x185   : > { %v879_v36 = vsel %vm875_vm3, %v868_v13, %v870_v62 }
 0x186   : > { %v892_v50 = vadd.f32 %v879_v36, %v4917_v49 }
 0x188   : > { %997 = vrot.lane.b32.xlu2 %v892_v50, %s6390_s21 }
 0x18b   : > { %v5029_v63 = vpop.permute.xlu0 %873 }
 0x18c   : > { %v881_v27 = vsel %vm875_vm3, %v872_v37, %v5029_v63 }
 0x18d   : > { %v894_v59 = vadd.f32 %v881_v27, %v4966_v24 }
 0x193   : > { %v958_v44 = vpop.permute.xlu2 %957 }
 0x194   : > { %v5033_v61 = vpop.permute.xlu0 %911 }
 0x195   : > { %v914_v60 = vpop.permute.xlu1 %913 }
 0x196   : > { %v5037_v0 = vsel %vm833_vm4, %v914_v60, %v5031_v52  ;;  %v5041_v2 = vsel %vm833_vm4, %v5033_v61, %v914_v60 }
 0x19b   : > { %v960_v49 = vpop.permute.xlu2 %959 }
 0x19c   : > { %v967_v19 = vsel %vm833_vm4, %v958_v44, %v960_v49  ;;  %v983_v50 = vadd.f32 %v960_v49, %v4992_v4 }
 0x1a3   : > { %v906_v26 = vpop.permute.xlu2 %905 }
 0x1a4   : > { %v954_v12 = vpop.permute.xlu1 %953 }
 0x1a5   : > { %v964_v13 = vsel %vm833_vm4, %v952_v30, %v954_v12 }
 0x1a6   : > { %v979_v20 = vadd.f32 %v964_v13, %v4942_v1  ;;  %v880_v1 = vsel %vm875_vm3, %v870_v62, %v872_v37  ;;  %v5073_v62 = vpop.permute.xlu0 %823  ;;  %vm2601_vm3 = vcmask 187392  }
 0x1a8   : > { %1040 = vrot.lane.b32.xlu1 %v979_v20, %s4699_s22  ;;  %v920_v20 = vsel %vm833_vm4, %v5024_v35, %v5033_v61 }
 0x1a9   : > { %v933_v27 = vadd.f32 %v920_v20, %v4929_v57 }
 0x1ab   : > { %v5058_v34 = vpop.permute.xlu2 %827 }
 0x1ac   : > { %v956_v45 = vpop.permute.xlu1 %955 }
 0x1ad   : > { %v965_v28 = vsel %vm833_vm4, %v954_v12, %v956_v45  ;;  %v966_v48 = vsel %vm833_vm4, %v956_v45, %v958_v44  ;;  %v1160_v12 = vld [vmem:[%s6404_s2] sm:$0xff]  ;;  %s4706_s2 = smov 113  }
 0x1ae   : > { %v980_v29 = vadd.f32 %v965_v28, %v4982_v51  ;;  %v981_v30 = vadd.f32 %v966_v48, %v4986_v53  ;;  %v893_v51 = vadd.f32 %v880_v1, %v4964_v23  ;;  %v982_v53 = vadd.f32 %v967_v19, %v4988_v58  ;;  %v748_v23 = vpop.f32.mrf.mxu1  ;;  %v5085_v58 = vpop.permute.xlu0 %829 }
 0x1af   : > { %v781_v19 = vpop.f32.mrf.mxu2 }
 0x1b0   : > { %1001 = vrot.lane.b32.xlu1 %v894_v59, %s6390_s21  ;;  %1044 = vrot.lane.b32.xlu0 %v981_v30, %s4699_s22 }
 0x1b1   : > { %1042 = vrot.lane.b32.xlu2 %v980_v29, %s4699_s22  ;;  %v810_v29 = vpop.f32.mrf.mxu3 }
 0x1b4   : > { %v5060_v36 = vpop.permute.xlu1 %825 }
 0x1b5   : > { %v5065_v24 = vsel %vm833_vm4, %v5060_v36, %v5058_v34 }
 0x1b6   : > { %v750_v37 = vpop.f32.mrf.mxu1 }
 0x1b8   : > { %1046 = vrot.lane.b32.xlu1 %v982_v53, %s4699_s22  ;;  %999 = vrot.lane.b32.xlu0 %v893_v51, %s6390_s21  ;;  %v783_v51 = vpop.f32.mrf.mxu2  ;;  %v935_v53 = vadd.f32 %v5037_v0, %v4975_v32  ;;  %v936_v32 = vadd.f32 %v5031_v52, %v4977_v33 }
 0x1b9   : > { %1048 = vrot.lane.b32.xlu2 %v983_v50, %s4699_s22  ;;  %s4704_s22 = smov 116  }
 0x1bc   : > { %v5087_v4 = vpop.permute.xlu1 %995 }
 0x1c0   : > { %1128 = vrot.lane.b32.xlu1 %v4953_v10, %s4700_s23  ;;  %1126 = vrot.lane.b32.xlu0 %v4951_v9, %s4700_s23  ;;  %v889_v10 = vadd.f32 %v4995_v5, %v4907_v46  ;;  %v890_v9 = vadd.f32 %v4998_v6, %v4909_v47  ;;  %v918_v46 = vsel %vm833_vm4, %v906_v26, %v5012_v22 }
 0x1c1   : > { %1130 = vrot.lane.b32.xlu2 %v715_v11, %s4700_s23  ;;  %v931_v47 = vadd.f32 %v918_v46, %v4923_v55  ;;  %v919_v55 = vsel %vm833_vm4, %v5012_v22, %v5024_v35  ;;  %v934_v22 = vadd.f32 %v5041_v2, %v4973_v31  ;;  %v895_v31 = vadd.f32 %v5029_v63, %v4968_v25 }
 0x1c8   : > { %819 = vrot.lane.b32.xlu1 %v4899_v42, %s6392_s20  ;;  %1132 = vrot.lane.b32.xlu0 %v748_v23, %s4700_s23  ;;  %v917_v42 = vsel %vm833_vm4, %v5005_v14, %v906_v26  ;;  %v932_v26 = vadd.f32 %v919_v55, %v4927_v56 }
 0x1c9   : > { %821 = vrot.lane.b32.xlu2 %v4901_v43, %s6392_s20  ;;  %v930_v11 = vadd.f32 %v917_v42, %v4921_v54  ;;  %v4702_v54 = vmov 0  }
 0x1ca   : > { %4585 = vset.pattern.permute.xlu0 %v4702_v54  ;;  %4606 = vset.pattern.permute.xlu2 %v4702_v54  ;;  %v838_v54 = vsel %vm833_vm4, %v5058_v34, %v5085_v58 }
 0x1cb   : > { %v1035_v43 = vpop.permute.xlu0 %1034  ;;  %v851_v20 = vadd.f32 %v838_v54, %v4956_v15 }
 0x1d0   : > { %991 = vrot.lane.b32.xlu1 %v889_v10, %s6390_s21  ;;  %1163 = vperm.xlu0 %4585, %v1160_v12  }
 0x1d1   : > { %993 = vrot.lane.b32.xlu2 %v890_v9, %s6390_s21 }
 0x1d2   : > { %v1037_v60 = vpop.permute.xlu1 %1036 }
 0x1d3   : > { %v1051_v44 = vsel %vm1050_vm5, %v1035_v43, %v1037_v60 }
 0x1d4   : > { %v1065_v49 = vadd.f32 %v1051_v44, %v930_v11 }
 0x1d8   : > { %1079 = vrot.lane.b32.xlu1 %v1065_v49, %s4701_s24 }
 0x1da   : > { %v1039_v5 = vpop.permute.xlu0 %1038 }
 0x1db   : > { %v1052_v6 = vsel %vm1050_vm5, %v1037_v60, %v1039_v5 }
 0x1dc   : > { %v1066_v14 = vadd.f32 %v1052_v6, %v931_v47 }
 0x1de   : > { %1081 = vrot.lane.b32.xlu2 %v1066_v14, %s4701_s24 }
 0x1e2   : > { %v5108_v13 = vpop.permute.xlu2 %997 }
 0x1e3   : > { %v1008_v46 = vsel %vm1005_vm6, %v5087_v4, %v5108_v13 }
 0x20b   : > { %v1043_v45 = vpop.permute.xlu2 %1042 }
 0x213   : > { %v1049_v37 = vpop.permute.xlu2 %1048 }
 0x21a   : > { %v1041_v28 = vpop.permute.xlu1 %1040 }
 0x21b   : > { %v1053_v48 = vsel %vm1050_vm5, %v1039_v5, %v1041_v28  ;;  %v1054_v59 = vsel %vm1050_vm5, %v1041_v28, %v1043_v45 }
 0x21c   : > { %v1067_v30 = vadd.f32 %v1053_v48, %v932_v26  ;;  %v1068_v1 = vadd.f32 %v1054_v59, %v933_v27  ;;  %v850_v26 = vadd.f32 %v5065_v24, %v4897_v41 }
 0x21e   : > { %1085 = vrot.lane.b32.xlu0 %v1068_v1, %s4701_s24  ;;  %1083 = vrot.lane.b32.xlu2 %v1067_v30, %s4701_s24 }
 0x222   : > { %v1045_v56 = vpop.permute.xlu0 %1044  ;;  %v5124_v35 = vpop.permute.xlu1 %1001 }
 0x223   : > { %v1055_v57 = vsel %vm1050_vm5, %v1043_v45, %v1045_v56 }
 0x224   : > { %v1069_v61 = vadd.f32 %v1055_v57, %v934_v22 }
 0x226   : > { %1087 = vrot.lane.b32.xlu1 %v1069_v61, %s4701_s24  ;;  %831 = vrot.lane.b32.xlu0 %v4962_v21, %s6392_s20 }
 0x22a   : > { %v1047_v50 = vpop.permute.xlu1 %1046  ;;  %v1000_v63 = vpop.permute.xlu0 %999 }
 0x22b   : > { %v1056_v23 = vsel %vm1050_vm5, %v1045_v56, %v1047_v50  ;;  %v1057_v21 = vsel %vm1050_vm5, %v1047_v50, %v1049_v37  ;;  %v1009_v55 = vsel %vm1005_vm6, %v5108_v13, %v1000_v63  ;;  %vm2670_vm5 = vcmask 293888  }
 0x22c   : > { %v1070_v2 = vadd.f32 %v1056_v23, %v935_v53  ;;  %v1071_v0 = vadd.f32 %v1057_v21, %v936_v32  ;;  %v1022_v28 = vadd.f32 %v1009_v55, %v850_v26 }
 0x22e   : > { %1122 = vrot.lane.b32.xlu1 %v4946_v7, %s4700_s23  ;;  %1003 = vrot.lane.b32.xlu0 %v895_v31, %s6390_s21  ;;  %v1131_v7 = vpop.permute.xlu2 %1130 }
 0x22f   : > { %1089 = vrot.lane.b32.xlu2 %v1070_v2, %s4701_s24 }
 0x232   : > { %v1129_v10 = vpop.permute.xlu1 %1128  ;;  %v1127_v42 = vpop.permute.xlu0 %1126 }
 0x233   : > { %v1142_v24 = vsel %vm1138_vm8, %v1129_v10, %v1131_v7 }
 0x236   : > { %1091 = vrot.lane.b32.xlu1 %v1071_v0, %s4701_s24  ;;  %1136 = vrot.lane.b32.xlu0 %v808_v18, %s4700_s23  ;;  %v822_v25 = vpop.permute.xlu2 %821  ;;  %s6394_s24 = smov 98  }
 0x237   : > { %1124 = vrot.lane.b32.xlu2 %v4948_v8, %s4700_s23  ;;  %v836_v8 = vsel %vm833_vm4, %v5073_v62, %v5060_v36  ;;  %v835_v36 = vsel %vm833_vm4, %v822_v25, %v5073_v62  ;;  %v1141_v62 = vsel %vm1138_vm8, %v1127_v42, %v1129_v10 }
 0x238   : > { %v849_v47 = vadd.f32 %v836_v8, %v4895_v40  ;;  %v1010_v40 = vsel %vm1005_vm6, %v1000_v63, %v5124_v35  ;;  %v848_v27 = vadd.f32 %v835_v36, %v4889_v39 }
 0x239   : > { %v1023_v48 = vadd.f32 %v1010_v40, %v851_v20 }
 0x23a   : > { %v820_v43 = vpop.permute.xlu1 %819  ;;  %v5147_v44 = vpop.permute.xlu0 %1132  ;;  %v1021_v12 = vadd.f32 %v1008_v46, %v849_v47 }
 0x23b   : > { %v834_v13 = vsel %vm833_vm4, %v820_v43, %v822_v25  ;;  %v1143_v57 = vsel %vm1138_vm8, %v1131_v7, %v5147_v44 }
 0x23c   : > { %v847_v22 = vadd.f32 %v834_v13, %v4887_v38  ;;  %v3845_v13 = vld [vmem:[%s6379_s3 + $0x1e0] sm:$0xf] }
 0x23e   : > { %v994_v9 = vpop.permute.xlu2 %993 }
 0x23f   : > { %1134 = vrot.lane.b32.xlu2 %v781_v19, %s4700_s23  ;;  %v1007_v34 = vsel %vm1005_vm6, %v994_v9, %v5087_v4 }
 0x240   : > { %v1020_v41 = vadd.f32 %v1007_v34, %v848_v27 }
 0x242   : > { %v992_v52 = vpop.permute.xlu1 %991  ;;  %v5149_v11 = vpop.permute.xlu0 %1163 }
 0x243   : > { %v1006_v56 = vsel %vm1005_vm6, %v992_v52, %v994_v9 }
 0x244   : > { %v1019_v2 = vadd.f32 %v1006_v56, %v847_v22  ;;  %v3653_v56 = vld [vmem:[%s6379_s3 + $0x60] sm:$0xf] }
 0x246   : > { %v1082_v60 = vpop.permute.xlu2 %1081 }
 0x24a   : > { %v1080_v5 = vpop.permute.xlu1 %1079 }
 0x24b   : > { %v1094_v31 = vsel %vm1093_vm7, %v1080_v5, %v1082_v60 }
 0x24c   : > { %v1107_v32 = vadd.f32 %v1094_v31, %v1019_v2  ;;  %v4416_v31 = vld [vmem:[%s6379_s3 + $0x164] sm:$0xf0] }
 0x278   : > { %v1084_v33 = vpop.permute.xlu2 %1083 }
 0x279   : > { %v1095_v15 = vsel %vm1093_vm7, %v1082_v60, %v1084_v33 }
 0x27a   : > { %v1108_v51 = vadd.f32 %v1095_v15, %v1020_v41  ;;  %v4386_v15 = vld [vmem:[%s6379_s3 + $0x74] sm:$0xf0] }
 0x289   : > { %v5154_v49 = vpop.permute.xlu2 %1089 }
 0x290   : > { %v1086_v6 = vpop.permute.xlu0 %1085 }
 0x291   : > { %v1096_v14 = vsel %vm1093_vm7, %v1084_v33, %v1086_v6  ;;  %v1125_v45 = vpop.permute.xlu2 %1124 }
 0x292   : > { %v1109_v18 = vadd.f32 %v1096_v14, %v1021_v12  ;;  %v1140_v61 = vsel %vm1138_vm8, %v1125_v45, %v1127_v42 }
 0x293   : > { %v1154_v37 = vadd.f32 %v1140_v61, %v1108_v51  ;;  %v3717_v61 = vld [vmem:[%s6379_s3 + $0xe0] sm:$0xf] }
 0x294   : > { %v1155_v59 = vadd.f32 %v1141_v62, %v1109_v18 }
 0x295   : > { %v5203_v42 = vadd.f32 %v5149_v11, %v1154_v37 }
 0x296   : > { %v5189_v23 = vadd.f32 %v5149_v11, %v1155_v59  ;;  %v4432_v59 = vld [vmem:[%s6379_s3 + $0x1e4] sm:$0xf0] }
 0x297   : > { %v1174_v47 = vmax.f32 %v5203_v42, 0.0 }
 0x298   : > { %v832_v29 = vpop.permute.xlu0 %831  ;;  %v1088_v30 = vpop.permute.xlu1 %1087  ;;  %v1175_v63 = vmax.f32 %v5189_v23, 0.0  ;;  %v3693_v23 = vld [vmem:[%s6379_s3 + $0xb0] sm:$0xf] }
 0x299   : > { %v1097_v1 = vsel %vm1093_vm7, %v1086_v6, %v1088_v30  ;;  %v1098_v39 = vsel %vm1093_vm7, %v1088_v30, %v5154_v49  ;;  %v839_v33 = vsel %vm833_vm4, %v5085_v58, %v832_v29  ;;  %v853_v8 = vadd.f32 %v832_v29, %v4960_v17  ;;  %v1135_v14 = vpop.permute.xlu2 %1134  ;;  %v3661_v30 = vld [vmem:[%s6379_s3 + $0x70] sm:$0xf] }
 0x29a   : > { %v1110_v4 = vadd.f32 %v1097_v1, %v1022_v28  ;;  %v1111_v19 = vadd.f32 %v1098_v39, %v1023_v48  ;;  %v852_v5 = vadd.f32 %v839_v33, %v4958_v16  ;;  %v1144_v16 = vsel %vm1138_vm8, %v5147_v44, %v1135_v14  ;;  %v3853_v44 = vld [vmem:[%s6379_s3 + $0x1f0] sm:$0xf]  ;;  %v4418_v48 = vld [vmem:[%s6379_s3 + $0x174] sm:$0xf0]  ;;  %v4428_v33 = vld [vmem:[%s6379_s3 + $0x1c4] sm:$0xf0] }
 0x29b   : > { %v3725_v1 = vld [vmem:[%s6379_s3 + $0xf0] sm:$0xf]  ;;  %v3846_v39 = vor.u32 %v4432_v59, %v3845_v13  ;;  %v3662_v41 = vor.u32 %v4386_v15, %v3661_v30  ;;  %v3813_v15 = vld [vmem:[%s6379_s3 + $0x1a0] sm:$0xf] }
 0x29c   : > { %v1156_v53 = vadd.f32 %v1142_v24, %v1110_v4  ;;  %v1157_v50 = vadd.f32 %v1143_v57, %v1111_v19  ;;  %v4402_v24 = vld [vmem:[%s6379_s3 + $0xf4] sm:$0xf0]  ;;  %v3837_v4 = vld [vmem:[%s6379_s3 + $0x1d0] sm:$0xf]  ;;  %v4384_v57 = vld [vmem:[%s6379_s3 + $0x64] sm:$0xf0] }
 0x29d   : > { %v4430_v19 = vld [vmem:[%s6379_s3 + $0x1d4] sm:$0xf0]  ;;  %v3726_v22 = vor.u32 %v4402_v24, %v3725_v1  ;;  %1890 = vmatpush.bf16.msra.mxu0 %v3662_v41  ;;  %v3654_v51 = vor.u32 %v4384_v57, %v3653_v56  ;;  %v3629_v59 = vld [vmem:[%s6379_s3 + $0x30] sm:$0xf]  ;;  %v4424_v1 = vld [vmem:[%s6379_s3 + $0x1a4] sm:$0xf0] }
 0x29e   : > { %v5193_v21 = vadd.f32 %v5149_v11, %v1157_v50  ;;  %v5196_v38 = vadd.f32 %v5149_v11, %v1156_v53  ;;  %v4400_v53 = vld [vmem:[%s6379_s3 + $0xe4] sm:$0xf0]  ;;  %v3781_v50 = vld [vmem:[%s6379_s3 + $0x160] sm:$0xf] }
 0x29f   : > { %1903 = vmatpush.bf16.msra.mxu1 %v3726_v22  ;;  %v3718_v2 = vor.u32 %v4400_v53, %v3717_v61  ;;  %v3782_v37 = vor.u32 %v4416_v31, %v3781_v50  ;;  %v3621_v56 = vld [vmem:[%s6379_s3 + $0x20] sm:$0xf]  ;;  %v4376_v57 = vld [vmem:[%s6379_s3 + $0x24] sm:$0xf0]  ;;  %v3814_v50 = vor.u32 %v4424_v1, %v3813_v15  ;;  %v3805_v31 = vld [vmem:[%s6379_s3 + $0x190] sm:$0xf] }
 0x2a0   : > { %v1004_v0 = vpop.permute.xlu0 %1003  ;;  %v1123_v7 = vpop.permute.xlu1 %1122  ;;  %v1177_v25 = vmax.f32 %v5193_v21, 0.0  ;;  %v1176_v10 = vmax.f32 %v5196_v38, 0.0  ;;  %v4394_v38 = vld [vmem:[%s6379_s3 + $0xb4] sm:$0xf0] }
 0x2a1   : > { %v1139_v9 = vsel %vm1138_vm8, %v1123_v7, %v1125_v45  ;;  %v1011_v46 = vsel %vm1005_vm6, %v5124_v35, %v1004_v0  ;;  %v1025_v12 = vadd.f32 %v1004_v0, %v853_v8  ;;  %v3789_v45 = vld [vmem:[%s6379_s3 + $0x170] sm:$0xf]  ;;  %v3838_v0 = vor.u32 %v4430_v19, %v3837_v4  ;;  %v4382_v7 = vld [vmem:[%s6379_s3 + $0x54] sm:$0xf0]  ;;  %1891 = vmatpush.bf16.msra.mxu0 %v3654_v51  ;;  %v3765_v4 = vld [vmem:[%s6379_s3 + $0x140] sm:$0xf] }
 0x2a2   : > { %v1153_v43 = vadd.f32 %v1139_v9, %v1107_v32  ;;  %1195 = vrot.lane.b32.xlu2 %v1177_v25, %s6392_s20  ;;  %v4586_v60 = vpack.i.bf16 %v1176_v10, %v1175_v63  ;;  %v1024_v54 = vadd.f32 %v1011_v46, %v852_v5  ;;  %v3790_v29 = vor.u32 %v4418_v48, %v3789_v45  ;;  %v3645_v32 = vld [vmem:[%s6379_s3 + $0x50] sm:$0xf]  ;;  %v4412_v19 = vld [vmem:[%s6379_s3 + $0x144] sm:$0xf0] }
 0x2a3   : > { %v3709_v9 = vld [vmem:[%s6379_s3 + $0xd0] sm:$0xf]  ;;  %v3646_v8 = vor.u32 %v4382_v7, %v3645_v32  ;;  %1904 = vmatpush.bf16.msra.mxu1 %v3718_v2  ;;  %v3694_v22 = vor.u32 %v4394_v38, %v3693_v23  ;;  %v3766_v61 = vor.u32 %v4412_v19, %v3765_v4  ;;  %v3685_v2 = vld [vmem:[%s6379_s3 + $0xa0] sm:$0xf]  ;;  %v4422_v7 = vld [vmem:[%s6379_s3 + $0x194] sm:$0xf0] }
 0x2a4   : > { %v5215_v52 = vadd.f32 %v5149_v11, %v1153_v43  ;;  %4587 = vrot.lane.b32.xlu1 %v4586_v60, %s6392_s20  ;;  %1916 = vmatpush.bf16.msra.mxu2 %v3790_v29  ;;  %v4398_v43 = vld [vmem:[%s6379_s3 + $0xd4] sm:$0xf0]  ;;  %v3829_v60 = vld [vmem:[%s6379_s3 + $0x1c0] sm:$0xf]  ;;  %v4448_v19 = vld [vmem:[%s6379_s3 + $0x264] sm:$0xf0] }
 0x2a5   : > { %v3710_v5 = vor.u32 %v4398_v43, %v3709_v9  ;;  %1892 = vmatpush.bf16.msra.mxu0 %v3646_v8  ;;  %v4378_v29 = vld [vmem:[%s6379_s3 + $0x34] sm:$0xf0]  ;;  %v3757_v9 = vld [vmem:[%s6379_s3 + $0x130] sm:$0xf]  ;;  %v3909_v4 = vld [vmem:[%s6379_s3 + $0x260] sm:$0xf] }
 0x2a6   : > { %v1173_v6 = vmax.f32 %v5215_v52, 0.0  ;;  %v3630_v24 = vor.u32 %v4378_v29, %v3629_v59  ;;  %v4410_v43 = vld [vmem:[%s6379_s3 + $0x134] sm:$0xf0]  ;;  %v4383_v29 = vld [vmem:[%s6379_s3 + $0x64] sm:$0xf] }
 0x2a7   : > { %1905 = vmatpush.bf16.msra.mxu1 %v3710_v5  ;;  %v4374_v8 = vld [vmem:[%s6379_s3 + $0x14] sm:$0xf0]  ;;  %v3677_v5 = vld [vmem:[%s6379_s3 + $0x90] sm:$0xf] }
 0x2a8   : > { %v1092_v58 = vpop.permute.xlu1 %1091  ;;  %v1137_v36 = vpop.permute.xlu0 %1136  ;;  %v4591_v18 = vpack.i.bf16 %v1174_v47, %v1173_v6  ;;  %1917 = vmatpush.bf16.msra.mxu2 %v3782_v37  ;;  %v4392_v37 = vld [vmem:[%s6379_s3 + $0xa4] sm:$0xf0]  ;;  %v4466_v59 = vld [vmem:[%s6379_s3 + $0x2f4] sm:$0xf0] }
 0x2a9   : > { %v1099_v17 = vsel %vm1093_vm7, %v5154_v49, %v1092_v58  ;;  %v1113_v35 = vadd.f32 %v1092_v58, %v1025_v12  ;;  %v1145_v55 = vsel %vm1138_vm8, %v1135_v14, %v1137_v36  ;;  %v3637_v14 = vld [vmem:[%s6379_s3 + $0x40] sm:$0xf]  ;;  %v4380_v12 = vld [vmem:[%s6379_s3 + $0x44] sm:$0xf0]  ;;  %v3830_v36 = vor.u32 %v4428_v33, %v3829_v60  ;;  %v3613_v33 = vld [vmem:[%s6379_s3 + $0x10] sm:$0xf] }
 0x2aa   : > { %v1112_v40 = vadd.f32 %v1099_v17, %v1024_v54  ;;  %4592 = vrot.lane.b32.xlu0 %v4591_v18, %s6392_s20  ;;  %v3821_v18 = vld [vmem:[%s6379_s3 + $0x1b0] sm:$0xf]  ;;  %v3701_v17 = vld [vmem:[%s6379_s3 + $0xc0] sm:$0xf]  ;;  %v3758_v60 = vor.u32 %v4410_v43, %v3757_v9  ;;  %v4446_v43 = vld [vmem:[%s6379_s3 + $0x254] sm:$0xf0] }
 0x2ab   : > { %v1159_v20 = vadd.f32 %v1145_v55, %v1113_v35  ;;  %v4396_v35 = vld [vmem:[%s6379_s3 + $0xc4] sm:$0xf0]  ;;  %v3901_v9 = vld [vmem:[%s6379_s3 + $0x250] sm:$0xf] }
 0x2ac   : > { %v1158_v26 = vadd.f32 %v1144_v16, %v1112_v40  ;;  %v4426_v40 = vld [vmem:[%s6379_s3 + $0x1b4] sm:$0xf0]  ;;  %v3773_v16 = vld [vmem:[%s6379_s3 + $0x150] sm:$0xf]  ;;  %v3702_v13 = vor.u32 %v4396_v35, %v3701_v17  ;;  %v3614_v17 = vor.u32 %v4374_v8, %v3613_v33  ;;  %v3733_v8 = vld [vmem:[%s6379_s3 + $0x100] sm:$0xf] }
 0x2ad   : > { %v5235_v27 = vadd.f32 %v5149_v11, %v1159_v20  ;;  %v4414_v20 = vld [vmem:[%s6379_s3 + $0x154] sm:$0xf0]  ;;  %v3822_v30 = vor.u32 %v4426_v40, %v3821_v18 }
 0x2ae   : > { %v5238_v34 = vadd.f32 %v5149_v11, %v1158_v26  ;;  %v4434_v11 = vld [vmem:[%s6379_s3 + $0x1f4] sm:$0xf0]  ;;  %v3774_v45 = vor.u32 %v4414_v20, %v3773_v16  ;;  %1906 = vmatpush.bf16.msra.mxu1 %v3702_v13  ;;  %v4372_v16 = vld [vmem:[%s6379_s3 + $0x4] sm:$0xf0]  ;;  %v3669_v20 = vld [vmem:[%s6379_s3 + $0x80] sm:$0xf] }
 0x2af   : > { %v1179_v62 = vmax.f32 %v5235_v27, 0.0  ;;  %v3854_v28 = vor.u32 %v4434_v11, %v3853_v44  ;;  %v3638_v11 = vor.u32 %v4380_v12, %v3637_v14  ;;  %v4390_v14 = vld [vmem:[%s6379_s3 + $0x94] sm:$0xf0]  ;;  %v4385_v27 = vld [vmem:[%s6379_s3 + $0x74] sm:$0xf] }
 0x2b0   : > { %v1178_v49 = vmax.f32 %v5238_v34, 0.0  ;;  %1918 = vmatpush.bf16.msra.mxu2 %v3774_v45  ;;  %v3678_v40 = vor.u32 %v4390_v14, %v3677_v5  ;;  %v3981_v13 = vld [vmem:[%s6379_s3 + $0x2f0] sm:$0xf]  ;;  %v4381_v34 = vld [vmem:[%s6379_s3 + $0x54] sm:$0xf] }
 0x2b1   : > { %1199 = vrot.lane.b32.xlu2 %v1179_v62, %s6392_s20  ;;  %1929 = vmatpush.bf16.msra.mxu3 %v3854_v28  ;;  %v3982_v15 = vor.u32 %v4466_v59, %v3981_v13  ;;  %v3893_v5 = vld [vmem:[%s6379_s3 + $0x240] sm:$0xf]  ;;  %v4458_v59 = vld [vmem:[%s6379_s3 + $0x2b4] sm:$0xf0] }
 0x2b2   : > { %1197 = vrot.lane.b32.xlu1 %v1178_v49, %s6392_s20  ;;  %1893 = vmatpush.bf16.msra.mxu0 %v3638_v11  ;;  %v4450_v11 = vld [vmem:[%s6379_s3 + $0x274] sm:$0xf0] }
 0x2b3   : > { %1907 = vmatpush.bf16.msra.mxu1 %v3694_v22 }
 0x2b4   : > { %1919 = vmatpush.bf16.msra.mxu2 %v3766_v61  ;;  %v4464_v61 = vld [vmem:[%s6379_s3 + $0x2e4] sm:$0xf0] }
 0x2b5   : > { %1930 = vmatpush.bf16.msra.mxu3 %v3846_v39 }
 0x2b6   : > { %1894 = vmatpush.bf16.msra.mxu0 %v3630_v24  ;;  %v4408_v24 = vld [vmem:[%s6379_s3 + $0x124] sm:$0xf0] }
 0x2b8   : > { %1920 = vmatpush.bf16.msra.mxu2 %v3758_v60  ;;  %v4462_v60 = vld [vmem:[%s6379_s3 + $0x2d4] sm:$0xf0] }
 0x2b9   : > { %1931 = vmatpush.bf16.msra.mxu3 %v3838_v0 }
 0x2bd   : > { %1932 = vmatpush.bf16.msra.mxu3 %v3830_v36  ;;  %v4420_v36 = vld [vmem:[%s6379_s3 + $0x184] sm:$0xf0] }
 0x2c1   : > { %1933 = vmatpush.bf16.msra.mxu3 %v3822_v30  ;;  %v3655_v30 = vld [vmem:[%s6379_s3 + $0x68] sm:$0xf0] }
 0x2c2   : > { %v3658_v1 = vor.u32 %v4383_v29, %v3655_v30  ;;  %v3997_v29 = vld [vmem:[%s6379_s3 + $0x310] sm:$0xf]  ;;  %v4470_v30 = vld [vmem:[%s6379_s3 + $0x314] sm:$0xf0] }
 0x2c5   : > { %1934 = vmatpush.bf16.msra.mxu3 %v3814_v50  ;;  %v3639_v50 = vld [vmem:[%s6379_s3 + $0x48] sm:$0xf0] }
 0x2fc   : > { %v5335_v55 = vpop.permute.xlu2 %1195 }
 0x30b   : > { %v1200_v52 = vpop.permute.xlu2 %1199 }
 0x30c   : > { %v5434_v12 = vmax.f32 %v1179_v62, %v1200_v52  ;;  %v3663_v62 = vld [vmem:[%s6379_s3 + $0x78] sm:$0xf0] }
 0x30d   : > { %v3666_v45 = vor.u32 %v4385_v27, %v3663_v62  ;;  %v5571_v62 = vld [vmem:[%s6379_s3 + $0x320] sm:$0xff] }
 0x316   : > { %v4588_v46 = vpop.permute.xlu1 %4587 }
 0x317   : > { %v4590_v54 = vunpack.i.h.bf16 %v4588_v46  ;;  %v4589_v58 = vunpack.i.l.bf16 %v4588_v46  ;;  %v3806_v46 = vor.u32 %v4422_v7, %v3805_v31  ;;  %v3741_v31 = vld [vmem:[%s6379_s3 + $0x110] sm:$0xf] }
 0x319   : > { %v1203_v26 = vsel %vm833_vm4, %v4589_v58, %v4590_v54  ;;  %v1204_v44 = vsel %vm833_vm4, %v4590_v54, %v5335_v55  ;;  %1935 = vmatpush.bf16.msra.mxu3 %v3806_v46  ;;  %v4404_v46 = vld [vmem:[%s6379_s3 + $0x104] sm:$0xf0] }
 0x31a   : > { %v5351_v28 = vmax.f32 %v1175_v63, %v1203_v26  ;;  %v5355_v48 = vmax.f32 %v1176_v10, %v1204_v44  ;;  %v4388_v26 = vld [vmem:[%s6379_s3 + $0x84] sm:$0xf0]  ;;  %v3917_v44 = vld [vmem:[%s6379_s3 + $0x270] sm:$0xf] }
 0x31c   : > { %v4593_v63 = vpop.permute.xlu0 %4592  ;;  %v4596_v10 = vpack.i.bf16 %v5355_v48, %v5351_v28 }
 0x31d   : > { %v4595_v39 = vunpack.i.h.bf16 %v4593_v63  ;;  %v4594_v41 = vunpack.i.l.bf16 %v4593_v63  ;;  %v3670_v63 = vor.u32 %v4388_v26, %v3669_v20  ;;  %v3623_v20 = vld [vmem:[%s6379_s3 + $0x28] sm:$0xf0] }
 0x31e   : > { %4597 = vrot.lane.b32.xlu0 %v4596_v10, %s6394_s24  ;;  %v3918_v10 = vor.u32 %v4450_v11, %v3917_v44  ;;  %v4442_v11 = vld [vmem:[%s6379_s3 + $0x234] sm:$0xf0] }
 0x31f   : > { %v1202_v51 = vsel %vm833_vm4, %v4595_v39, %v4589_v58  ;;  %v1201_v53 = vsel %vm833_vm4, %v4594_v41, %v4595_v39  ;;  %v3797_v58 = vld [vmem:[%s6379_s3 + $0x180] sm:$0xf] }
 0x320   : > { %v5403_v32 = vmax.f32 %v1173_v6, %v1201_v53  ;;  %v5407_v0 = vmax.f32 %v1174_v47, %v1202_v51  ;;  %v3622_v6 = vor.u32 %v4376_v57, %v3621_v56  ;;  %v3686_v47 = vor.u32 %v4392_v37, %v3685_v2  ;;  %v3749_v39 = vld [vmem:[%s6379_s3 + $0x120] sm:$0xf]  ;;  %v4379_v51 = vld [vmem:[%s6379_s3 + $0x44] sm:$0xf]  ;;  %v4406_v2 = vld [vmem:[%s6379_s3 + $0x114] sm:$0xf0] }
 0x321   : > { %v3750_v22 = vor.u32 %v4408_v24, %v3749_v39  ;;  %v3910_v56 = vor.u32 %v4448_v19, %v3909_v4  ;;  %v3973_v57 = vld [vmem:[%s6379_s3 + $0x2e0] sm:$0xf]  ;;  %v3642_v37 = vor.u32 %v4379_v51, %v3639_v50  ;;  %v3742_v7 = vor.u32 %v4406_v2, %v3741_v31  ;;  %v4456_v24 = vld [vmem:[%s6379_s3 + $0x2a4] sm:$0xf0]  ;;  %v4438_v50 = vld [vmem:[%s6379_s3 + $0x214] sm:$0xf0] }
 0x322   : > { %v4601_v42 = vpack.i.bf16 %v5407_v0, %v5403_v32  ;;  %1895 = vmatpush.bf16.msra.mxu0 %v3622_v6  ;;  %1908 = vmatpush.bf16.msra.mxu1 %v3686_v47  ;;  %v3974_v53 = vor.u32 %v4464_v61, %v3973_v57  ;;  %v3902_v6 = vor.u32 %v4446_v43, %v3901_v9  ;;  %v3631_v47 = vld [vmem:[%s6379_s3 + $0x38] sm:$0xf0]  ;;  %v3941_v39 = vld [vmem:[%s6379_s3 + $0x2a0] sm:$0xf]  ;;  %v4371_v57 = vld [vmem:[%s6379_s3 + $0x4] sm:$0xf] }
 0x323   : > { %1921 = vmatpush.bf16.msra.mxu2 %v3750_v22  ;;  %v3942_v4 = vor.u32 %v4456_v24, %v3941_v39  ;;  %v3989_v19 = vld [vmem:[%s6379_s3 + $0x300] sm:$0xf]  ;;  %v4468_v22 = vld [vmem:[%s6379_s3 + $0x304] sm:$0xf0]  ;;  %v3607_v61 = vld [vmem:[%s6379_s3 + $0x8] sm:$0xf0] }
 0x324   : > { %4602 = vrot.lane.b32.xlu1 %v4601_v42, %s6394_s24  ;;  %v1198_v54 = vpop.permute.xlu1 %1197  ;;  %v4377_v42 = vld [vmem:[%s6379_s3 + $0x34] sm:$0xf]  ;;  %v3610_v51 = vor.u32 %v4371_v57, %v3607_v61  ;;  %v3933_v31 = vld [vmem:[%s6379_s3 + $0x290] sm:$0xf]  ;;  %v3861_v9 = vld [vmem:[%s6379_s3 + $0x200] sm:$0xf] }
 0x325   : > { %v1205_v18 = vsel %vm833_vm4, %v5335_v55, %v1198_v54  ;;  %v3605_v55 = vld [vmem:[%s6379_s3] sm:$0xf]  ;;  %v1206_v21 = vsel %vm833_vm4, %v1198_v54, %v1200_v52  ;;  %v3965_v52 = vld [vmem:[%s6379_s3 + $0x2d0] sm:$0xf]  ;;  %v3634_v14 = vor.u32 %v4377_v42, %v3631_v47  ;;  %v4444_v54 = vld [vmem:[%s6379_s3 + $0x244] sm:$0xf0] }
 0x326   : > { %v5453_v35 = vmax.f32 %v1177_v25, %v1205_v18  ;;  %1240 = vrot.lane.b32.xlu0 %v5434_v12, %s6394_s24  ;;  %v3798_v25 = vor.u32 %v4420_v36, %v3797_v58  ;;  %1896 = vmatpush.bf16.msra.mxu0 %v3614_v17  ;;  %v3606_v23 = vor.u32 %v4372_v16, %v3605_v55  ;;  %v3957_v58 = vld [vmem:[%s6379_s3 + $0x2c0] sm:$0xf]  ;;  %v4460_v36 = vld [vmem:[%s6379_s3 + $0x2c4] sm:$0xf0]  ;;  %v4375_v17 = vld [vmem:[%s6379_s3 + $0x24] sm:$0xf]  ;;  %v1672_v55 = vunpack.c.l.b16 %v5571_v62 }
 0x327   : > { %v5492_v38 = vmax.f32 %v1178_v49, %v1206_v21  ;;  %1909 = vmatpush.bf16.msra.mxu1 %v3678_v40  ;;  %v3647_v49 = vld [vmem:[%s6379_s3 + $0x58] sm:$0xf0]  ;;  %v3966_v33 = vor.u32 %v4462_v60, %v3965_v52  ;;  %1922 = vmatpush.bf16.msra.mxu2 %v3742_v7  ;;  %v3734_v18 = vor.u32 %v4404_v46, %v3733_v8  ;;  %v1882_v16 = vsel %vm1880_vm9, 4294967295, %v4695_v3  ;;  %v3885_v3 = vld [vmem:[%s6379_s3 + $0x230] sm:$0xf] }
 0x328   : > { %1236 = vrot.lane.b32.xlu2 %v5453_v35, %s6394_s24  ;;  %1936 = vmatpush.bf16.msra.mxu3 %v3798_v25  ;;  %v3650_v41 = vor.u32 %v4381_v34, %v3647_v49  ;;  %v3894_v27 = vor.u32 %v4444_v54, %v3893_v5  ;;  %v3958_v40 = vor.u32 %v4460_v36, %v3957_v58  ;;  %v5582_v21 = vsel %vm1881_vm10, %v1882_v16, 0  ;;  %v3877_v34 = vld [vmem:[%s6379_s3 + $0x220] sm:$0xf]  ;;  %v4440_v49 = vld [vmem:[%s6379_s3 + $0x224] sm:$0xf0] }
 0x329   : > { %v1774_v25 = vpack.c.b16 %v1672_v55, %v1672_v55  ;;  %v3626_v26 = vor.u32 %v4375_v17, %v3623_v20  ;;  %v3886_v13 = vor.u32 %v4442_v11, %v3885_v3  ;;  %v4436_v43 = vld [vmem:[%s6379_s3 + $0x204] sm:$0xf0]  ;;  %v3925_v52 = vld [vmem:[%s6379_s3 + $0x280] sm:$0xf]  ;;  %v4401_v46 = vld [vmem:[%s6379_s3 + $0xf4] sm:$0xf] }
 0x32a   : > { %1897 = vmatpush.bf16.msra.mxu0 %v3606_v23  ;;  %v4452_v60 = vld [vmem:[%s6379_s3 + $0x284] sm:$0xf0]  ;;  %v4449_v54 = vld [vmem:[%s6379_s3 + $0x274] sm:$0xf]  ;;  %v3919_v58 = vld [vmem:[%s6379_s3 + $0x278] sm:$0xf0] }
 0x32b   : > { %1910 = vmatpush.bf16.msra.mxu1 %v3670_v63  ;;  %1923 = vmatpush.bf16.msra.mxu2 %v3734_v18  ;;  %v1885_v44 = vand.u32 %v5582_v21, %v1774_v25  ;;  %v3998_v63 = vor.u32 %v4470_v30, %v3997_v29  ;;  %v3926_v42 = vor.u32 %v4452_v60, %v3925_v52  ;;  %v4399_v16 = vld [vmem:[%s6379_s3 + $0xe4] sm:$0xf]  ;;  %v3719_v20 = vld [vmem:[%s6379_s3 + $0xe8] sm:$0xf0]  ;;  %v4433_v29 = vld [vmem:[%s6379_s3 + $0x1f4] sm:$0xf] }
 0x32c   : > { %1238 = vrot.lane.b32.xlu1 %v5492_v38, %s6394_s24  ;;  %1981 = vmatpush.bf16.msrb.mxu3 %v3666_v45  ;;  %v3949_v45 = vld [vmem:[%s6379_s3 + $0x2b0] sm:$0xf]  ;;  %v3922_v55 = vor.u32 %v4449_v54, %v3919_v58  ;;  %v3855_v30 = vld [vmem:[%s6379_s3 + $0x1f8] sm:$0xf0]  ;;  %v4445_v39 = vld [vmem:[%s6379_s3 + $0x254] sm:$0xf] }
 0x32d   : > { %v3950_v23 = vor.u32 %v4458_v59, %v3949_v45  ;;  %v4417_v45 = vld [vmem:[%s6379_s3 + $0x174] sm:$0xf]  ;;  %v3791_v59 = vld [vmem:[%s6379_s3 + $0x178] sm:$0xf0]  ;;  %v3847_v57 = vld [vmem:[%s6379_s3 + $0x1e8] sm:$0xf0] }
 0x32e   : > { %1942 = vmatpush.bf16.msrb.mxu0 %v3918_v10  ;;  %v4373_v10 = vld [vmem:[%s6379_s3 + $0x14] sm:$0xf]  ;;  %v3794_v24 = vor.u32 %v4417_v45, %v3791_v59  ;;  %v3775_v52 = vld [vmem:[%s6379_s3 + $0x158] sm:$0xf0]  ;;  %s6406_s24 = smov 126  }
 0x32f   : > { %1955 = vmatpush.bf16.msrb.mxu1 %v3982_v15  ;;  %1973 = vmatpush.bf16.msrb.mxu2 %v1885_v44  ;;  %v3615_v15 = vld [vmem:[%s6379_s3 + $0x18] sm:$0xf0]  ;;  %v4441_v54 = vld [vmem:[%s6379_s3 + $0x234] sm:$0xf] }
 0x330   : > { %1982 = vmatpush.bf16.msrb.mxu3 %v3658_v1  ;;  %v3618_v1 = vor.u32 %v4373_v10, %v3615_v15  ;;  %v4397_v15 = vld [vmem:[%s6379_s3 + $0xd4] sm:$0xf]  ;;  %v3839_v60 = vld [vmem:[%s6379_s3 + $0x1d8] sm:$0xf0] }
 0x331   : > { %v3887_v58 = vld [vmem:[%s6379_s3 + $0x238] sm:$0xf0]  ;;  %v4409_v59 = vld [vmem:[%s6379_s3 + $0x134] sm:$0xf] }
 0x332   : > { %1943 = vmatpush.bf16.msrb.mxu0 %v3910_v56  ;;  %v3990_v56 = vor.u32 %v4468_v22, %v3989_v19  ;;  %v3783_v22 = vld [vmem:[%s6379_s3 + $0x168] sm:$0xf0] }
 0x333   : > { %1956 = vmatpush.bf16.msrb.mxu1 %v3974_v53  ;;  %1974 = vmatpush.bf16.msrb.mxu2 %v3998_v63  ;;  %v3869_v53 = vld [vmem:[%s6379_s3 + $0x210] sm:$0xf] }
 0x334   : > { %1983 = vmatpush.bf16.msrb.mxu3 %v3650_v41  ;;  %v3878_v41 = vor.u32 %v4440_v49, %v3877_v34  ;;  %v3870_v2 = vor.u32 %v4438_v50, %v3869_v53  ;;  %v3711_v49 = vld [vmem:[%s6379_s3 + $0xd8] sm:$0xf0]  ;;  %v4395_v53 = vld [vmem:[%s6379_s3 + $0xc4] sm:$0xf]  ;;  %v3703_v50 = vld [vmem:[%s6379_s3 + $0xc8] sm:$0xf0] }
 0x335   : > { %v3714_v61 = vor.u32 %v4397_v15, %v3711_v49  ;;  %v4389_v15 = vld [vmem:[%s6379_s3 + $0x94] sm:$0xf]  ;;  %v3871_v49 = vld [vmem:[%s6379_s3 + $0x218] sm:$0xf0] }
 0x336   : > { %1944 = vmatpush.bf16.msrb.mxu0 %v3902_v6  ;;  %v3862_v6 = vor.u32 %v4436_v43, %v3861_v9  ;;  %v4413_v43 = vld [vmem:[%s6379_s3 + $0x154] sm:$0xf] }
 0x337   : > { %1957 = vmatpush.bf16.msrb.mxu1 %v3966_v33  ;;  %1975 = vmatpush.bf16.msrb.mxu2 %v3990_v56  ;;  %v4431_v56 = vld [vmem:[%s6379_s3 + $0x1e4] sm:$0xf] }
 0x338   : > { %1984 = vmatpush.bf16.msrb.mxu3 %v3642_v37  ;;  %v4454_v37 = vld [vmem:[%s6379_s3 + $0x294] sm:$0xf0]  ;;  %v3850_v9 = vor.u32 %v4431_v56, %v3847_v57  ;;  %v3815_v56 = vld [vmem:[%s6379_s3 + $0x1a8] sm:$0xf0] }
 0x339   : > { %v3934_v7 = vor.u32 %v4454_v37, %v3933_v31  ;;  %v4443_v31 = vld [vmem:[%s6379_s3 + $0x244] sm:$0xf] }
 0x33a   : > { %1945 = vmatpush.bf16.msrb.mxu0 %v3894_v27 }
 0x33b   : > { %1958 = vmatpush.bf16.msrb.mxu1 %v3958_v40 }
 0x33c   : > { %1985 = vmatpush.bf16.msrb.mxu3 %v3634_v14  ;;  %v3727_v14 = vld [vmem:[%s6379_s3 + $0xf8] sm:$0xf0] }
 0x33d   : > { %v3730_v40 = vor.u32 %v4401_v46, %v3727_v14 }
 0x33e   : > { %1946 = vmatpush.bf16.msrb.mxu0 %v3886_v13  ;;  %v3722_v13 = vor.u32 %v4399_v16, %v3719_v20 }
 0x33f   : > { %1959 = vmatpush.bf16.msrb.mxu1 %v3950_v23 }
 0x340   : > { %1986 = vmatpush.bf16.msrb.mxu3 %v3626_v26 }
 0x342   : > { %1947 = vmatpush.bf16.msrb.mxu0 %v3878_v41  ;;  %v3903_v41 = vld [vmem:[%s6379_s3 + $0x258] sm:$0xf0] }
 0x343   : > { %1960 = vmatpush.bf16.msrb.mxu1 %v3942_v4  ;;  %v3858_v4 = vor.u32 %v4433_v29, %v3855_v30 }
 0x344   : > { %1987 = vmatpush.bf16.msrb.mxu3 %v3618_v1 }
 0x346   : > { %1948 = vmatpush.bf16.msrb.mxu0 %v3870_v2  ;;  %v3895_v2 = vld [vmem:[%s6379_s3 + $0x248] sm:$0xf0] }
 0x347   : > { %1961 = vmatpush.bf16.msrb.mxu1 %v3934_v7 }
 0x348   : > { %1988 = vmatpush.bf16.msrb.mxu3 %v3610_v51  ;;  %v3906_v51 = vor.u32 %v4445_v39, %v3903_v41 }
 0x34a   : > { %1949 = vmatpush.bf16.msrb.mxu0 %v3862_v6  ;;  %v4429_v6 = vld [vmem:[%s6379_s3 + $0x1d4] sm:$0xf] }
 0x34b   : > { %1962 = vmatpush.bf16.msrb.mxu1 %v3926_v42  ;;  %v3706_v42 = vor.u32 %v4395_v53, %v3703_v50  ;;  %v3671_v53 = vld [vmem:[%s6379_s3 + $0x88] sm:$0xf0]  ;;  %v4435_v50 = vld [vmem:[%s6379_s3 + $0x204] sm:$0xf] }
 0x382   : > { %v5660_v5 = vpop.permute.xlu2 %1236 }
 0x390   : > { %v4598_v47 = vpop.permute.xlu0 %4597 }
 0x391   : > { %v4600_v33 = vunpack.i.h.bf16 %v4598_v47  ;;  %v4599_v8 = vunpack.i.l.bf16 %v4598_v47  ;;  %v3898_v47 = vor.u32 %v4443_v31, %v3895_v2  ;;  %v3863_v31 = vld [vmem:[%s6379_s3 + $0x208] sm:$0xf0] }
 0x393   : > { %v1245_v36 = vsel %vm1242_vm11, %v4599_v8, %v4600_v33  ;;  %v1246_v18 = vsel %vm1242_vm11, %v4600_v33, %v5660_v5  ;;  %v4393_v33 = vld [vmem:[%s6379_s3 + $0xb4] sm:$0xf] }
 0x394   : > { %v1258_v27 = vmax.f32 %v5351_v28, %v1245_v36  ;;  %v1259_v17 = vmax.f32 %v5355_v48, %v1246_v18  ;;  %v4447_v28 = vld [vmem:[%s6379_s3 + $0x264] sm:$0xf]  ;;  %v3911_v48 = vld [vmem:[%s6379_s3 + $0x268] sm:$0xf0]  ;;  %v3778_v36 = vor.u32 %v4413_v43, %v3775_v52  ;;  %v3842_v18 = vor.u32 %v4429_v6, %v3839_v60  ;;  %v4405_v43 = vld [vmem:[%s6379_s3 + $0x114] sm:$0xf] }
 0x395   : > { %v3914_v10 = vor.u32 %v4447_v28, %v3911_v48  ;;  %v4391_v28 = vld [vmem:[%s6379_s3 + $0xa4] sm:$0xf]  ;;  %v3743_v52 = vld [vmem:[%s6379_s3 + $0x118] sm:$0xf0]  ;;  %v4421_v6 = vld [vmem:[%s6379_s3 + $0x194] sm:$0xf] }
 0x396   : > { %v4603_v25 = vpop.permute.xlu1 %4602  ;;  %v5682_v26 = vpack.c.bf16 %v1258_v27, %v1258_v27  ;;  %v5684_v44 = vpack.c.bf16 %v1259_v17, %v1259_v17  ;;  %v4411_v27 = vld [vmem:[%s6379_s3 + $0x144] sm:$0xf]  ;;  %v3807_v60 = vld [vmem:[%s6379_s3 + $0x198] sm:$0xf0] }
 0x397   : > { %v4605_v3 = vunpack.i.h.bf16 %v4603_v25  ;;  %v4604_v11 = vunpack.i.l.bf16 %v4603_v25  ;;  %v3890_v25 = vor.u32 %v4441_v54, %v3887_v58  ;;  %v4463_v54 = vld [vmem:[%s6379_s3 + $0x2e4] sm:$0xf]  ;;  %v3975_v58 = vld [vmem:[%s6379_s3 + $0x2e8] sm:$0xf0] }
 0x398   : > { %1924 = vmatmul.bf16.vlgmr.msra.gmra.mxu2 %v5682_v26  ;;  %1937 = vmatmul.bf16.vlgmr.msra.gmra.mxu3 %v5684_v44  ;;  %v1241_v37 = vpop.permute.xlu0 %1240 }
 0x399   : > { %v1243_v23 = vsel %vm1242_vm11, %v4604_v11, %v4605_v3  ;;  %v1244_v63 = vsel %vm1242_vm11, %v4605_v3, %v4599_v8  ;;  %1994 = vmatpush.bf16.msra.mxu2 %v3730_v40  ;;  %2033 = vmatpush.bf16.msra.mxu3 %v3922_v55  ;;  %v3695_v8 = vld [vmem:[%s6379_s3 + $0xb8] sm:$0xf0]  ;;  %v1262_v46 = vmax.f32 %v5434_v12, %v1241_v37  ;;  %v3767_v12 = vld [vmem:[%s6379_s3 + $0x148] sm:$0xf0]  ;;  %v4427_v40 = vld [vmem:[%s6379_s3 + $0x1c4] sm:$0xf] }
 0x39a   : > { %v1256_v1 = vmax.f32 %v5403_v32, %v1243_v23  ;;  %v1257_v34 = vmax.f32 %v5407_v0, %v1244_v63  ;;  %v4415_v32 = vld [vmem:[%s6379_s3 + $0x164] sm:$0xf]  ;;  %v3698_v17 = vor.u32 %v4393_v33, %v3695_v8  ;;  %v3831_v55 = vld [vmem:[%s6379_s3 + $0x1c8] sm:$0xf0]  ;;  %v3770_v45 = vor.u32 %v4411_v27, %v3767_v12  ;;  %v3759_v23 = vld [vmem:[%s6379_s3 + $0x138] sm:$0xf0] }
 0x39b   : > { %v3786_v7 = vor.u32 %v4415_v32, %v3783_v22  ;;  %v5792_v48 = vpack.c.bf16 %v1262_v46, %v1262_v46  ;;  %v3687_v3 = vld [vmem:[%s6379_s3 + $0xa8] sm:$0xf0]  ;;  %v4425_v63 = vld [vmem:[%s6379_s3 + $0x1b4] sm:$0xf]  ;;  %v3762_v39 = vor.u32 %v4409_v59, %v3759_v23  ;;  %v4423_v22 = vld [vmem:[%s6379_s3 + $0x1a4] sm:$0xf]  ;;  %v3866_v33 = vor.u32 %v4435_v50, %v3863_v31 }
 0x39c   : > { %v1263_v19 = vpack.c.bf16 %v1256_v1, %v1256_v1  ;;  %v5725_v0 = vpack.c.bf16 %v1257_v34, %v1257_v34  ;;  %v3879_v11 = vld [vmem:[%s6379_s3 + $0x228] sm:$0xf0]  ;;  %v3679_v1 = vld [vmem:[%s6379_s3 + $0x98] sm:$0xf0]  ;;  %v4437_v34 = vld [vmem:[%s6379_s3 + $0x214] sm:$0xf]  ;;  %v3746_v46 = vor.u32 %v4405_v43, %v3743_v52  ;;  %v3978_v12 = vor.u32 %v4463_v54, %v3975_v58 }
 0x39d   : > { %1995 = vmatpush.bf16.msra.mxu2 %v3722_v13  ;;  %2034 = vmatpush.bf16.msra.mxu3 %v3914_v10  ;;  %v3834_v13 = vor.u32 %v4427_v40, %v3831_v55  ;;  %v3823_v10 = vld [vmem:[%s6379_s3 + $0x1b8] sm:$0xf0]  ;;  %v3682_v57 = vor.u32 %v4389_v15, %v3679_v1  ;;  %v3799_v27 = vld [vmem:[%s6379_s3 + $0x188] sm:$0xf0] }
 0x39e   : > { %1898 = vmatmul.bf16.vlgmr.msra.gmra.mxu0 %v1263_v19  ;;  %1911 = vmatmul.bf16.vlgmr.msra.gmra.mxu1 %v5725_v0  ;;  %v1239_v14 = vpop.permute.xlu1 %1238  ;;  %v3826_v41 = vor.u32 %v4425_v63, %v3823_v10  ;;  %v3991_v59 = vld [vmem:[%s6379_s3 + $0x308] sm:$0xf0]  ;;  %v3951_v23 = vld [vmem:[%s6379_s3 + $0x2b8] sm:$0xf0] }
 0x39f   : > { %2007 = vmatpush.bf16.msra.mxu0 %v3794_v24  ;;  %2020 = vmatpush.bf16.msra.mxu1 %v3858_v4  ;;  %v1247_v16 = vsel %vm1242_vm11, %v5660_v5, %v1239_v14  ;;  %v1248_v20 = vsel %vm1242_vm11, %v1239_v14, %v1241_v37  ;;  %v4439_v5 = vld [vmem:[%s6379_s3 + $0x224] sm:$0xf]  ;;  %v3818_v37 = vor.u32 %v4423_v22, %v3815_v56  ;;  %v3935_v15 = vld [vmem:[%s6379_s3 + $0x298] sm:$0xf0] }
 0x3a0   : > { %v1260_v29 = vmax.f32 %v5453_v35, %v1247_v16  ;;  %v1261_v30 = vmax.f32 %v5492_v38, %v1248_v20  ;;  %v3690_v35 = vor.u32 %v4391_v28, %v3687_v3  ;;  %v3882_v38 = vor.u32 %v4439_v5, %v3879_v11  ;;  %v4407_v24 = vld [vmem:[%s6379_s3 + $0x124] sm:$0xf]  ;;  %v4461_v16 = vld [vmem:[%s6379_s3 + $0x2d4] sm:$0xf]  ;;  %v3967_v20 = vld [vmem:[%s6379_s3 + $0x2d8] sm:$0xf0] }
 0x3a1   : > { %1996 = vmatpush.bf16.msra.mxu2 %v3714_v61  ;;  %2035 = vmatpush.bf16.msra.mxu3 %v3906_v51  ;;  %v3874_v61 = vor.u32 %v4437_v34, %v3871_v49  ;;  %v4387_v51 = vld [vmem:[%s6379_s3 + $0x84] sm:$0xf]  ;;  %v3810_v14 = vor.u32 %v4421_v6, %v3807_v60  ;;  %v4469_v28 = vld [vmem:[%s6379_s3 + $0x314] sm:$0xf]  ;;  %v3999_v3 = vld [vmem:[%s6379_s3 + $0x318] sm:$0xf0]  ;;  %v3970_v5 = vor.u32 %v4461_v16, %v3967_v20 }
 0x3a2   : > { %v1267_v4 = vpack.c.bf16 %v1260_v29, %v1260_v29  ;;  %v5834_v32 = vpack.c.bf16 %v1261_v30, %v1261_v30  ;;  %v4459_v11 = vld [vmem:[%s6379_s3 + $0x2c4] sm:$0xf]  ;;  %v4457_v30 = vld [vmem:[%s6379_s3 + $0x2b4] sm:$0xf]  ;;  %v3927_v49 = vld [vmem:[%s6379_s3 + $0x288] sm:$0xf0] }
 0x3a3   : > { %2008 = vmatpush.bf16.msra.mxu0 %v3786_v7  ;;  %2021 = vmatpush.bf16.msra.mxu1 %v3850_v9  ;;  %v4465_v7 = vld [vmem:[%s6379_s3 + $0x2f4] sm:$0xf]  ;;  %v3983_v9 = vld [vmem:[%s6379_s3 + $0x2f8] sm:$0xf0]  ;;  %v3954_v10 = vor.u32 %v4457_v30, %v3951_v23  ;;  %v4451_v34 = vld [vmem:[%s6379_s3 + $0x284] sm:$0xf] }
 0x3a4   : > { %v3986_v8 = vor.u32 %v4465_v7, %v3983_v9  ;;  %v4473_v20 = vld [vmem:[%s6380_s4 + $0x10] sm:$0xff]  ;;  %v4478_v23 = vld [vmem:[%s6380_s4 + $0x38] sm:$0xff] }
 0x3a5   : > { %1997 = vmatpush.bf16.msra.mxu2 %v3706_v42  ;;  %2036 = vmatpush.bf16.msra.mxu3 %v3898_v47  ;;  %v1673_v42 = vunpack.c.h.b16 %v5571_v62  ;;  %v3674_v47 = vor.u32 %v4387_v51, %v3671_v53  ;;  %v4403_v62 = vld [vmem:[%s6379_s3 + $0x104] sm:$0xf]  ;;  %v4477_v30 = vld [vmem:[%s6380_s4 + $0x30] sm:$0xff] }
 0x3a7   : > { %2009 = vmatpush.bf16.msra.mxu0 %v3778_v36  ;;  %2022 = vmatpush.bf16.msra.mxu1 %v3842_v18  ;;  %v3735_v36 = vld [vmem:[%s6379_s3 + $0x108] sm:$0xf0]  ;;  %v4419_v18 = vld [vmem:[%s6379_s3 + $0x184] sm:$0xf] }
 0x3a8   : > { %4003 = vmatmul.msk.bf16.vlgmr.msrb.gmra.mxu2 %vm1876_vm12, %v5792_v48  ;;  %1989 = vmatmul.bf16.vlgmr.msrb.gmra.mxu3 %v1263_v19  ;;  %v3751_v19 = vld [vmem:[%s6379_s3 + $0x128] sm:$0xf0]  ;;  %v3738_v40 = vor.u32 %v4403_v62, %v3735_v36  ;;  %v3802_v55 = vor.u32 %v4419_v18, %v3799_v27 }
 0x3a9   : > { %1998 = vmatpush.bf16.msra.mxu2 %v3698_v17  ;;  %2037 = vmatpush.bf16.msra.mxu3 %v3890_v25  ;;  %v3754_v2 = vor.u32 %v4407_v24, %v3751_v19  ;;  %v1775_v17 = vpack.c.b16 %v1673_v42, %v1673_v42  ;;  %v4472_v18 = vld [vmem:[%s6380_s4 + $0x8] sm:$0xff] }
 0x3ab   : > { %2010 = vmatpush.bf16.msra.mxu0 %v3770_v45  ;;  %2023 = vmatpush.bf16.msra.mxu1 %v3834_v13  ;;  %v1888_v25 = vand.u32 %v5582_v21, %v1775_v17  ;;  %v4002_v45 = vor.u32 %v4469_v28, %v3999_v3  ;;  %v4467_v13 = vld [vmem:[%s6379_s3 + $0x304] sm:$0xf] }
 0x3ac   : > { %v3994_v63 = vor.u32 %v4467_v13, %v3991_v59  ;;  %v4474_v13 = vld [vmem:[%s6380_s4 + $0x18] sm:$0xff]  ;;  %v4475_v59 = vld [vmem:[%s6380_s4 + $0x20] sm:$0xff] }
 0x3ad   : > { %1999 = vmatpush.bf16.msra.mxu2 %v3690_v35  ;;  %2038 = vmatpush.bf16.msra.mxu3 %v3882_v38  ;;  %v4455_v35 = vld [vmem:[%s6379_s3 + $0x2a4] sm:$0xf]  ;;  %v4453_v38 = vld [vmem:[%s6379_s3 + $0x294] sm:$0xf] }
 0x3ae   : > { %1950 = vmatmul.bf16.vlgmr.msrb.gmra.mxu0 %v1267_v4  ;;  %1963 = vmatmul.bf16.vlgmr.msrb.gmra.mxu1 %v5834_v32  ;;  %v3938_v1 = vor.u32 %v4453_v38, %v3935_v15 }
 0x3af   : > { %2011 = vmatpush.bf16.msra.mxu0 %v3762_v39  ;;  %2024 = vmatpush.bf16.msra.mxu1 %v3826_v41  ;;  %v3930_v39 = vor.u32 %v4451_v34, %v3927_v49 }
 0x3b1   : > { %2000 = vmatpush.bf16.msra.mxu2 %v3682_v57  ;;  %2039 = vmatpush.bf16.msra.mxu3 %v3874_v61 }
 0x3b3   : > { %2012 = vmatpush.bf16.msra.mxu0 %v3754_v2  ;;  %2025 = vmatpush.bf16.msra.mxu1 %v3818_v37 }
 0x3b5   : > { %2001 = vmatpush.bf16.msra.mxu2 %v3674_v47  ;;  %2040 = vmatpush.bf16.msra.mxu3 %v3866_v33  ;;  %v4471_v33 = vld [vmem:[%s6380_s4] sm:$0xff] }
 0x3b7   : > { %2013 = vmatpush.bf16.msra.mxu0 %v3746_v46  ;;  %2026 = vmatpush.bf16.msra.mxu1 %v3810_v14 }
 0x3b8   : > { %2002 = vmatmul.bf16.vlgmr.msra.gmra.mxu2 %v5725_v0  ;;  %2041 = vmatmul.bf16.vlgmr.msra.gmra.mxu3 %v1267_v4  ;;  %v3959_v0 = vld [vmem:[%s6379_s3 + $0x2c8] sm:$0xf0] }
 0x3b9   : > { %2046 = vmatpush.bf16.msrb.mxu2 %v3986_v8  ;;  %v3962_v29 = vor.u32 %v4459_v11, %v3959_v0 }
 0x3bb   : > { %2014 = vmatpush.bf16.msra.mxu0 %v3738_v40  ;;  %2027 = vmatpush.bf16.msra.mxu1 %v3802_v55 }
 0x3bd   : > { %2047 = vmatpush.bf16.msrb.mxu2 %v3978_v12 }
 0x3be   : > { %2015 = vmatmul.bf16.vlgmr.msra.gmra.mxu0 %v5682_v26  ;;  %2028 = vmatmul.bf16.vlgmr.msra.gmra.mxu1 %v5684_v44  ;;  %v3943_v26 = vld [vmem:[%s6379_s3 + $0x2a8] sm:$0xf0] }
 0x3bf   : > { %2064 = vmatpush.bf16.msrb.mxu0 %v1888_v25  ;;  %v3946_v44 = vor.u32 %v4455_v35, %v3943_v26 }
 0x3c1   : > { %2048 = vmatpush.bf16.msrb.mxu2 %v3970_v5 }
 0x3c3   : > { %2065 = vmatpush.bf16.msrb.mxu0 %v4002_v45 }
 0x3c5   : > { %2049 = vmatpush.bf16.msrb.mxu2 %v3962_v29  ;;  %v4476_v29 = vld [vmem:[%s6380_s4 + $0x28] sm:$0xff] }
 0x3c7   : > { %2066 = vmatpush.bf16.msrb.mxu0 %v3994_v63 }
 0x3c9   : > { %2050 = vmatpush.bf16.msrb.mxu2 %v3954_v10 }
 0x3cd   : > { %2051 = vmatpush.bf16.msrb.mxu2 %v3946_v44 }
 0x3ce   : > { %4004 = vmatmul.msk.bf16.vlgmr.msrb.gmra.mxu0 %vm1876_vm12, %v5792_v48 }
 0x3d1   : > { %2052 = vmatpush.bf16.msrb.mxu2 %v3938_v1 }
 0x3d5   : > { %2053 = vmatpush.bf16.msrb.mxu2 %v3930_v39 }
 0x3d8   : > { %2054 = vmatmul.bf16.vlgmr.msrb.gmra.mxu2 %v5834_v32 }
 0x41b   : > { %v1899_v41 = vpop.f32.mrf.mxu0  ;;  %v1912_v24 = vpop.f32.mrf.mxu1 }
 0x41c   : > { %v1925_v4 = vpop.f32.mrf.mxu2  ;;  %v1938_v19 = vpop.f32.mrf.mxu3  ;;  %v1913_v22 = vadd.f32 %v1912_v24, %v1899_v41 }
 0x41e   : > { %v1926_v53 = vadd.f32 %v1925_v4, %v1913_v22 }
 0x420   : > { %v1939_v50 = vadd.f32 %v1938_v19, %v1926_v53 }
 0x423   : > { %v1901_v56 = vpop.f32.mrf.mxu0  ;;  %v1914_v57 = vpop.f32.mrf.mxu1 }
 0x424   : > { %v1927_v61 = vpop.f32.mrf.mxu2  ;;  %v1940_v51 = vpop.f32.mrf.mxu3 }
 0x42b   : > { %v1951_v31 = vpop.f32.mrf.mxu0  ;;  %v1964_v2 = vpop.f32.mrf.mxu1 }
 0x42c   : > { %v1952_v37 = vadd.f32 %v1951_v31, %v1939_v50  ;;  %v1977_v7 = vpop.f32.mrf.mxu2  ;;  %v1990_v48 = vpop.f32.mrf.mxu3 }
 0x42e   : > { %v1965_v9 = vadd.f32 %v1964_v2, %v1952_v37 }
 0x430   : > { %v1978_v43 = vadd.f32 %v1977_v7, %v1965_v9 }
 0x432   : > { %v2090_v52 = vpack.c.bf16 %v1978_v43, %v1978_v43 }
 0x433   : > { %v1953_v32 = vpop.f32.mrf.mxu0  ;;  %v1966_v6 = vpop.f32.mrf.mxu1 }
 0x434   : > { %v2166_v60 = vsel %vm1881_vm10, %v2090_v52, 0  ;;  %v1979_v42 = vpop.f32.mrf.mxu2  ;;  %v1992_v47 = vpop.f32.mrf.mxu3  ;;  %v4479_v32 = vld [vmem:[%s6380_s4 + $0x40] sm:$0xff] }
 0x435   : > { %2178 = vmatpush.bf16.msrb.mxu1 %v2166_v60 }
 0x438   : > { %4041 = vmatmul.msk.bf16.vlgmr.msrb.gmra.mxu1 %vm2137_vm13, %v4471_v33 }
 0x43b   : > { %v2016_v8 = vpop.f32.mrf.mxu0  ;;  %v2029_v14 = vpop.f32.mrf.mxu1 }
 0x43c   : > { %v2003_v46 = vpop.f32.mrf.mxu2  ;;  %v2042_v54 = vpop.f32.mrf.mxu3 }
 0x43d   : > { %v2004_v17 = vadd.f32 %v2003_v46, %v1990_v48 }
 0x43f   : > { %v2017_v40 = vadd.f32 %v2016_v8, %v2004_v17 }
 0x441   : > { %v2030_v55 = vadd.f32 %v2029_v14, %v2017_v40 }
 0x443   : > { %v2018_v58 = vpop.f32.mrf.mxu0  ;;  %v2031_v36 = vpop.f32.mrf.mxu1  ;;  %v2043_v25 = vadd.f32 %v2042_v54, %v2030_v55 }
 0x444   : > { %v2005_v62 = vpop.f32.mrf.mxu2  ;;  %v2044_v27 = vpop.f32.mrf.mxu3 }
 0x448   : > { %4042 = vmatmul.msk.bf16.gmra.mxu1 %vm2137_vm13, %v4472_v18 }
 0x44b   : > { %v2068_v12 = vpop.f32.mrf.mxu0 }
 0x453   : > { %v2070_v16 = vpop.f32.mrf.mxu0 }
 0x458   : > { %4043 = vmatmul.msk.bf16.gmra.mxu1 %vm2137_vm13, %v4473_v20 }
 0x45b   : > { %v2055_v28 = vpop.f32.mrf.mxu2 }
 0x45c   : > { %v2056_v3 = vadd.f32 %v2055_v28, %v2043_v25 }
 0x45e   : > { %v2069_v5 = vadd.f32 %v2068_v12, %v2056_v3 }
 0x460   : > { %v2091_v11 = vpack.c.bf16 %v2069_v5, %v2069_v5 }
 0x462   : > { %v2169_v0 = vsel %vm1881_vm10, %v2091_v11, 0 }
 0x463   : > { %v2057_v45 = vpop.f32.mrf.mxu2  ;;  %2232 = vmatpush.bf16.msrb.mxu3 %v2169_v0  ;;  %v2458_v0 = vld [vmem:[%s6381_s5] sm:$0xff] }
 0x466   : > { %4050 = vmatmul.msk.bf16.vlgmr.msrb.gmra.mxu3 %vm2137_vm13, %v4471_v33 }
 0x468   : > { %4044 = vmatmul.msk.bf16.gmra.mxu1 %vm2137_vm13, %v4474_v13 }
 0x476   : > { %4051 = vmatmul.msk.bf16.gmra.mxu3 %vm2137_vm13, %v4472_v18 }
 0x478   : > { %4045 = vmatmul.msk.bf16.gmra.mxu1 %vm2137_vm13, %v4475_v59 }
 0x486   : > { %4052 = vmatmul.msk.bf16.gmra.mxu3 %vm2137_vm13, %v4473_v20 }
 0x488   : > { %4046 = vmatmul.msk.bf16.gmra.mxu1 %vm2137_vm13, %v4476_v29 }
 0x496   : > { %4053 = vmatmul.msk.bf16.gmra.mxu3 %vm2137_vm13, %v4474_v13 }
 0x498   : > { %4047 = vmatmul.msk.bf16.gmra.mxu1 %vm2137_vm13, %v4477_v30 }
 0x4a6   : > { %4054 = vmatmul.msk.bf16.gmra.mxu3 %vm2137_vm13, %v4475_v59 }
 0x4a8   : > { %4048 = vmatmul.msk.bf16.gmra.mxu1 %vm2137_vm13, %v4478_v23 }
 0x4b5   : > { %v5990_v63 = vpop.f32.mrf.mxu1 }
 0x4b6   : > { %4055 = vmatmul.msk.bf16.gmra.mxu3 %vm2137_vm13, %v4476_v29 }
 0x4b8   : > { %4049 = vmatmul.msk.bf16.gmra.mxu1 %vm2137_vm13, %v4479_v32 }
 0x4bd   : > { %v5992_v10 = vpop.f32.mrf.mxu1 }
 0x4c5   : > { %v2185_v35 = vpop.f32.mrf.mxu1 }
 0x4c6   : > { %4056 = vmatmul.msk.bf16.gmra.mxu3 %vm2137_vm13, %v4477_v30 }
 0x4cd   : > { %v5995_v26 = vpop.f32.mrf.mxu1 }
 0x4d5   : > { %v5998_v44 = vpop.f32.mrf.mxu1 }
 0x4d6   : > { %4057 = vmatmul.msk.bf16.gmra.mxu3 %vm2137_vm13, %v4478_v23 }
 0x4dd   : > { %v6000_v38 = vpop.f32.mrf.mxu1 }
 0x4e5   : > { %v2195_v15 = vpop.f32.mrf.mxu1 }
 0x4e6   : > { %4058 = vmatmul.msk.bf16.gmra.mxu3 %vm2137_vm13, %v4479_v32 }
 0x4e9   : > { %v6002_v1 = vpop.f32.mrf.mxu3 }
 0x4ed   : > { %v2197_v34 = vpop.f32.mrf.mxu1 }
 0x4f1   : > { %v6004_v49 = vpop.f32.mrf.mxu3 }
 0x4f5   : > { %v6006_v39 = vpop.f32.mrf.mxu1 }
 0x4f9   : > { %v2239_v41 = vpop.f32.mrf.mxu3 }
 0x4fd   : > { %v6008_v24 = vpop.f32.mrf.mxu1 }
 0x501   : > { %v2241_v4 = vpop.f32.mrf.mxu3 }
 0x505   : > { %v2205_v19 = vpop.f32.mrf.mxu1 }
 0x509   : > { %v2244_v22 = vpop.f32.mrf.mxu3 }
 0x50d   : > { %v2207_v56 = vpop.f32.mrf.mxu1 }
 0x511   : > { %v2246_v57 = vpop.f32.mrf.mxu3 }
 0x515   : > { %v2210_v61 = vpop.f32.mrf.mxu1 }
 0x519   : > { %v2249_v51 = vpop.f32.mrf.mxu3 }
 0x51d   : > { %v2212_v53 = vpop.f32.mrf.mxu1 }
 0x521   : > { %v2251_v50 = vpop.f32.mrf.mxu3 }
 0x525   : > { %v2215_v31 = vpop.f32.mrf.mxu1 }
 0x526   : > { %2350 = vrot.lane.b32.xlu1 %v2215_v31, %s6405_s16 }
 0x529   : > { %v6010_v2 = vpop.f32.mrf.mxu3 }
 0x52d   : > { %v2217_v6 = vpop.f32.mrf.mxu1 }
 0x52e   : > { %2311 = vrot.lane.b32.xlu1 %v2251_v50, %s4704_s22 }
 0x531   : > { %v6013_v37 = vpop.f32.mrf.mxu3 }
 0x535   : > { %v2220_v30 = vpop.f32.mrf.mxu1 }
 0x536   : > { %2305 = vrot.lane.b32.xlu1 %v2195_v15, %s4704_s22 }
 0x539   : > { %v2259_v7 = vpop.f32.mrf.mxu3 }
 0x53e   : > { %2332 = vrot.lane.b32.xlu1 %v2207_v56, %s6405_s16 }
 0x541   : > { %v2261_v48 = vpop.f32.mrf.mxu3 }
 0x549   : > { %v2264_v9 = vpop.f32.mrf.mxu3 }
 0x551   : > { %v2266_v43 = vpop.f32.mrf.mxu3 }
 0x559   : > { %v2269_v52 = vpop.f32.mrf.mxu3 }
 0x55a   : > { %2352 = vrot.lane.b32.xlu2 %v2269_v52, %s6405_s16 }
 0x561   : > { %v2271_v60 = vpop.f32.mrf.mxu3 }
 0x562   : > { %2356 = vrot.lane.b32.xlu0 %v2271_v60, %s6405_s16  ;;  %2354 = vrot.lane.b32.xlu2 %v2217_v6, %s6405_s16 }
 0x569   : > { %v2274_v5 = vpop.f32.mrf.mxu3 }
 0x56a   : > { %2307 = vrot.lane.b32.xlu0 %v2249_v51, %s4704_s22  ;;  %2330 = vrot.lane.b32.xlu2 %v2259_v7, %s6405_s16 }
 0x571   : > { %v2276_v11 = vpop.f32.mrf.mxu3 }
 0x572   : > { %2334 = vrot.lane.b32.xlu0 %v2261_v48, %s6405_s16  ;;  %2309 = vrot.lane.b32.xlu2 %v2197_v34, %s4704_s22 }
 0x57a   : > { %2328 = vrot.lane.b32.xlu0 %v2205_v19, %s6405_s16 }
 0x598   : > { %v2351_v42 = vpop.permute.xlu1 %2350 }
 0x5a0   : > { %v2312_v12 = vpop.permute.xlu1 %2311 }
 0x5a1   : > { %v2323_v40 = vadd.f32 %v2312_v12, %v2246_v57 }
 0x5a8   : > { %v2306_v16 = vpop.permute.xlu1 %2305 }
 0x5b0   : > { %v2333_v23 = vpop.permute.xlu1 %2332 }
 0x5b4   : > { %v2353_v47 = vpop.permute.xlu2 %2352 }
 0x5b5   : > { %v2358_v33 = vsel %vm833_vm4, %v2351_v42, %v2353_v47  ;;  %v2365_v8 = vadd.f32 %v2353_v47, %v2264_v9 }
 0x5b6   : > { %v2364_v46 = vadd.f32 %v2358_v33, %v2210_v61 }
 0x5b7   : > { %2396 = vrot.lane.b32.xlu2 %v2365_v8, %s4705_s17 }
 0x5b8   : > { %2394 = vrot.lane.b32.xlu1 %v2364_v46, %s4705_s17 }
 0x5bc   : > { %v2355_v14 = vpop.permute.xlu2 %2354 }
 0x5c0   : > { %2289 = vrot.lane.b32.xlu1 %v2241_v4, %s6405_s16  ;;  %v2459_v4 = vld [vmem:[%s6381_s5 + $0x8] sm:$0xff] }
 0x5c4   : > { %v2331_v27 = vpop.permute.xlu2 %2330 }
 0x5c5   : > { %v2343_v45 = vadd.f32 %v2331_v27, %v6010_v2 }
 0x5c8   : > { %2283 = vrot.lane.b32.xlu1 %v2185_v35, %s6405_s16 }
 0x5cc   : > { %v2310_v55 = vpop.permute.xlu2 %2309 }
 0x5cd   : > { %v2315_v20 = vsel %vm2313_vm14, %v2310_v55, %v2312_v12 }
 0x5ce   : > { %v2322_v28 = vadd.f32 %v2315_v20, %v6000_v38 }
 0x5d0   : > { %2442 = vrot.lane.b32.xlu1 %v2274_v5, %s6407_s15 }
 0x5d4   : > { %v2357_v54 = vpop.permute.xlu0 %2356 }
 0x5d5   : > { %v2359_v58 = vsel %vm833_vm4, %v2355_v14, %v2357_v54  ;;  %v2367_v62 = vadd.f32 %v2357_v54, %v2266_v43 }
 0x5d6   : > { %v2366_v36 = vadd.f32 %v2359_v58, %v2212_v53 }
 0x5d7   : > { %2400 = vrot.lane.b32.xlu0 %v2367_v62, %s4705_s17 }
 0x5d8   : > { %2398 = vrot.lane.b32.xlu2 %v2366_v36, %s4705_s17 }
 0x5dc   : > { %v2308_v18 = vpop.permute.xlu0 %2307 }
 0x5dd   : > { %v2321_v17 = vadd.f32 %v2308_v18, %v2244_v22  ;;  %v2314_v25 = vsel %vm2313_vm14, %v2306_v16, %v2308_v18 }
 0x5de   : > { %v2320_v3 = vadd.f32 %v2314_v25, %v5998_v44 }
 0x5df   : > { %2285 = vrot.lane.b32.xlu0 %v2239_v41, %s6405_s16 }
 0x5e0   : > { %2374 = vrot.lane.b32.xlu2 %v2321_v17, %s6406_s24 }
 0x5e4   : > { %v2335_v29 = vpop.permute.xlu0 %2334 }
 0x5e5   : > { %v2345_v19 = vadd.f32 %v2335_v29, %v6013_v37  ;;  %v2337_v57 = vsel %vm833_vm4, %v2333_v23, %v2335_v29 }
 0x5e7   : > { %2378 = vrot.lane.b32.xlu0 %v2323_v40, %s6406_s24 }
 0x5e8   : > { %2287 = vrot.lane.b32.xlu2 %v5995_v26, %s6405_s16  ;;  %v2222_v26 = vpop.f32.mrf.mxu1 }
 0x5ec   : > { %v2329_v35 = vpop.permute.xlu0 %2328 }
 0x5ed   : > { %v2336_v44 = vsel %vm833_vm4, %v2329_v35, %v2331_v27 }
 0x5ee   : > { %v2342_v38 = vadd.f32 %v2336_v44, %v6006_v39  ;;  %v2344_v39 = vadd.f32 %v2337_v57, %v6008_v24 }
 0x5ef   : > { %2376 = vrot.lane.b32.xlu0 %v2322_v28, %s6406_s24 }
 0x5f0   : > { %2372 = vrot.lane.b32.xlu2 %v2320_v3, %s6406_s24 }
 0x5f8   : > { %2446 = vrot.lane.b32.xlu2 %v2276_v11, %s6407_s15 }
 0x600   : > { %2462 = vperm.xlu2 %4606, %v2458_v0  }
 0x608   : > { %2444 = vrot.lane.b32.xlu2 %v2222_v26, %s6407_s15 }
 0x611   : > { %v2397_v13 = vpop.permute.xlu2 %2396 }
 0x612   : > { %v2410_v59 = vadd.f32 %v2397_v13, %v2343_v45 }
 0x614   : > { %2419 = vrot.lane.b32.xlu0 %v2410_v59, %s4706_s2 }
 0x62a   : > { %v2395_v15 = vpop.permute.xlu1 %2394 }
 0x62b   : > { %v2403_v34 = vsel %vm2402_vm15, %v2395_v15, %v2397_v13 }
 0x62c   : > { %v2409_v41 = vadd.f32 %v2403_v34, %v2342_v38  ;;  %v2543_v34 = vld [vmem:[%s6382_s6 + $0x48] sm:$0xf] }
 0x62e   : > { %2417 = vrot.lane.b32.xlu0 %v2409_v41, %s4706_s2  ;;  %v2581_v41 = vunpack.c.l.b16 %v2543_v34 }
 0x632   : > { %v2399_v61 = vpop.permute.xlu2 %2398  ;;  %v2290_v48 = vpop.permute.xlu1 %2289 }
 0x633   : > { %v2300_v33 = vadd.f32 %v2290_v48, %v6004_v49 }
 0x636   : > { %2467 = vperm.xlu0 %4585, %v2459_v4   ;;  %v2591_v4 = vpack.c.b16 %v2581_v41, %v2581_v41 }
 0x63a   : > { %v2375_v31 = vpop.permute.xlu2 %2374  ;;  %v2284_v43 = vpop.permute.xlu1 %2283 }
 0x642   : > { %v2288_v7 = vpop.permute.xlu2 %2287  ;;  %v2443_v60 = vpop.permute.xlu1 %2442 }
 0x643   : > { %v2292_v62 = vsel %vm833_vm4, %v2288_v7, %v2290_v48 }
 0x644   : > { %v2299_v12 = vadd.f32 %v2292_v62, %v5992_v10 }
 0x649   : > { %v2401_v22 = vpop.permute.xlu0 %2400 }
 0x64a   : > { %v2412_v56 = vadd.f32 %v2401_v22, %v2345_v19  ;;  %v2404_v51 = vsel %vm2402_vm15, %v2399_v61, %v2401_v22  ;;  %v2373_v37 = vpop.permute.xlu2 %2372  ;;  %v2606_v19 = vand.u32 %v2591_v4, %v5582_v21  ;;  %v4488_v21 = vld [vmem:[%s6382_s6 + $0x40] sm:$0xff] }
 0x64b   : > { %v2411_v53 = vadd.f32 %v2404_v51, %v2344_v39  ;;  %v2380_v0 = vsel %vm1005_vm6, %v2373_v37, %v2375_v31 }
 0x64c   : > { %2423 = vrot.lane.b32.xlu1 %v2412_v56, %s4706_s2  ;;  %2628 = vmatpush.bf16.msra.mxu2 %v2606_v19  ;;  %v4500_v19 = vld [vmem:[%s6383_s7 + $0x6c] sm:$0xff] }
 0x650   : > { %2629 = vmatpush.bf16.msra.mxu2 %v4488_v21 }
 0x651   : > { %v2286_v50 = vpop.permute.xlu0 %2285 }
 0x652   : > { %v2298_v32 = vadd.f32 %v2286_v50, %v6002_v1  ;;  %v2447_v6 = vpop.permute.xlu2 %2446  ;;  %v2291_v40 = vsel %vm833_vm4, %v2284_v43, %v2286_v50  ;;  %v4487_v43 = vld [vmem:[%s6382_s6 + $0x38] sm:$0xff] }
 0x653   : > { %v2297_v3 = vadd.f32 %v2291_v40, %v5990_v63  ;;  %2608 = vmatpush.bf16.msra.mxu0 %v4487_v43 }
 0x654   : > { %2421 = vrot.lane.b32.xlu1 %v2411_v53, %s4706_s2  ;;  %v2387_v42 = vadd.f32 %v2375_v31, %v2298_v32  ;;  %v4485_v32 = vld [vmem:[%s6382_s6 + $0x28] sm:$0xff] }
 0x655   : > { %v2386_v13 = vadd.f32 %v2380_v0, %v2297_v3  ;;  %v4119_v3 = vld [vmem:[%s6383_s7 + $0x4c] sm:$0x3] }
 0x659   : > { %v2379_v2 = vpop.permute.xlu0 %2378 }
 0x65a   : > { %v2389_v8 = vadd.f32 %v2379_v2, %v2300_v33  ;;  %v2463_v14 = vpop.permute.xlu2 %2462 }
 0x65c   : > { %2440 = vrot.lane.b32.xlu1 %v2220_v30, %s6407_s15  ;;  %s3482_s15 = scalar_lea.hbm %s6389_s13, %s4799_s29 }
 0x65d   : > { %s3486_s2 = sshll.u32 %s3482_s15, 4  ;;  %s3487_s2 = int_to_ptr.hbm [resolvable:$true] %s3486_s2 }
 0x65e   : > { %s4645_s21 = sshra.s32 %s3487_s2, 4  ;;  %s4646_s21 = int_to_ptr.hbm [resolvable:$true] %s4645_s21 }
 0x65f   : > { %s4647_s22 = scalar_lea.hbm %s4646_s21, 1  ;;  %p4652_p0 = scmp.lt.s32.totalorder %s4646_s21, %s6389_s13 }
 0x660   : > { %p4648_p11 = scmp.ne.s32.totalorder %s4646_s21, %s4647_s22 }
 0x661   : > { %v2377_v9 = vpop.permute.xlu0 %2376 }
 0x662   : > { %v2381_v17 = vsel %vm1005_vm6, %v2377_v9, %v2379_v2  ;;  %v2445_v5 = vpop.permute.xlu2 %2444  ;;  %p4649_p12 = pnand %p4648_p11, %p4816_p5 }
 0x663   : > { %v2388_v49 = vadd.f32 %v2381_v17, %v2299_v12  ;;  %v2449_v10 = vsel %vm1242_vm11, %v2445_v5, %v2447_v6 }
 0x664   : > { %p4650_p13 = pneg %p4649_p12 }
 0x686   : > { %v2420_v52 = vpop.permute.xlu0 %2419 }
 0x687   : > { %v2433_v24 = vadd.f32 %v2420_v52, %v2387_v42  ;;  %v4482_v42 = vld [vmem:[%s6382_s6 + $0x10] sm:$0xff] }
 0x689   : > { %v2455_v46 = vadd.f32 %v2443_v60, %v2433_v24 }
 0x68b   : > { %v2471_v36 = vadd.f32 %v2463_v14, %v2455_v46 }
 0x68d   : > { %v2475_v55 = vmax.f32 %v2471_v36, 0.0 }
 0x6a0   : > { %v2418_v47 = vpop.permute.xlu0 %2417 }
 0x6a1   : > { %v2426_v45 = vsel %vm2425_vm2, %v2418_v47, %v2420_v52  ;;  %v4486_v52 = vld [vmem:[%s6382_s6 + $0x30] sm:$0xff] }
 0x6a2   : > { %v2432_v29 = vadd.f32 %v2426_v45, %v2386_v13  ;;  %2609 = vmatpush.bf16.msra.mxu0 %v4486_v52  ;;  %v4492_v13 = vld [vmem:[%s6383_s7 + $0x1c] sm:$0xff] }
 0x6a6   : > { %2610 = vmatpush.bf16.msra.mxu0 %v4485_v32 }
 0x6a8   : > { %v2468_v27 = vpop.permute.xlu0 %2467 }
 0x6be   : > { %v2424_v54 = vpop.permute.xlu1 %2423 }
 0x6bf   : > { %v2435_v58 = vadd.f32 %v2424_v54, %v2389_v8 }
 0x6c1   : > { %v2457_v18 = vadd.f32 %v2447_v6, %v2435_v58  ;;  %v4484_v6 = vld [vmem:[%s6382_s6 + $0x20] sm:$0xff] }
 0x6c2   : > { %2611 = vmatpush.bf16.msra.mxu0 %v4484_v6  ;;  %v4480_v58 = vld [vmem:[%s6382_s6] sm:$0xff] }
 0x6c3   : > { %v2473_v1 = vadd.f32 %v2468_v27, %v2457_v18 }
 0x6c5   : > { %v2477_v16 = vmax.f32 %v2473_v1, 0.0 }
 0x6c6   : > { %v2422_v20 = vpop.permute.xlu1 %2421 }
 0x6c7   : > { %v2427_v25 = vsel %vm2425_vm2, %v2422_v20, %v2424_v54  ;;  %v4607_v28 = vpack.i.bf16 %v2477_v16, %v2475_v55  ;;  %v4481_v54 = vld [vmem:[%s6382_s6 + $0x8] sm:$0xff] }
 0x6c8   : > { %v2434_v11 = vadd.f32 %v2427_v25, %v2388_v49  ;;  %v4100_v25 = vld [vmem:[%s6383_s7 + $0x24] sm:$0x3] }
 0x6c9   : > { %4608 = vrot.lane.b32.xlu0 %v4607_v28, %s6405_s16  ;;  %v2664_v28 = vunpack.c.l.b16 %v4100_v25  ;;  %v4520_v25 = vld [vmem:[%s6383_s7 + $0x134] sm:$0xff] }
 0x6ca   : > { %v2456_v59 = vadd.f32 %v2449_v10, %v2434_v11  ;;  %v2712_v11 = vunpack.c.l.b16 %v4119_v3  ;;  %v4515_v3 = vld [vmem:[%s6383_s7 + $0x104] sm:$0xff] }
 0x6cb   : > { %v2667_v5 = vpack.c.b16 %v2664_v28, %v2664_v28  ;;  %v2642_v28 = vld [vmem:[%s6383_s7 + $0x10] sm:$0x3] }
 0x6cc   : > { %v2472_v26 = vadd.f32 %v2468_v27, %v2456_v59  ;;  %v2715_v45 = vpack.c.b16 %v2712_v11, %v2712_v11  ;;  %v4496_v59 = vld [vmem:[%s6383_s7 + $0x44] sm:$0xff]  ;;  %v3033_v11 = vunpack.c.l.b16 %v2642_v28 }
 0x6cd   : > { %v2675_v0 = vsel %vm527_vm1, %v2667_v5, 0  ;;  %v4114_v5 = vld [vmem:[%s6383_s7 + $0x38] sm:$0x3]  ;;  %v4525_v28 = vld [vmem:[%s6385_s9 + $0x20] sm:$0xff] }
 0x6ce   : > { %v2441_v30 = vpop.permute.xlu1 %2440  ;;  %v2476_v63 = vmax.f32 %v2472_v26, 0.0  ;;  %2682 = vmatpush.bf16.msrb.mxu2 %v2675_v0  ;;  %v2722_v10 = vsel %vm527_vm1, %v2715_v45, 0  ;;  %v4519_v0 = vld [vmem:[%s6383_s7 + $0x12c] sm:$0xff]  ;;  %v3068_v45 = vunpack.c.l.b16 %v4114_v5 }
 0x6cf   : > { %v2448_v23 = vsel %vm1242_vm11, %v2441_v30, %v2443_v60  ;;  %v4483_v60 = vld [vmem:[%s6382_s6 + $0x18] sm:$0xff] }
 0x6d0   : > { %v2454_v35 = vadd.f32 %v2448_v23, %v2432_v29  ;;  %2612 = vmatpush.bf16.msra.mxu0 %v4483_v60  ;;  %v4491_v29 = vld [vmem:[%s6383_s7 + $0x14] sm:$0xff]  ;;  %v4495_v30 = vld [vmem:[%s6383_s7 + $0x3c] sm:$0xff] }
 0x6d1   : > { %v4514_v23 = vld [vmem:[%s6383_s7 + $0xf8] sm:$0xff] }
 0x6d2   : > { %v2470_v44 = vadd.f32 %v2463_v14, %v2454_v35  ;;  %2683 = vmatpush.bf16.msrb.mxu2 %v4492_v13  ;;  %v4138_v35 = vld [vmem:[%s6383_s7 + $0x74] sm:$0x3] }
 0x6d3   : > { %v2759_v26 = vunpack.c.l.b16 %v4138_v35  ;;  %v4490_v35 = vld [vmem:[%s6383_s7 + $0x8] sm:$0xff] }
 0x6d4   : > { %v2474_v38 = vmax.f32 %v2470_v44, 0.0  ;;  %2613 = vmatpush.bf16.msra.mxu0 %v4482_v42  ;;  %v4157_v44 = vld [vmem:[%s6383_s7 + $0x9c] sm:$0x3] }
 0x6d6   : > { %v4612_v15 = vpack.i.bf16 %v2476_v63, %v2474_v38  ;;  %2684 = vmatpush.bf16.msrb.mxu2 %v4491_v29 }
 0x6d8   : > { %4613 = vrot.lane.b32.xlu1 %v4612_v15, %s6405_s16  ;;  %2614 = vmatpush.bf16.msra.mxu0 %v4481_v54  ;;  %v4513_v15 = vld [vmem:[%s6383_s7 + $0xf0] sm:$0xff]  ;;  %s431_s16 = sand.u32 1, %s4685_s26  }
 0x6d9   : > { %s432_s0 = scalar_lea.vmem [#allocation2], %s431_s16  ;;  %s3474_s20 = scalar_lea.sflag [#allocation3], %s431_s16 }
 0x6da   : > { %s3484_s1 = sshll.u32 %s432_s0, 4  ;;  %s3485_s1 = int_to_ptr.vmem [resolvable:$true] %s3484_s1 }
 0x6dc   : > { %2615 = vmatpush.bf16.msra.mxu0 %v4480_v58  ;;  %v4507_v58 = vld [vmem:[%s6383_s7 + $0xb4] sm:$0xff] }
 0x6e0   : > { %2729 = vmatpush.bf16.msrb.mxu0 %v2722_v10  ;;  %v3036_v10 = vpack.c.b16 %v3033_v11, %v3033_v11 }
 0x6e2   : > { %v3043_v29 = vsel %vm527_vm1, %v3036_v10, 0  ;;  %v4524_v10 = vld [vmem:[%s6385_s9 + $0x18] sm:$0xff] }
 0x6e4   : > { %2730 = vmatpush.bf16.msrb.mxu0 %v4496_v59  ;;  %v3071_v59 = vpack.c.b16 %v3068_v45, %v3068_v45 }
 0x6e8   : > { %2731 = vmatpush.bf16.msrb.mxu0 %v4495_v30 }
 0x73b   : > { %v4609_v22 = vpop.permute.xlu0 %4608 }
 0x73c   : > { %v4611_v56 = vunpack.i.h.bf16 %v4609_v22  ;;  %v4610_v57 = vunpack.i.l.bf16 %v4609_v22  ;;  %v4504_v22 = vld [vmem:[%s6383_s7 + $0x94] sm:$0xff] }
 0x73e   : > { %v2499_v61 = vmax.f32 %v2477_v16, %v4611_v56  ;;  %v2497_v51 = vmax.f32 %v2475_v55, %v4610_v57  ;;  %v4209_v55 = vld [vmem:[%s6383_s7 + $0x100] sm:$0x3] }
 0x73f   : > { %v3242_v16 = vunpack.c.l.b16 %v4209_v55 }
 0x740   : > { %v4617_v39 = vpack.i.bf16 %v2499_v61, %v2497_v51 }
 0x741   : > { %v3245_v49 = vpack.c.b16 %v3242_v16, %v3242_v16 }
 0x742   : > { %4618 = vrot.lane.b32.xlu2 %v4617_v39, %s4707_s30 }
 0x743   : > { %v3252_v20 = vsel %vm527_vm1, %v3245_v49, 0 }
 0x744   : > { %3259 = vmatpush.bf16.msra.mxu1 %v3252_v20  ;;  %v4516_v20 = vld [vmem:[%s6383_s7 + $0x10c] sm:$0xff] }
 0x748   : > { %3260 = vmatpush.bf16.msra.mxu1 %v4514_v23  ;;  %v3078_v23 = vsel %vm527_vm1, %v3071_v59, 0 }
 0x74a   : > { %v4614_v53 = vpop.permute.xlu1 %4613 }
 0x74b   : > { %v4616_v50 = vunpack.i.h.bf16 %v4614_v53  ;;  %v4615_v31 = vunpack.i.l.bf16 %v4614_v53  ;;  %v4195_v53 = vld [vmem:[%s6383_s7 + $0xec] sm:$0x3] }
 0x74c   : > { %3261 = vmatpush.bf16.msra.mxu1 %v4513_v15 }
 0x74d   : > { %v2491_v2 = vsel %vm833_vm4, %v4616_v50, %v4611_v56  ;;  %v2490_v7 = vsel %vm833_vm4, %v4615_v31, %v4610_v57  ;;  %vm2512_vm4 = vcmask 932864   ;;  %v4499_v56 = vld [vmem:[%s6383_s7 + $0x64] sm:$0xff]  ;;  %v4503_v57 = vld [vmem:[%s6383_s7 + $0x8c] sm:$0xff] }
 0x74e   : > { %v2496_v48 = vmax.f32 %v2474_v38, %v2490_v7  ;;  %v2498_v9 = vmax.f32 %v2476_v63, %v2491_v2  ;;  %v2762_v38 = vpack.c.b16 %v2759_v26, %v2759_v26  ;;  %v2806_v63 = vunpack.c.l.b16 %v4157_v44  ;;  %v4494_v26 = vld [vmem:[%s6383_s7 + $0x30] sm:$0xff]  ;;  %v4133_v44 = vld [vmem:[%s6383_s7 + $0x60] sm:$0x3] }
 0x74f   : > { %v2905_v7 = vunpack.c.l.b16 %v4195_v53  ;;  %v3103_v15 = vunpack.c.l.b16 %v4133_v44  ;;  %v4171_v53 = vld [vmem:[%s6383_s7 + $0xb0] sm:$0x3] }
 0x750   : > { %v4622_v37 = vpack.i.bf16 %v2498_v9, %v2496_v48  ;;  %v2769_v34 = vsel %vm527_vm1, %v2762_v38, 0  ;;  %v2809_v41 = vpack.c.b16 %v2806_v63, %v2806_v63  ;;  %v4489_v38 = vld [vmem:[%s6383_s7] sm:$0xff]  ;;  %v4152_v63 = vld [vmem:[%s6383_s7 + $0x88] sm:$0x3] }
 0x751   : > { %v2908_v21 = vpack.c.b16 %v2905_v7, %v2905_v7  ;;  %v3172_v7 = vunpack.c.l.b16 %v4171_v53 }
 0x752   : > { %4623 = vrot.lane.b32.xlu0 %v4622_v37, %s4707_s30  ;;  %v2816_v4 = vsel %vm527_vm1, %v2809_v41, 0  ;;  %v3138_v41 = vunpack.c.l.b16 %v4152_v63  ;;  %s4651_s30 = scalar_lea.hbm %s6389_s13, 2 }
 0x753   : > { %p4653_p1 = scmp.lt.s32.totalorder %s4651_s30, %s4647_s22 }
 0x755   : > { %p4654_p2 = por %p4653_p1, %p4652_p0 }
 0x757   : > { %p4655_p3 = pnand %p4654_p2, %p4650_p13 }
 0x79c   : > { %v4619_v47 = vpop.permute.xlu2 %4618 }
 0x79d   : > { %v4621_v24 = vunpack.i.h.bf16 %v4619_v47  ;;  %v4620_v33 = vunpack.i.l.bf16 %v4619_v47  ;;  %v2915_v47 = vsel %vm527_vm1, %v2908_v21, 0  ;;  %v3175_v21 = vpack.c.b16 %v3172_v7, %v3172_v7 }
 0x79f   : > { %v2522_v8 = vmax.f32 %v2499_v61, %v4621_v24  ;;  %v2520_v46 = vmax.f32 %v2497_v51, %v4620_v33  ;;  %v4176_v61 = vld [vmem:[%s6383_s7 + $0xc4] sm:$0x3] }
 0x7a0   : > { %v2858_v31 = vunpack.c.l.b16 %v4176_v61 }
 0x7a1   : > { %v2524_v14 = vpack.c.bf16 %v2522_v8, %v2520_v46  ;;  %v4512_v46 = vld [vmem:[%s6383_s7 + $0xe4] sm:$0xff] }
 0x7a3   : > { %4095 = vmatmul.msk.bf16.vlgmr.msra.gmra.mxu2 %vm2601_vm3, %v2524_v14  ;;  %v4214_v14 = vld [vmem:[%s6383_s7 + $0x114] sm:$0x3] }
 0x7a4   : > { %2776 = vmatpush.bf16.msra.mxu2 %v2769_v34  ;;  %v4493_v34 = vld [vmem:[%s6383_s7 + $0x28] sm:$0xff] }
 0x7a8   : > { %2777 = vmatpush.bf16.msra.mxu2 %v4500_v19  ;;  %v3141_v19 = vpack.c.b16 %v3138_v41, %v3138_v41 }
 0x7aa   : > { %v3148_v61 = vsel %vm527_vm1, %v3141_v19, 0  ;;  %v4522_v19 = vld [vmem:[%s6385_s9 + $0x8] sm:$0xff] }
 0x7ac   : > { %2778 = vmatpush.bf16.msra.mxu2 %v4499_v56 }
 0x7c4   : > { %v4624_v62 = vpop.permute.xlu0 %4623 }
 0x7c5   : > { %v4626_v36 = vunpack.i.h.bf16 %v4624_v62  ;;  %v4625_v18 = vunpack.i.l.bf16 %v4624_v62  ;;  %v4233_v62 = vld [vmem:[%s6383_s7 + $0x13c] sm:$0x3] }
 0x7c7   : > { %v2513_v27 = vsel %vm2512_vm4, %v4625_v18, %v4620_v33  ;;  %v2514_v17 = vsel %vm2512_vm4, %v4626_v36, %v4621_v24  ;;  %v4508_v33 = vld [vmem:[%s6383_s7 + $0xbc] sm:$0xff]  ;;  %v2952_v36 = vunpack.c.l.b16 %v4214_v14 }
 0x7c8   : > { %v2519_v1 = vmax.f32 %v2496_v48, %v2513_v27  ;;  %v2521_v12 = vmax.f32 %v2498_v9, %v2514_v17  ;;  %v2861_v9 = vpack.c.b16 %v2858_v31, %v2858_v31  ;;  %v4511_v27 = vld [vmem:[%s6383_s7 + $0xdc] sm:$0xff]  ;;  %v2999_v17 = vunpack.c.l.b16 %v4233_v62  ;;  %v4190_v31 = vld [vmem:[%s6383_s7 + $0xd8] sm:$0x3] }
 0x7ca   : > { %v2523_v40 = vpack.c.bf16 %v2521_v12, %v2519_v1  ;;  %v2868_v6 = vsel %vm527_vm1, %v2861_v9, 0  ;;  %v2955_v1 = vpack.c.b16 %v2952_v36, %v2952_v36  ;;  %v3002_v12 = vpack.c.b16 %v2999_v17, %v2999_v17  ;;  %v4518_v36 = vld [vmem:[%s6383_s7 + $0x120] sm:$0xff] }
 0x7cb   : > { %v3207_v9 = vunpack.c.l.b16 %v4190_v31  ;;  %v4521_v31 = vld [vmem:[%s6385_s9] sm:$0xff] }
 0x7cc   : > { %2616 = vmatmul.bf16.vlgmr.msra.gmra.mxu0 %v2523_v40  ;;  %v2962_v55 = vsel %vm527_vm1, %v2955_v1, 0  ;;  %v3009_v49 = vsel %vm527_vm1, %v3002_v12, 0  ;;  %v4527_v1 = vld [vmem:[%s6385_s9 + $0x30] sm:$0xff] }
 0x7cd   : > { %2823 = vmatpush.bf16.msra.mxu0 %v2816_v4  ;;  %v3106_v4 = vpack.c.b16 %v3103_v15, %v3103_v15 }
 0x7cf   : > { %v3113_v56 = vsel %vm527_vm1, %v3106_v4, 0 }
 0x7d1   : > { %2824 = vmatpush.bf16.msra.mxu0 %v4504_v22 }
 0x7d5   : > { %2825 = vmatpush.bf16.msra.mxu0 %v4503_v57 }
 0x826   : > { %v2631_v51 = vpop.f32.mrf.mxu2 }
 0x82e   : > { %v2633_v52 = vpop.f32.mrf.mxu2 }
 0x849   : > { %v2617_v39 = vpop.f32.mrf.mxu0 }
 0x84a   : > { %v2632_v50 = vadd.f32 %v2631_v51, %v2617_v39  ;;  %v4498_v51 = vld [vmem:[%s6383_s7 + $0x58] sm:$0xff]  ;;  %v4502_v39 = vld [vmem:[%s6383_s7 + $0x80] sm:$0xff] }
 0x84c   : > { %v6157_v2 = vpack.c.bf16 %v2632_v50, %v2632_v50  ;;  %v4497_v50 = vld [vmem:[%s6383_s7 + $0x50] sm:$0xff] }
 0x84e   : > { %v2650_v48 = vunpack.c.l.b16 %v6157_v2 }
 0x850   : > { %v6160_v37 = vpack.c.b16 %v2650_v48, %v2650_v48  ;;  %v4501_v48 = vld [vmem:[%s6383_s7 + $0x78] sm:$0xff] }
 0x851   : > { %v2619_v43 = vpop.f32.mrf.mxu0 }
 0x852   : > { %v2653_v32 = vshrl.u32 %v6160_v37, 16  ;;  %v2634_v60 = vadd.f32 %v2633_v52, %v2619_v43  ;;  %v3210_v43 = vpack.c.b16 %v3207_v9, %v3207_v9  ;;  %v3182_v52 = vsel %vm527_vm1, %v3175_v21, 0 }
 0x853   : > { %v3093_v14 = vrot.slane %v6160_v37, 2  ;;  %v3128_v62 = vrot.slane %v6160_v37, 3 }
 0x854   : > { %4109 = vmatmul.msk.bf16.vlgmr.msrb.gmra.mxu2 %vm2670_vm5, %v2653_v32  ;;  %v2702_v42 = vrot.slane %v2653_v32, 1  ;;  %v6166_v24 = vpack.c.bf16 %v2634_v60, %v2634_v60  ;;  %v2749_v40 = vrot.slane %v2653_v32, 2  ;;  %v2796_v16 = vrot.slane %v2653_v32, 3  ;;  %v4506_v60 = vld [vmem:[%s6383_s7 + $0xa8] sm:$0xff] }
 0x855   : > { %2875 = vmatpush.bf16.msrb.mxu2 %v2868_v6  ;;  %v3058_v32 = vrot.slane %v6160_v37, 1  ;;  %v3217_v6 = vsel %vm527_vm1, %v3210_v43, 0 }
 0x856   : > { %4128 = vmatmul.msk.bf16.vlgmr.msrb.gmra.mxu0 %vm2670_vm5, %v2702_v42  ;;  %v2844_v8 = vunpack.c.l.b16 %v6166_v24  ;;  %v4510_v42 = vld [vmem:[%s6383_s7 + $0xd0] sm:$0xff] }
 0x857   : > { %2922 = vmatpush.bf16.msrb.mxu0 %v2915_v47  ;;  %v4228_v47 = vld [vmem:[%s6383_s7 + $0x128] sm:$0x3] }
 0x858   : > { %v6179_v54 = vpack.c.b16 %v2844_v8, %v2844_v8  ;;  %v4509_v8 = vld [vmem:[%s6383_s7 + $0xc8] sm:$0xff] }
 0x859   : > { %2876 = vmatpush.bf16.msrb.mxu2 %v4508_v33  ;;  %v3277_v33 = vunpack.c.l.b16 %v4228_v47 }
 0x85a   : > { %v3232_v18 = vrot.slane %v6179_v54, 2  ;;  %v2847_v13 = vshrl.u32 %v6179_v54, 16  ;;  %v3197_v37 = vrot.slane %v6179_v54, 1  ;;  %v3267_v17 = vrot.slane %v6179_v54, 3 }
 0x85b   : > { %2923 = vmatpush.bf16.msrb.mxu0 %v4512_v46  ;;  %v3280_v46 = vpack.c.b16 %v3277_v33, %v3277_v33 }
 0x85c   : > { %4305 = vmatmul.msk.bf16.vlgmr.msra.gmra.mxu1 %vm2670_vm5, %v3232_v18  ;;  %v2895_v30 = vrot.slane %v2847_v13, 1  ;;  %v2942_v22 = vrot.slane %v2847_v13, 2  ;;  %v2989_v57 = vrot.slane %v2847_v13, 3  ;;  %v4517_v18 = vld [vmem:[%s6383_s7 + $0x118] sm:$0xff] }
 0x85d   : > { %2877 = vmatpush.bf16.msrb.mxu2 %v4507_v58  ;;  %v3287_v58 = vsel %vm527_vm1, %v3280_v46, 0  ;;  %vm3426_vm1 = vcmask 523264  }
 0x85f   : > { %2924 = vmatpush.bf16.msrb.mxu0 %v4511_v27  ;;  %v4528_v27 = vld [vmem:[%s6385_s9 + $0x38] sm:$0xff] }
 0x860   : > { %3378 = vmatpush.bf16.msra.mxu3 %v4528_v27  ;;  %v4529_v27 = vld [vmem:[%s6387_s11] sm:$0xff] }
 0x864   : > { %4147 = vmatmul.msk.bf16.vlgmr.msra.gmra.mxu2 %vm2670_vm5, %v2749_v40  ;;  %3379 = vmatpush.bf16.msra.mxu3 %v4527_v1 }
 0x865   : > { %2969 = vmatpush.bf16.msra.mxu2 %v2962_v55  ;;  %v4526_v55 = vld [vmem:[%s6385_s9 + $0x28] sm:$0xff] }
 0x866   : > { %4166 = vmatmul.msk.bf16.vlgmr.msra.gmra.mxu0 %vm2670_vm5, %v2796_v16 }
 0x867   : > { %3016 = vmatpush.bf16.msra.mxu0 %v3009_v49 }
 0x868   : > { %3380 = vmatpush.bf16.msra.mxu3 %v4526_v55 }
 0x869   : > { %2970 = vmatpush.bf16.msra.mxu2 %v4516_v20 }
 0x86b   : > { %3017 = vmatpush.bf16.msra.mxu0 %v4520_v25 }
 0x86c   : > { %3381 = vmatpush.bf16.msra.mxu3 %v4525_v28 }
 0x86d   : > { %2971 = vmatpush.bf16.msra.mxu2 %v4515_v3 }
 0x86f   : > { %3018 = vmatpush.bf16.msra.mxu0 %v4519_v0 }
 0x870   : > { %3382 = vmatpush.bf16.msra.mxu3 %v4524_v10 }
 0x874   : > { %4185 = vmatmul.msk.bf16.vlgmr.msrb.gmra.mxu2 %vm2670_vm5, %v2847_v13 }
 0x875   : > { %3050 = vmatpush.bf16.msrb.mxu2 %v3043_v29 }
 0x876   : > { %4204 = vmatmul.msk.bf16.vlgmr.msrb.gmra.mxu0 %vm2670_vm5, %v2895_v30 }
 0x877   : > { %3085 = vmatpush.bf16.msrb.mxu0 %v3078_v23 }
 0x879   : > { %3051 = vmatpush.bf16.msrb.mxu2 %v4490_v35  ;;  %v4523_v35 = vld [vmem:[%s6385_s9 + $0x10] sm:$0xff] }
 0x87a   : > { %3383 = vmatpush.bf16.msra.mxu3 %v4523_v35 }
 0x87b   : > { %3086 = vmatpush.bf16.msrb.mxu0 %v4494_v26 }
 0x87d   : > { %3052 = vmatpush.bf16.msrb.mxu2 %v4489_v38 }
 0x87e   : > { %3384 = vmatpush.bf16.msra.mxu3 %v4522_v19 }
 0x87f   : > { %3087 = vmatpush.bf16.msrb.mxu0 %v4493_v34 }
 0x882   : > { %3385 = vmatpush.bf16.msra.mxu3 %v4521_v31 }
 0x884   : > { %4223 = vmatmul.msk.bf16.vlgmr.msra.gmra.mxu2 %vm2670_vm5, %v2942_v22 }
 0x885   : > { %3120 = vmatpush.bf16.msra.mxu2 %v3113_v56 }
 0x886   : > { %4242 = vmatmul.msk.bf16.vlgmr.msra.gmra.mxu0 %vm2670_vm5, %v2989_v57 }
 0x887   : > { %3155 = vmatpush.bf16.msra.mxu0 %v3148_v61 }
 0x889   : > { %3121 = vmatpush.bf16.msra.mxu2 %v4498_v51 }
 0x88b   : > { %3156 = vmatpush.bf16.msra.mxu0 %v4502_v39 }
 0x88d   : > { %3122 = vmatpush.bf16.msra.mxu2 %v4497_v50 }
 0x88f   : > { %3157 = vmatpush.bf16.msra.mxu0 %v4501_v48  ;;  %v4532_v48 = vld [vmem:[%s6387_s11 + $0x18] sm:$0xff] }
 0x894   : > { %4251 = vmatmul.msk.bf16.vlgmr.msrb.gmra.mxu2 %vm2670_vm5, %v6157_v2  ;;  %v4505_v2 = vld [vmem:[%s6383_s7 + $0xa0] sm:$0xff] }
 0x895   : > { %3189 = vmatpush.bf16.msrb.mxu2 %v3182_v52  ;;  %v4531_v52 = vld [vmem:[%s6387_s11 + $0x10] sm:$0xff] }
 0x896   : > { %4260 = vmatmul.msk.bf16.vlgmr.msrb.gmra.mxu0 %vm2670_vm5, %v3058_v32 }
 0x897   : > { %3224 = vmatpush.bf16.msrb.mxu0 %v3217_v6 }
 0x899   : > { %3190 = vmatpush.bf16.msrb.mxu2 %v4506_v60 }
 0x89b   : > { %3225 = vmatpush.bf16.msrb.mxu0 %v4510_v42 }
 0x89d   : > { %3191 = vmatpush.bf16.msrb.mxu2 %v4505_v2 }
 0x89f   : > { %3226 = vmatpush.bf16.msrb.mxu0 %v4509_v8  ;;  %v3309_v8 = vld [vmem:[%s6384_s8] sm:$0x1] }
 0x8a4   : > { %4269 = vmatmul.msk.bf16.vlgmr.msra.gmra.mxu2 %vm2670_vm5, %v3093_v14 }
 0x8a5   : > { %3294 = vmatpush.bf16.msra.mxu2 %v3287_v58 }
 0x8a6   : > { %4278 = vmatmul.msk.bf16.vlgmr.msra.gmra.mxu0 %vm2670_vm5, %v3128_v62 }
 0x8a7   : > { %3434 = vmatpush.bf16.msra.mxu0 %v4532_v48 }
 0x8a9   : > { %3295 = vmatpush.bf16.msra.mxu2 %v4518_v36 }
 0x8ab   : > { %3435 = vmatpush.bf16.msra.mxu0 %v4531_v52 }
 0x8ad   : > { %3296 = vmatpush.bf16.msra.mxu2 %v4517_v18  ;;  %v4530_v18 = vld [vmem:[%s6387_s11 + $0x8] sm:$0xff] }
 0x8af   : > { %3436 = vmatpush.bf16.msra.mxu0 %v4530_v18 }
 0x8b3   : > { %3437 = vmatpush.bf16.msra.mxu0 %v4529_v27 }
 0x8b4   : > { %4287 = vmatmul.msk.bf16.vlgmr.msrb.gmra.mxu2 %vm2670_vm5, %v6166_v24 }
 0x8b6   : > { %4296 = vmatmul.msk.bf16.vlgmr.msrb.gmra.mxu0 %vm2670_vm5, %v3197_v37  ;;  %v3329_v37 = vld [vmem:[%s6386_s10] sm:$0x1] }
 0x8c4   : > { %4314 = vmatmul.msk.bf16.vlgmr.msra.gmra.mxu2 %vm2670_vm5, %v3267_v17 }
 0x8d3   : > { %v2733_v12 = vpop.f32.mrf.mxu0 }
 0x8d7   : > { %v2686_v40 = vpop.f32.mrf.mxu2 }
 0x8d9   : > { %v3263_v24 = vpop.f32.mrf.mxu1 }
 0x8db   : > { %v2735_v16 = vpop.f32.mrf.mxu0 }
 0x8dc   : > { %v3401_v16 = vld [vmem:[%s6388_s12] sm:$0x1] }
 0x8df   : > { %v2688_v49 = vpop.f32.mrf.mxu2 }
 0x8e1   : > { %v3265_v20 = vpop.f32.mrf.mxu1 }
 0x8e3   : > { %v2827_v25 = vpop.f32.mrf.mxu0 }
 0x8e7   : > { %v2780_v54 = vpop.f32.mrf.mxu2 }
 0x8eb   : > { %v2829_v3 = vpop.f32.mrf.mxu0 }
 0x8ef   : > { %v2782_v5 = vpop.f32.mrf.mxu2 }
 0x8f3   : > { %v2926_v11 = vpop.f32.mrf.mxu0 }
 0x8f7   : > { %v2879_v0 = vpop.f32.mrf.mxu2 }
 0x8fb   : > { %v2928_v45 = vpop.f32.mrf.mxu0 }
 0x8ff   : > { %v2881_v13 = vpop.f32.mrf.mxu2 }
 0x903   : > { %v3020_v59 = vpop.f32.mrf.mxu0 }
 0x907   : > { %v2973_v29 = vpop.f32.mrf.mxu2 }
 0x908   : > { %v3264_v30 = vadd.f32 %v3263_v24, %v2973_v29  ;;  %v3444_v24 = vlaneseq }
 0x90a   : > { %v3445_v49 = vand.u32 127, %v3444_v24 }
 0x90b   : > { %v3022_v23 = vpop.f32.mrf.mxu0 }
 0x90c   : > { %vm3446_vm6 = vcmp.lt.s32.totalorder %v3445_v49, 10 }
 0x90f   : > { %v2975_v26 = vpop.f32.mrf.mxu2 }
 0x913   : > { %v3089_v44 = vpop.f32.mrf.mxu0 }
 0x914   : > { %v3090_v63 = vadd.f32 %v3089_v44, %v2733_v12 }
 0x917   : > { %v3054_v38 = vpop.f32.mrf.mxu2 }
 0x918   : > { %v3055_v15 = vadd.f32 %v3054_v38, %v2686_v40 }
 0x91a   : > { %v3302_v34 = vadd.f32 %v3090_v63, %v3055_v15 }
 0x91b   : > { %v3091_v41 = vpop.f32.mrf.mxu0 }
 0x91f   : > { %v3056_v4 = vpop.f32.mrf.mxu2 }
 0x923   : > { %v3159_v22 = vpop.f32.mrf.mxu0 }
 0x924   : > { %v3160_v57 = vadd.f32 %v3159_v22, %v2827_v25 }
 0x927   : > { %v3124_v56 = vpop.f32.mrf.mxu2 }
 0x928   : > { %v3125_v61 = vadd.f32 %v3124_v56, %v2780_v54 }
 0x92a   : > { %v3303_v51 = vadd.f32 %v3160_v57, %v3125_v61 }
 0x92b   : > { %v3161_v39 = vpop.f32.mrf.mxu0 }
 0x92c   : > { %v3306_v53 = vadd.f32 %v3303_v51, %v3302_v34 }
 0x92f   : > { %v3126_v50 = vpop.f32.mrf.mxu2 }
 0x933   : > { %v3228_v7 = vpop.f32.mrf.mxu0 }
 0x934   : > { %v3229_v21 = vadd.f32 %v3228_v7, %v2926_v11 }
 0x937   : > { %v3193_v9 = vpop.f32.mrf.mxu2 }
 0x938   : > { %v3194_v43 = vadd.f32 %v3193_v9, %v2879_v0 }
 0x93a   : > { %v3304_v32 = vadd.f32 %v3229_v21, %v3194_v43 }
 0x93b   : > { %v3230_v6 = vpop.f32.mrf.mxu0 }
 0x93f   : > { %v3195_v60 = vpop.f32.mrf.mxu2 }
 0x947   : > { %v3298_v42 = vpop.f32.mrf.mxu2 }
 0x948   : > { %v3299_v47 = vadd.f32 %v3298_v42, %v3020_v59 }
 0x94a   : > { %v3305_v2 = vadd.f32 %v3299_v47, %v3264_v30 }
 0x94c   : > { %v3307_v33 = vadd.f32 %v3305_v2, %v3304_v32 }
 0x94e   : > { %v3308_v46 = vadd.f32 %v3307_v33, %v3306_v53 }
 0x94f   : > { %v3300_v14 = vpop.f32.mrf.mxu2 }
 0x950   : > { %v3310_v58 = vadd.f32 %v3309_v8, %v3308_v46 }
 0x952   : > { %v3311_v62 = vmax.f32 %v3310_v58, 0.0 }
 0x954   : > { %v3312_v36 = vpack.c.bf16 %v3311_v62, %v3311_v62 }
 0x956   : > { %3386 = vmatmul.bf16.vlgmr.msra.gmra.mxu3 %v3312_v36 }
 0x9d9   : > { %v3387_v17 = vpop.f32.mrf.mxu3 }
 0x9da   : > { %v3388_v1 = vadd.f32 %v3387_v17, %v3329_v37 }
 0x9dc   : > { %v3391_v12 = vmax.f32 %v3388_v1, 0.0 }
 0x9de   : > { %v3392_v40 = vpack.c.bf16 %v3391_v12, %v3391_v12 }
 0x9e0   : > { %4363 = vmatmul.msk.bf16.vlgmr.msra.gmra.mxu0 %vm3426_vm1, %v3392_v40 }
 0x9e1   : > { %v3389_v55 = vpop.f32.mrf.mxu3 }
 0xa5d   : > { %v3439_v20 = vpop.f32.mrf.mxu0 }
 0xa5e   : > { %v3440_v25 = vadd.f32 %v3439_v20, %v3401_v16 }
 0xa60   : > { %v3443_v54 = vmax.f32 %v3440_v25, 0.0 }
 0xa62   : > { %v3447_v28 = vsel %vm3446_vm6, %v3443_v54, -1e+30 }
 0xa63   : > { %v3448_v3 = vsel %vm526_vm0, %v3447_v28, -inf }
 0xa64   : > { %3449 = vmax.xlane.f32.xlu1 %v3448_v3 }
 0xa65   : > { %v3441_v5 = vpop.f32.mrf.mxu0 }
 0xad7   : > { %v3450_v11 = vpop.xlane.xlu1 %3449 }
 0xad8   : > { %v3451_v0 = vsub.f32 %v3447_v28, %v3450_v11 }
 0xada   : > { %v3452_v45 = vmul.f32 1.442695, %v3451_v0 }
 0xadc   : > { %4627 = vpow2.f32 %v3452_v45 }
 0xae2   : > { %v4628_v10 = vpop.eup %4627 }
 0xae3   : > { %v3454_v13 = vsel %vm526_vm0, %v4628_v10, 0.0 }
 0xae4   : > { %3455 = vadd.xlane.f32.xlu2 %v3454_v13 }
 0xb57   : > { %v3456_v59 = vpop.xlane.xlu2 %3455 }
 0xb58   : > { %4629 = vrcp.f32 %v3456_v59  ;;  %v3468_v35 = vand.u32 2147483648, %v3456_v59  ;;  %v3466_v44 = vand.u32 2147483647, %v3456_v59  ;;  %vm3462_vm8 = vweird.f32 %v3456_v59 }
 0xb5a   : > { %v3469_v63 = vor.u32 1.1754944e-38, %v3468_v35  ;;  %vm3467_vm0 = vcmp.eq.f32.partialorder %v3466_v44, 8.507059e+37 }
 0xb5e   : > { %v4630_v29 = vpop.eup %4629 }
 0xb5f   : > { %v3458_v30 = vmul.f32 %v4630_v29, %v3456_v59  ;;  %vm3463_vm7 = vweird.f32 %v4630_v29 }
 0xb60   : > { %vm3464_vm9 = vmor %vm3462_vm8, %vm3463_vm7 }
 0xb61   : > { %v3459_v23 = vsub.f32 1.0, %v3458_v30 }
 0xb63   : > { %v3460_v26 = vmul.f32 %v4630_v29, %v3459_v23 }
 0xb65   : > { %v3461_v38 = vadd.f32 %v4630_v29, %v3460_v26 }
 0xb67   : > { %v3465_v15 = vsel %vm3464_vm9, %v4630_v29, %v3461_v38 }
 0xb68   : > { %v3470_v34 = vsel %vm3467_vm0, %v3469_v63, %v3465_v15 }
 0xb69   : > { %v3471_v41 = vmul.f32 %v4628_v10, %v3470_v34 }
 0xb6b   : > { %3472 = vst [vmem:[%s432_s0] sm:$0x1] %v3471_v41 }
 0xb6c   : > { %4658 = shalt.err (!%p4655_p3)
}
 0xb6d   : > { %4533 = dma.vmem_to_hbm [thread:$0]  (%p4816_p5), %s3485_s1, 16, %s3487_s2, %s3474_s20  }
 0xb6e PF: > { %p4539_p4 = scmp.ge.s32.totalorder %s4693_s28, 2  ;;  %s3498_s16 = sand.u32 1, %s4681_s25  }
 0xb6f   : > { %s3499_s15 = scalar_lea.sflag [#allocation3], %s3498_s16 }
 0xb70   : > { %p4536_p7 = pnand %p4539_p4, %p4820_p6 }
 0xb72   : > { %p4537_p8 = pneg %p4536_p7 }
 0xb74   : > { %4676 = dma.done.wait (%p4537_p8), %s3499_s15, 16  }
 0xb75   : > { %4678 = vsyncadd (%p4537_p8), %s3499_s15, 4294967280  ;;  %s6408_s0 = sld [smem:[#allocation5_spill]]  ;;  %p23_p9 = scmp.ge.s32.totalorder %s4803_s14, 4  }
 0xb76   : > { %s6409_s25 = smov %s4685_s26  ;;  %s6410_s26 = smov %s4689_s27 }
 0xb77   : > { %s6412_s28 = smov %s4803_s14  ;;  %25 = sbr.rel (!%p23_p9) target bundleno = 7 (0x7), region = 125 }
 0xb7b   : > { %s6411_s27 = smov %s6408_s0 }
 0xb7c   :  { %3504 = vsyncpa [#allocation3], 1 }
 0xb7d   :  { %3506 = vsyncpa [#allocation3 + $0x1], 1 }

</bundles_post_ra>
